<compile_context>
chip_gen: v6e
topology: v6e:2x2x1
jax: 0.10.0
libtpu: 0.0.40
codegen_flags: <defaults>
</compile_context>

<pallas_src>
import functools

import numpy as np
import jax
import jax.numpy as jnp
from jax.experimental import pallas as pl
from jax.experimental.pallas import tpu as pltpu

NEG_INF = -1e30


def _elu(x):
    # F.elu with alpha=1.
    return jnp.where(x > 0, x, jnp.exp(jnp.minimum(x, 0.0)) - 1.0)


def _softmax_last(x):
    m = jnp.max(x, axis=-1, keepdims=True)
    e = jnp.exp(x - m)
    s = jnp.sum(e, axis=-1, keepdims=True)
    return e * pl.reciprocal(s, approx=True)


# Row indices of the packed "vecs" array (all rows are width d_ctx == d_model).
(R_B_KB, R_INIT_MEM, R_B_Q1, R_B_MEM, R_B_CMB, R_W_LG, R_B_LG) = range(7)


# ----------------------------------------------------------------------------
# Pallas kernel: one grid step = `tb` batch examples; all weights resident in VMEM.
# ----------------------------------------------------------------------------
def lcgn_kernel(num_steps, d_ctx,
                qlen_ref, ent_ref,                        # scalar prefetch (SMEM), (B,)
                images_ref, qenc_ref, lstm_ref,           # per-block data
                w_kb_ref, w_q1_ref, w_q2_ref,
                w_loc_ref, w_ctx_ref, w_prod_ref,
                w_pkv_ref, w_mem_ref, w_cmb_ref,
                b_q2_ref, b_fused_ref, vecs_ref,
                out_ref):
    blk = pl.program_id(0)
    tb, n_ent, d_feat = images_ref.shape
    seq_l = lstm_ref.shape[1]
    d_model = lstm_ref.shape[2]
    d = d_ctx
    rows = tb * n_ent
    f32 = jnp.float32
    bf16 = jnp.bfloat16

    # Packed bias / vector rows (f32, static ref slices).
    b_kb = vecs_ref[R_B_KB:R_B_KB + 1, :]
    init_mem = vecs_ref[R_INIT_MEM:R_INIT_MEM + 1, :]
    b_q1 = vecs_ref[R_B_Q1:R_B_Q1 + 1, :]
    b_mem = vecs_ref[R_B_MEM:R_B_MEM + 1, :]
    b_cmb = vecs_ref[R_B_CMB:R_B_CMB + 1, :]
    w_lg = vecs_ref[R_W_LG:R_W_LG + 1, :]
    b_lg = vecs_ref[R_B_LG:R_B_LG + 1, 0:1]
    b_loc = b_fused_ref[0:1, :]        # [b_ploc | 0 0 0]                (1, 4d)
    b_ctxb = b_fused_ref[1:2, :]       # [b_pctx | b_qry b_key b_val]    (1, 4d)
    b_pkv = b_fused_ref[2:3, 0:2 * d]  # [b_pk b_pv]                     (1, 2d)

    images = images_ref[...].reshape(rows, d_feat)
    lstm = lstm_ref[...]                                   # (tb, L, d_model)
    q_enc = qenc_ref[...].reshape(tb, d_model)

    # ---------------- loc_ctx_init ----------------
    ssq = jnp.sum(images * images, axis=-1, keepdims=True)
    images_n = images * jax.lax.rsqrt(jnp.maximum(ssq, 1e-24))   # F.normalize(dim=-1)
    x_loc = jnp.dot(images_n.astype(bf16), w_kb_ref[...],
                    preferred_element_type=f32) + b_kb
    x_loc_bf = x_loc.astype(bf16)
    x_ctx0 = jnp.broadcast_to(init_mem, (rows, d))
    # eval mode: x_loc_drop / read_drop / x_ctx_var_drop (keep_prob=1.0) are identities.
    # TODO(synk): train-mode dropout masks and alpha_entmax with alpha != 1 are not implemented.

    # Loop-invariant x_loc projections: [proj_x_loc | Q_loc | K_loc | V_loc].
    loc_out = jnp.dot(x_loc_bf, w_loc_ref[...], preferred_element_type=f32) + b_loc
    proj_loc = loc_out[:, 0:d]
    qkv_loc = loc_out[:, d:]

    # ---------------- masks (cheap threshold compares) ----------------
    ent_s = [ent_ref[blk * tb + i] for i in range(tb)]
    qln_s = [qlen_ref[blk * tb + i] for i in range(tb)]
    len_thr = jnp.concatenate([jnp.full((1, 1), s, jnp.int32) for s in qln_s], axis=0)
    lidx = jax.lax.broadcasted_iota(jnp.int32, (tb, seq_l), 1)
    txt_mask = lidx >= len_thr                                            # (tb, L)

    flat_attn = n_ent < 128
    if flat_attn:
        # Flattened (rows x rows) attention with block-diagonal masking.
        ent_row = jnp.concatenate([jnp.full((1, n_ent), s, jnp.int32) for s in ent_s], axis=1)
        ent_col = jnp.concatenate([jnp.full((n_ent, 1), s, jnp.int32) for s in ent_s], axis=0)
        ex_row = jnp.concatenate([jnp.full((1, n_ent), i, jnp.int32) for i in range(tb)], axis=1)
        ex_col = jnp.concatenate([jnp.full((n_ent, 1), i, jnp.int32) for i in range(tb)], axis=0)
        loc_row = jax.lax.broadcasted_iota(jnp.int32, (1, rows), 1) - n_ent * ex_row
        loc_col = jax.lax.broadcasted_iota(jnp.int32, (rows, 1), 0) - n_ent * ex_col
        pad_mask = jnp.logical_or(loc_col >= ent_col, loc_row >= ent_row)   # (rows, rows)
        cross_mask = ex_col != ex_row                                       # (rows, rows)
    else:
        ent_thr = jnp.concatenate([jnp.full((1, 1, 1), s, jnp.int32) for s in ent_s], axis=0)
        row3 = jax.lax.broadcasted_iota(jnp.int32, (tb, n_ent, n_ent), 1)
        col3 = jax.lax.broadcasted_iota(jnp.int32, (tb, n_ent, n_ent), 2)
        mask2d = jnp.logical_or(col3 >= ent_thr, row3 >= ent_thr)

    # ---------------- textual command + message passing ----------------
    q_first = _elu(jnp.dot(q_enc.astype(bf16), w_q1_ref[...],
                           preferred_element_type=f32) + b_q1)            # (tb, dm)
    q_first_bf = q_first.astype(bf16)
    inv_sqrt_d = 1.0 / float(np.sqrt(d))

    def step(t, x_ctx):
        # ----- extract_textual_command (step t) -----
        w_q2_t = w_q2_ref[t]                                              # (dm, dm) bf16
        b_q2_t = b_q2_ref[t]                                              # (1, dm)  f32
        q_cmd = jnp.dot(q_first_bf, w_q2_t, preferred_element_type=f32) + b_q2_t
        v = q_cmd * w_lg
        # cmd_inter2logits(q_cmd * lstm) == sum_d(q_cmd * w_lg * lstm) + b_lg
        raw = jnp.sum(v[:, None, :] * lstm, axis=-1) + b_lg               # (tb, L)
        raw = jnp.where(txt_mask, NEG_INF, raw)                           # apply_mask1d
        att = _softmax_last(raw)
        cmd = jnp.sum(att[:, :, None] * lstm, axis=1)                     # (tb, dm)
        pkv = jnp.dot(cmd.astype(bf16), w_pkv_ref[...],
                      preferred_element_type=f32) + b_pkv                 # (tb, 2d)
        pk = pkv[:, 0:d]
        pv = pkv[:, d:]

        # ----- propagate_message -----
        x_ctx_bf = x_ctx.astype(bf16)
        # [proj_x_ctx | Q_ctx | K_ctx | V_ctx] (qkv bias folded into b_ctxb).
        ctx_out = jnp.dot(x_ctx_bf, w_ctx_ref[...], preferred_element_type=f32) + b_ctxb
        prod = proj_loc * ctx_out[:, 0:d]
        qkv = (qkv_loc + ctx_out[:, d:]
               + jnp.dot(prod.astype(bf16), w_prod_ref[...],
                         preferred_element_type=f32))                     # (rows, 3d)
        queries = qkv[:, 0:d]
        keys = (qkv[:, d:2 * d].reshape(tb, n_ent, d) * pk[:, None, :]).reshape(rows, d)
        vals = (qkv[:, 2 * d:].reshape(tb, n_ent, d) * pv[:, None, :]).reshape(rows, d)

        if flat_attn:
            edge = jnp.einsum('nd,md->nm', queries.astype(bf16), keys.astype(bf16),
                              preferred_element_type=f32) * inv_sqrt_d
            # Two-tier masking: within-example padding -> -1e30 (matches the
            # reference's uniform-over-N behaviour for fully padded rows),
            # cross-example -> -2e30 (never attended).
            edge = jnp.where(pad_mask, NEG_INF, edge)
            edge = jnp.where(cross_mask, 2.0 * NEG_INF, edge)
            prob = _softmax_last(edge)
            message = jnp.dot(prob.astype(bf16), vals.astype(bf16),
                              preferred_element_type=f32)                 # (rows, d)
        else:
            q3 = queries.reshape(tb, n_ent, d).astype(bf16)
            k3 = keys.reshape(tb, n_ent, d).astype(bf16)
            v3 = vals.reshape(tb, n_ent, d).astype(bf16)
            edge = jnp.einsum('bnd,bmd->bnm', q3, k3,
                              preferred_element_type=f32) * inv_sqrt_d
            edge = jnp.where(mask2d, NEG_INF, edge)                       # apply_mask2d
            prob = _softmax_last(edge)
            message = jnp.einsum('bnm,bmd->bnd', prob.astype(bf16), v3,
                                 preferred_element_type=f32).reshape(rows, d)

        # mem_update(cat([x_ctx, message], -1))
        x_ctx_new = (jnp.dot(x_ctx_bf, w_mem_ref[0:d, :], preferred_element_type=f32)
                     + jnp.dot(message.astype(bf16), w_mem_ref[d:, :],
                               preferred_element_type=f32)
                     + b_mem)
        return x_ctx_new

    x_ctx = jax.lax.fori_loop(0, num_steps, step, x_ctx0)

    # combine_kb(cat([x_loc, x_ctx], -1))
    out = (jnp.dot(x_loc_bf, w_cmb_ref[0:d, :], preferred_element_type=f32)
           + jnp.dot(x_ctx.astype(bf16), w_cmb_ref[d:, :], preferred_element_type=f32)
           + b_cmb)
    out_ref[...] = out.reshape(tb, n_ent, d).astype(out_ref.dtype)


# ----------------------------------------------------------------------------
# Parameters (deterministic, matching the PyTorch custom-Linear init scheme).
# ----------------------------------------------------------------------------
def make_params(key, d_feat, d_ctx, d_model, num_steps):
    def lin_w(k, fin, fout, shape=None):
        bound = float(np.sqrt(3.0 / ((fin + fout) / 2.0)))
        if shape is None:
            shape = (fin, fout)
        return jax.random.uniform(k, shape, jnp.float32, -bound, bound)

    ks = jax.random.split(key, 16)
    z = lambda *s: jnp.zeros(s, jnp.float32)
    p = {
        'w_kb': lin_w(ks[0], d_feat, d_ctx), 'b_kb': z(1, d_ctx),
        'init_mem': jax.random.normal(ks[1], (1, d_ctx), jnp.float32),
        'w_q1': lin_w(ks[2], d_model, d_model), 'b_q1': z(1, d_model),
        'w_q2': lin_w(ks[3], d_model, d_model, (num_steps, d_model, d_model)),
        'b_q2': z(num_steps, d_model),
        'w_lg': lin_w(ks[4], d_model, 1, (1, d_model)), 'b_lg': z(1, 1),
        'w_ploc': lin_w(ks[5], d_ctx, d_ctx), 'b_ploc': z(1, d_ctx),
        'w_pctx': lin_w(ks[6], d_ctx, d_ctx), 'b_pctx': z(1, d_ctx),
        'w_qry': lin_w(ks[7], 3 * d_ctx, d_ctx), 'b_qry': z(1, d_ctx),
        'w_key': lin_w(ks[8], 3 * d_ctx, d_ctx), 'b_key': z(1, d_ctx),
        'w_val': lin_w(ks[9], 3 * d_ctx, d_ctx), 'b_val': z(1, d_ctx),
        'w_pk': lin_w(ks[10], d_ctx, d_ctx), 'b_pk': z(1, d_ctx),
        'w_pv': lin_w(ks[11], d_ctx, d_ctx), 'b_pv': z(1, d_ctx),
        'w_mem': lin_w(ks[12], 2 * d_ctx, d_ctx), 'b_mem': z(1, d_ctx),
        'w_cmb': lin_w(ks[13], 2 * d_ctx, d_ctx), 'b_cmb': z(1, d_ctx),
    }
    return p


# ----------------------------------------------------------------------------
# Chip-generation gated tuning knobs.
# ----------------------------------------------------------------------------
def _tpu_config():
    cfg = dict(two_tc=True, vmem_limit=48 * 1024 * 1024, target_rows=256)  # safe default
    try:
        kind = jax.devices()[0].device_kind.lower()
    except Exception:
        return cfg
    if "v7" in kind:                                   # 2 TC/chip, 64 MiB VMEM
        cfg.update(two_tc=True, vmem_limit=48 * 1024 * 1024, target_rows=512)
    elif "v6" in kind:                                 # 1 TC/chip, 128 MiB VMEM
        cfg.update(two_tc=False, vmem_limit=96 * 1024 * 1024, target_rows=512)
    elif "v5p" in kind:                                # 2 TC/chip (megacore)
        cfg.update(two_tc=True, vmem_limit=96 * 1024 * 1024, target_rows=512)
    elif "v5" in kind:                                 # v5e / v5 lite: 1 TC/chip
        cfg.update(two_tc=False, vmem_limit=96 * 1024 * 1024, target_rows=256)
    elif "v4" in kind:                                 # 2 TC/chip (megacore)
        cfg.update(two_tc=True, vmem_limit=96 * 1024 * 1024, target_rows=256)
    return cfg


def _pick_block_b(batch, n_ent, target_rows, two_tc):
    """Examples per grid step: fill ~target_rows of the MXU M dim."""
    tb = max(1, min(batch, max(1, target_rows // max(n_ent, 1))))
    while batch % tb:
        tb -= 1
    if two_tc:
        # Keep >= 2 grid steps only on 2-TensorCore chips (megacore sharding).
        while tb > 1 and batch // tb < 2:
            tb -= 1
            while batch % tb:
                tb -= 1
    return tb


# ----------------------------------------------------------------------------
# Wrapper: grid over batch blocks, scalar-prefetch q_length / entity_num into SMEM.
# ----------------------------------------------------------------------------
def lcgn_forward(params, images, q_encoding, lstm_outputs, q_length, entity_num,
                 num_steps, d_ctx, block_b=None):
    B, N, d_feat = images.shape
    L = lstm_outputs.shape[1]
    d_model = q_encoding.shape[1]
    assert d_model == d_ctx, "LCGN requires d_model == d_ctx"
    cfg = _tpu_config()
    tb = (_pick_block_b(B, N, cfg['target_rows'], cfg['two_tc'])
          if block_b is None else block_b)
    assert B % tb == 0
    d = d_ctx
    bf16 = jnp.bfloat16

    # ---- host-side weight fusion (bf16) / bias packing (f32) ----
    w_qry, w_key, w_val = params['w_qry'], params['w_key'], params['w_val']
    w_loc_f = jnp.concatenate(
        [params['w_ploc'], w_qry[0:d], w_key[0:d], w_val[0:d]], axis=1).astype(bf16)
    w_ctx_f = jnp.concatenate(
        [params['w_pctx'], w_qry[d:2 * d], w_key[d:2 * d], w_val[d:2 * d]], axis=1).astype(bf16)
    w_prod_f = jnp.concatenate(
        [w_qry[2 * d:], w_key[2 * d:], w_val[2 * d:]], axis=1).astype(bf16)
    w_pkv = jnp.concatenate([params['w_pk'], params['w_pv']], axis=1).astype(bf16)

    zeros_d = jnp.zeros((1, d), jnp.float32)
    b_loc_f = jnp.concatenate([params['b_ploc'], zeros_d, zeros_d, zeros_d], axis=1)
    b_ctx_f = jnp.concatenate([params['b_pctx'], params['b_qry'],
                               params['b_key'], params['b_val']], axis=1)
    b_pkv_f = jnp.concatenate([params['b_pk'], params['b_pv'], zeros_d, zeros_d], axis=1)
    b_fused = jnp.concatenate([b_loc_f, b_ctx_f, b_pkv_f], axis=0)        # (3, 4d)

    b_lg_row = jnp.pad(params['b_lg'], ((0, 0), (0, d - 1)))
    vecs = jnp.concatenate([params['b_kb'], params['init_mem'], params['b_q1'],
                            params['b_mem'], params['b_cmb'], params['w_lg'],
                            b_lg_row], axis=0)                            # (7, d)
    b_q2 = params['b_q2'].reshape(num_steps, 1, d_model)

    weights = [params['w_kb'].astype(bf16), params['w_q1'].astype(bf16),
               params['w_q2'].astype(bf16),
               w_loc_f, w_ctx_f, w_prod_f, w_pkv,
               params['w_mem'].astype(bf16), params['w_cmb'].astype(bf16),
               b_q2, b_fused, vecs]

    q_enc3 = q_encoding.reshape(B, 1, d_model)
    out_spec = pl.BlockSpec((tb, N, d_ctx), lambda b, *_: (b, 0, 0))
    kernel = functools.partial(lcgn_kernel, num_steps, d_ctx)

    def make_in_specs(single_buffer):
        def rep_spec(arr):
            nd = arr.ndim
            if single_buffer:
                # Constant index_map -> single-buffer (halves resident weight VMEM).
                return pl.BlockSpec(arr.shape, lambda b, *_, nd=nd: (0,) * nd,
                                    pipeline_mode=pl.Buffered(1))
            return pl.BlockSpec(arr.shape, lambda b, *_, nd=nd: (0,) * nd)
        return [
            pl.BlockSpec((tb, N, d_feat), lambda b, *_: (b, 0, 0)),      # images
            pl.BlockSpec((tb, 1, d_model), lambda b, *_: (b, 0, 0)),     # q_encoding
            pl.BlockSpec((tb, L, d_model), lambda b, *_: (b, 0, 0)),     # lstm_outputs
        ] + [rep_spec(w) for w in weights]

    def run(single_buffer):
        return pl.pallas_call(
            kernel,
            out_shape=jax.ShapeDtypeStruct((B, N, d_ctx), jnp.float32),
            grid_spec=pltpu.PrefetchScalarGridSpec(
                num_scalar_prefetch=2,
                grid=(B // tb,),
                in_specs=make_in_specs(single_buffer),
                out_specs=out_spec,
            ),
            compiler_params=pltpu.CompilerParams(
                dimension_semantics=("parallel",),
                vmem_limit_bytes=cfg['vmem_limit'],
            ),
        )(q_length, entity_num, images, q_enc3, lstm_outputs, *weights)

    try:
        return run(single_buffer=True)
    except Exception:
        # pipeline_mode=pl.Buffered(1) unsupported on this JAX/libtpu -> default buffering.
        return run(single_buffer=False)


# ----------------------------------------------------------------------------
# Pure-JAX reference (mirrors the PyTorch forward, eval mode, f32).
# ----------------------------------------------------------------------------
def lcgn_reference(params, images, q_encoding, lstm_outputs, q_length, entity_num,
                   num_steps, d_ctx):
    B, N, _ = images.shape
    L = lstm_outputs.shape[1]
    norm = jnp.sqrt(jnp.sum(images * images, axis=-1, keepdims=True))
    images_n = images / jnp.maximum(norm, 1e-12)
    x_loc = images_n @ params['w_kb'] + params['b_kb'][0]
    x_ctx = jnp.broadcast_to(params['init_mem'][None, :, :], (B, N, d_ctx))
    q_first = jnp.where(q_encoding @ params['w_q1'] + params['b_q1'][0] > 0,
                        q_encoding @ params['w_q1'] + params['b_q1'][0],
                        jnp.exp(jnp.minimum(q_encoding @ params['w_q1'] + params['b_q1'][0],
                                            0.0)) - 1.0)
    lmask = jnp.arange(L)[None, :] >= q_length[:, None]
    emask = jnp.arange(N)[None, :] >= entity_num[:, None]
    mask2d = emask[:, None, :] | emask[:, :, None]
    for t in range(num_steps):
        q_cmd = q_first @ params['w_q2'][t] + params['b_q2'][t]
        raw = jnp.sum((q_cmd[:, None, :] * lstm_outputs) *
                      params['w_lg'][0][None, None, :], axis=-1) + params['b_lg'][0, 0]
        raw = jnp.where(lmask, NEG_INF, raw)
        att = jax.nn.softmax(raw, axis=-1)
        cmd = jnp.einsum('bl,bld->bd', att, lstm_outputs)
        proj_loc = x_loc @ params['w_ploc'] + params['b_ploc'][0]
        proj_ctx = x_ctx @ params['w_pctx'] + params['b_pctx'][0]
        x_joint = jnp.concatenate([x_loc, x_ctx, proj_loc * proj_ctx], axis=-1)
        queries = x_joint @ params['w_qry'] + params['b_qry'][0]
        keys = (x_joint @ params['w_key'] + params['b_key'][0]) * \
               (cmd @ params['w_pk'] + params['b_pk'][0])[:, None, :]
        vals = (x_joint @ params['w_val'] + params['b_val'][0]) * \
               (cmd @ params['w_pv'] + params['b_pv'][0])[:, None, :]
        edge = jnp.einsum('bnd,bmd->bnm', queries, keys) / np.sqrt(d_ctx)
        edge = jnp.where(mask2d, NEG_INF, edge)
        prob = jax.nn.softmax(edge, axis=-1)
        message = jnp.einsum('bnm,bmd->bnd', prob, vals)
        x_ctx = (jnp.concatenate([x_ctx, message], axis=-1) @ params['w_mem']
                 + params['b_mem'][0])
    return jnp.concatenate([x_loc, x_ctx], axis=-1) @ params['w_cmb'] + params['b_cmb'][0]


if __name__ == "__main__":
    B, N, L = 4, 16, 8
    d_feat, d_ctx, d_model = 64, 32, 32     # d_model == d_ctx (required by the module)
    num_steps = 3

    key = jax.random.PRNGKey(0)
    k_img, k_q, k_lstm, k_par = jax.random.split(key, 4)
    images = jax.random.normal(k_img, (B, N, d_feat), jnp.float32)
    q_encoding = jax.random.normal(k_q, (B, d_model), jnp.float32)
    lstm_outputs = jax.random.normal(k_lstm, (B, L, d_model), jnp.float32)
    q_length = jnp.array([5, 8, 3, 6], jnp.int32)        # valid question lengths (<= L)
    entity_num = jnp.array([11, 16, 7, 13], jnp.int32)   # valid entity counts (<= N)

    params = make_params(k_par, d_feat, d_ctx, d_model, num_steps)

    out = lcgn_forward(params, images, q_encoding, lstm_outputs, q_length,
                       entity_num, num_steps, d_ctx)
    out = jax.block_until_ready(out)

    ref = jax.block_until_ready(
        lcgn_reference(params, images, q_encoding, lstm_outputs, q_length,
                       entity_num, num_steps, d_ctx))

    assert out.shape == (B, N, d_ctx) and out.dtype == jnp.float32
    max_err = float(jnp.max(jnp.abs(out - ref)))
    rel_err = float(jnp.linalg.norm(out - ref) / jnp.maximum(jnp.linalg.norm(ref), 1e-12))
    # bf16 weights / activations at the dots (f32 accumulation) -> small, bounded drift.
    assert max_err < 2e-1, f"kernel/reference mismatch: max abs err = {max_err}"
    assert rel_err < 5e-2, f"kernel/reference mismatch: rel frob err = {rel_err}"
    print("KERNEL_OK")
</pallas_src>

<mosaic_0001>
module attributes {stable_mosaic.version = 11 : i64} {
  func.func @lcgn_kernel(%arg0: i32, %arg1: memref<4xi32, #tpu.memory_space<smem>>, %arg2: memref<4xi32, #tpu.memory_space<smem>>, %arg3: memref<2x16x64xf32, #tpu.memory_space<vmem>>, %arg4: memref<2x1x32xf32, #tpu.memory_space<vmem>>, %arg5: memref<2x8x32xf32, #tpu.memory_space<vmem>>, %arg6: memref<64x32xbf16, #tpu.memory_space<vmem>>, %arg7: memref<32x32xbf16, #tpu.memory_space<vmem>>, %arg8: memref<3x32x32xbf16, #tpu.memory_space<vmem>>, %arg9: memref<32x128xbf16, #tpu.memory_space<vmem>>, %arg10: memref<32x128xbf16, #tpu.memory_space<vmem>>, %arg11: memref<32x96xbf16, #tpu.memory_space<vmem>>, %arg12: memref<32x64xbf16, #tpu.memory_space<vmem>>, %arg13: memref<64x32xbf16, #tpu.memory_space<vmem>>, %arg14: memref<64x32xbf16, #tpu.memory_space<vmem>>, %arg15: memref<3x1x32xf32, #tpu.memory_space<vmem>>, %arg16: memref<3x128xf32, #tpu.memory_space<vmem>>, %arg17: memref<7x32xf32, #tpu.memory_space<vmem>>, %arg18: memref<2x16x32xf32, #tpu.memory_space<vmem>>) attributes {dimension_semantics = [#tpu.dimension_semantics<parallel>], iteration_bounds = array<i64: 2>, scalar_prefetch = 2 : i64, scratch_operands = 0 : i64, tpu.core_type = #tpu.core_type<tc>, window_params = [{transform_indices = @transform_0, window_bounds = array<i64: 2, 16, 64>}, {transform_indices = @transform_1, window_bounds = array<i64: 2, 1, 32>}, {transform_indices = @transform_2, window_bounds = array<i64: 2, 8, 32>}, {pipeline_mode = #tpu.pipeline_mode<synchronous>, transform_indices = @transform_3, window_bounds = array<i64: 64, 32>}, {pipeline_mode = #tpu.pipeline_mode<synchronous>, transform_indices = @transform_4, window_bounds = array<i64: 32, 32>}, {pipeline_mode = #tpu.pipeline_mode<synchronous>, transform_indices = @transform_5, window_bounds = array<i64: 3, 32, 32>}, {pipeline_mode = #tpu.pipeline_mode<synchronous>, transform_indices = @transform_6, window_bounds = array<i64: 32, 128>}, {pipeline_mode = #tpu.pipeline_mode<synchronous>, transform_indices = @transform_7, window_bounds = array<i64: 32, 128>}, {pipeline_mode = #tpu.pipeline_mode<synchronous>, transform_indices = @transform_8, window_bounds = array<i64: 32, 96>}, {pipeline_mode = #tpu.pipeline_mode<synchronous>, transform_indices = @transform_9, window_bounds = array<i64: 32, 64>}, {pipeline_mode = #tpu.pipeline_mode<synchronous>, transform_indices = @transform_10, window_bounds = array<i64: 64, 32>}, {pipeline_mode = #tpu.pipeline_mode<synchronous>, transform_indices = @transform_11, window_bounds = array<i64: 64, 32>}, {pipeline_mode = #tpu.pipeline_mode<synchronous>, transform_indices = @transform_12, window_bounds = array<i64: 3, 1, 32>}, {pipeline_mode = #tpu.pipeline_mode<synchronous>, transform_indices = @transform_13, window_bounds = array<i64: 3, 128>}, {pipeline_mode = #tpu.pipeline_mode<synchronous>, transform_indices = @transform_14, window_bounds = array<i64: 7, 32>}, {transform_indices = @transform_15, window_bounds = array<i64: 2, 16, 32>}]} {
    %c0 = arith.constant 0 : index
    %c0_0 = arith.constant 0 : index
    %0 = vector.load %arg17[%c0, %c0_0] : memref<7x32xf32, #tpu.memory_space<vmem>>, vector<1x32xf32>
    %c1 = arith.constant 1 : index
    %c0_1 = arith.constant 0 : index
    %1 = vector.load %arg17[%c1, %c0_1] : memref<7x32xf32, #tpu.memory_space<vmem>>, vector<1x32xf32>
    %c2 = arith.constant 2 : index
    %c0_2 = arith.constant 0 : index
    %2 = vector.load %arg17[%c2, %c0_2] : memref<7x32xf32, #tpu.memory_space<vmem>>, vector<1x32xf32>
    %c3 = arith.constant 3 : index
    %c0_3 = arith.constant 0 : index
    %3 = vector.load %arg17[%c3, %c0_3] : memref<7x32xf32, #tpu.memory_space<vmem>>, vector<1x32xf32>
    %c4 = arith.constant 4 : index
    %c0_4 = arith.constant 0 : index
    %4 = vector.load %arg17[%c4, %c0_4] : memref<7x32xf32, #tpu.memory_space<vmem>>, vector<1x32xf32>
    %c5 = arith.constant 5 : index
    %c0_5 = arith.constant 0 : index
    %5 = vector.load %arg17[%c5, %c0_5] : memref<7x32xf32, #tpu.memory_space<vmem>>, vector<1x32xf32>
    %c6 = arith.constant 6 : index
    %c0_6 = arith.constant 0 : index
    %6 = vector.load %arg17[%c6, %c0_6] : memref<7x32xf32, #tpu.memory_space<vmem>>, vector<1x1xf32>
    %c0_7 = arith.constant 0 : index
    %c0_8 = arith.constant 0 : index
    %7 = vector.load %arg16[%c0_7, %c0_8] : memref<3x128xf32, #tpu.memory_space<vmem>>, vector<1x128xf32>
    %c1_9 = arith.constant 1 : index
    %c0_10 = arith.constant 0 : index
    %8 = vector.load %arg16[%c1_9, %c0_10] : memref<3x128xf32, #tpu.memory_space<vmem>>, vector<1x128xf32>
    %c2_11 = arith.constant 2 : index
    %c0_12 = arith.constant 0 : index
    %9 = vector.load %arg16[%c2_11, %c0_12] : memref<3x128xf32, #tpu.memory_space<vmem>>, vector<1x64xf32>
    %c0_13 = arith.constant 0 : index
    %c0_14 = arith.constant 0 : index
    %c0_15 = arith.constant 0 : index
    %10 = vector.load %arg3[%c0_13, %c0_14, %c0_15] : memref<2x16x64xf32, #tpu.memory_space<vmem>>, vector<2x16x64xf32>
    %11 = vector.shape_cast %10 : vector<2x16x64xf32> to vector<32x64xf32>
    %c0_16 = arith.constant 0 : index
    %c0_17 = arith.constant 0 : index
    %c0_18 = arith.constant 0 : index
    %12 = vector.load %arg5[%c0_16, %c0_17, %c0_18] : memref<2x8x32xf32, #tpu.memory_space<vmem>>, vector<2x8x32xf32>
    %c0_19 = arith.constant 0 : index
    %c0_20 = arith.constant 0 : index
    %c0_21 = arith.constant 0 : index
    %13 = vector.load %arg4[%c0_19, %c0_20, %c0_21] : memref<2x1x32xf32, #tpu.memory_space<vmem>>, vector<2x1x32xf32>
    %14 = vector.shape_cast %13 : vector<2x1x32xf32> to vector<2x32xf32>
    %15 = arith.mulf %11, %11 : vector<32x64xf32>
    %cst = arith.constant dense<0.000000e+00> : vector<32xf32>
    %16 = vector.multi_reduction <add>, %15, %cst [1] : vector<32x64xf32> to vector<32xf32>
    %17 = vector.shape_cast %16 : vector<32xf32> to vector<32x1xf32>
    %cst_22 = arith.constant 1.000000e-24 : f32
    %18 = vector.broadcast %cst_22 : f32 to vector<32x1xf32>
    %19 = arith.maximumf %17, %18 : vector<32x1xf32>
    %20 = math.rsqrt %19 : vector<32x1xf32>
    %21 = vector.broadcast %20 : vector<32x1xf32> to vector<32x64xf32>
    %22 = arith.mulf %11, %21 : vector<32x64xf32>
    %23 = arith.truncf %22 : vector<32x64xf32> to vector<32x64xbf16>
    %c0_23 = arith.constant 0 : index
    %c0_24 = arith.constant 0 : index
    %24 = vector.load %arg6[%c0_23, %c0_24] : memref<64x32xbf16, #tpu.memory_space<vmem>>, vector<64x32xbf16>
    %cst_25 = arith.constant dense<0.000000e+00> : vector<32x32xf32>
    %25 = tpu.matmul %23, %24, %cst_25 {dimension_numbers = #tpu.dot_dimension_numbers<[1], [0], [0], [1], [0, 0, 1, 1], [], []>} : vector<32x64xbf16>, vector<64x32xbf16>, vector<32x32xf32> -> vector<32x32xf32>
    %26 = vector.broadcast %0 : vector<1x32xf32> to vector<32x32xf32>
    %27 = arith.addf %25, %26 : vector<32x32xf32>
    %28 = arith.truncf %27 : vector<32x32xf32> to vector<32x32xbf16>
    %29 = vector.shape_cast %1 : vector<1x32xf32> to vector<1x32xf32>
    %30 = vector.broadcast %29 : vector<1x32xf32> to vector<32x32xf32>
    %c0_26 = arith.constant 0 : index
    %c0_27 = arith.constant 0 : index
    %31 = vector.load %arg9[%c0_26, %c0_27] : memref<32x128xbf16, #tpu.memory_space<vmem>>, vector<32x128xbf16>
    %cst_28 = arith.constant dense<0.000000e+00> : vector<32x128xf32>
    %32 = tpu.matmul %28, %31, %cst_28 {dimension_numbers = #tpu.dot_dimension_numbers<[1], [0], [0], [1], [0, 0, 1, 1], [], []>} : vector<32x32xbf16>, vector<32x128xbf16>, vector<32x128xf32> -> vector<32x128xf32>
    %33 = vector.broadcast %7 : vector<1x128xf32> to vector<32x128xf32>
    %34 = arith.addf %32, %33 : vector<32x128xf32>
    %35 = vector.extract_strided_slice %34 {offsets = [0, 0], sizes = [32, 32], strides = [1, 1]} : vector<32x128xf32> to vector<32x32xf32>
    %36 = vector.extract_strided_slice %34 {offsets = [0, 32], sizes = [32, 96], strides = [1, 1]} : vector<32x128xf32> to vector<32x96xf32>
    %c2_i32 = arith.constant 2 : i32
    %37 = arith.muli %arg0, %c2_i32 : i32
    %c0_i32 = arith.constant 0 : i32
    %38 = arith.addi %37, %c0_i32 : i32
    %39 = arith.index_cast %38 : i32 to index
    %40 = memref.load %arg2[%39] : memref<4xi32, #tpu.memory_space<smem>>
    %c2_i32_29 = arith.constant 2 : i32
    %41 = arith.muli %arg0, %c2_i32_29 : i32
    %c1_i32 = arith.constant 1 : i32
    %42 = arith.addi %41, %c1_i32 : i32
    %43 = arith.index_cast %42 : i32 to index
    %44 = memref.load %arg2[%43] : memref<4xi32, #tpu.memory_space<smem>>
    %c2_i32_30 = arith.constant 2 : i32
    %45 = arith.muli %arg0, %c2_i32_30 : i32
    %c0_i32_31 = arith.constant 0 : i32
    %46 = arith.addi %45, %c0_i32_31 : i32
    %47 = arith.index_cast %46 : i32 to index
    %48 = memref.load %arg1[%47] : memref<4xi32, #tpu.memory_space<smem>>
    %c2_i32_32 = arith.constant 2 : i32
    %49 = arith.muli %arg0, %c2_i32_32 : i32
    %c1_i32_33 = arith.constant 1 : i32
    %50 = arith.addi %49, %c1_i32_33 : i32
    %51 = arith.index_cast %50 : i32 to index
    %52 = memref.load %arg1[%51] : memref<4xi32, #tpu.memory_space<smem>>
    %53 = vector.broadcast %48 : i32 to vector<1x1xi32>
    %54 = vector.broadcast %52 : i32 to vector<1x1xi32>
    %55 = tpu.concatenate %53, %54 in 0 : vector<1x1xi32>, vector<1x1xi32> -> vector<2x1xi32>
    %56 = tpu.iota {dimensions = array<i32: 1>} : vector<2x8xi32>
    %57 = vector.broadcast %55 : vector<2x1xi32> to vector<2x8xi32>
    %58 = arith.cmpi sge, %56, %57 : vector<2x8xi32>
    %59 = vector.broadcast %40 : i32 to vector<1x16xi32>
    %60 = vector.broadcast %44 : i32 to vector<1x16xi32>
    %61 = tpu.concatenate %59, %60 in 1 : vector<1x16xi32>, vector<1x16xi32> -> vector<1x32xi32>
    %62 = vector.broadcast %40 : i32 to vector<16x1xi32>
    %63 = vector.broadcast %44 : i32 to vector<16x1xi32>
    %64 = tpu.concatenate %62, %63 in 0 : vector<16x1xi32>, vector<16x1xi32> -> vector<32x1xi32>
    %c0_i32_34 = arith.constant 0 : i32
    %65 = vector.broadcast %c0_i32_34 : i32 to vector<1x16xi32>
    %c1_i32_35 = arith.constant 1 : i32
    %66 = vector.broadcast %c1_i32_35 : i32 to vector<1x16xi32>
    %67 = tpu.concatenate %65, %66 in 1 : vector<1x16xi32>, vector<1x16xi32> -> vector<1x32xi32>
    %c0_i32_36 = arith.constant 0 : i32
    %68 = vector.broadcast %c0_i32_36 : i32 to vector<16x1xi32>
    %c1_i32_37 = arith.constant 1 : i32
    %69 = vector.broadcast %c1_i32_37 : i32 to vector<16x1xi32>
    %70 = tpu.concatenate %68, %69 in 0 : vector<16x1xi32>, vector<16x1xi32> -> vector<32x1xi32>
    %71 = tpu.iota {dimensions = array<i32: 1>} : vector<1x32xi32>
    %c16_i32 = arith.constant 16 : i32
    %72 = vector.broadcast %c16_i32 : i32 to vector<1x32xi32>
    %73 = arith.muli %72, %67 : vector<1x32xi32>
    %74 = arith.subi %71, %73 : vector<1x32xi32>
    %75 = tpu.iota {dimensions = array<i32: 0>} : vector<32x1xi32>
    %c16_i32_38 = arith.constant 16 : i32
    %76 = vector.broadcast %c16_i32_38 : i32 to vector<32x1xi32>
    %77 = arith.muli %76, %70 : vector<32x1xi32>
    %78 = arith.subi %75, %77 : vector<32x1xi32>
    %79 = arith.cmpi sge, %78, %64 : vector<32x1xi32>
    %80 = arith.cmpi sge, %74, %61 : vector<1x32xi32>
    %81 = vector.broadcast %79 : vector<32x1xi1> to vector<32x32xi1>
    %82 = vector.broadcast %80 : vector<1x32xi1> to vector<32x32xi1>
    %83 = arith.ori %81, %82 : vector<32x32xi1>
    %84 = vector.broadcast %70 : vector<32x1xi32> to vector<32x32xi32>
    %85 = vector.broadcast %67 : vector<1x32xi32> to vector<32x32xi32>
    %86 = arith.cmpi ne, %84, %85 : vector<32x32xi32>
    %87 = arith.truncf %14 : vector<2x32xf32> to vector<2x32xbf16>
    %c0_39 = arith.constant 0 : index
    %c0_40 = arith.constant 0 : index
    %88 = vector.load %arg7[%c0_39, %c0_40] : memref<32x32xbf16, #tpu.memory_space<vmem>>, vector<32x32xbf16>
    %cst_41 = arith.constant dense<0.000000e+00> : vector<2x32xf32>
    %89 = tpu.matmul %87, %88, %cst_41 {dimension_numbers = #tpu.dot_dimension_numbers<[1], [0], [0], [1], [0, 0, 1, 1], [], []>} : vector<2x32xbf16>, vector<32x32xbf16>, vector<2x32xf32> -> vector<2x32xf32>
    %90 = vector.broadcast %2 : vector<1x32xf32> to vector<2x32xf32>
    %91 = arith.addf %89, %90 : vector<2x32xf32>
    %cst_42 = arith.constant 0.000000e+00 : f32
    %92 = vector.broadcast %cst_42 : f32 to vector<2x32xf32>
    %93 = arith.cmpf ogt, %91, %92 : vector<2x32xf32>
    %cst_43 = arith.constant 0.000000e+00 : f32
    %94 = vector.broadcast %cst_43 : f32 to vector<2x32xf32>
    %95 = arith.minimumf %91, %94 : vector<2x32xf32>
    %96 = math.exp %95 : vector<2x32xf32>
    %cst_44 = arith.constant 1.000000e+00 : f32
    %97 = vector.broadcast %cst_44 : f32 to vector<2x32xf32>
    %98 = arith.subf %96, %97 : vector<2x32xf32>
    %99 = arith.select %93, %91, %98 : vector<2x32xi1>, vector<2x32xf32>
    %100 = arith.truncf %99 : vector<2x32xf32> to vector<2x32xbf16>
    %c0_i32_45 = arith.constant 0 : i32
    %c3_i32 = arith.constant 3 : i32
    %101 = arith.addi %c0_i32_45, %c3_i32 : i32
    %c1_i32_46 = arith.constant 1 : i32
    %102 = scf.for %arg19 = %c0_i32_45 to %101 step %c1_i32_46 iter_args(%arg20 = %30) -> (vector<32x32xf32>)  : i32 {
      %113 = arith.index_cast %arg19 : i32 to index
      %c0_56 = arith.constant 0 : index
      %c0_57 = arith.constant 0 : index
      %114 = vector.load %arg8[%113, %c0_56, %c0_57] : memref<3x32x32xbf16, #tpu.memory_space<vmem>>, vector<1x32x32xbf16>
      %115 = vector.shape_cast %114 : vector<1x32x32xbf16> to vector<32x32xbf16>
      %116 = arith.index_cast %arg19 : i32 to index
      %c0_58 = arith.constant 0 : index
      %c0_59 = arith.constant 0 : index
      %117 = vector.load %arg15[%116, %c0_58, %c0_59] : memref<3x1x32xf32, #tpu.memory_space<vmem>>, vector<1x1x32xf32>
      %118 = vector.shape_cast %117 : vector<1x1x32xf32> to vector<1x32xf32>
      %cst_60 = arith.constant dense<0.000000e+00> : vector<2x32xf32>
      %119 = tpu.matmul %100, %115, %cst_60 {dimension_numbers = #tpu.dot_dimension_numbers<[1], [0], [0], [1], [0, 0, 1, 1], [], []>} : vector<2x32xbf16>, vector<32x32xbf16>, vector<2x32xf32> -> vector<2x32xf32>
      %120 = vector.broadcast %118 : vector<1x32xf32> to vector<2x32xf32>
      %121 = arith.addf %119, %120 : vector<2x32xf32>
      %122 = vector.broadcast %5 : vector<1x32xf32> to vector<2x32xf32>
      %123 = arith.mulf %121, %122 : vector<2x32xf32>
      %124 = vector.shape_cast %123 : vector<2x32xf32> to vector<2x1x32xf32>
      %125 = vector.broadcast %124 : vector<2x1x32xf32> to vector<2x8x32xf32>
      %126 = arith.mulf %125, %12 : vector<2x8x32xf32>
      %cst_61 = arith.constant dense<0.000000e+00> : vector<2x8xf32>
      %127 = vector.multi_reduction <add>, %126, %cst_61 [2] : vector<2x8x32xf32> to vector<2x8xf32>
      %128 = vector.broadcast %6 : vector<1x1xf32> to vector<2x8xf32>
      %129 = arith.addf %127, %128 : vector<2x8xf32>
      %cst_62 = arith.constant -1.000000e+30 : f32
      %130 = vector.broadcast %cst_62 : f32 to vector<2x8xf32>
      %131 = arith.select %58, %130, %129 : vector<2x8xi1>, vector<2x8xf32>
      %cst_63 = arith.constant dense<0xFF800000> : vector<2xf32>
      %132 = vector.multi_reduction <maximumf>, %131, %cst_63 [1] : vector<2x8xf32> to vector<2xf32>
      %133 = vector.shape_cast %132 : vector<2xf32> to vector<2x1xf32>
      %134 = vector.broadcast %133 : vector<2x1xf32> to vector<2x8xf32>
      %135 = arith.subf %131, %134 : vector<2x8xf32>
      %136 = math.exp %135 : vector<2x8xf32>
      %cst_64 = arith.constant dense<0.000000e+00> : vector<2xf32>
      %137 = vector.multi_reduction <add>, %136, %cst_64 [1] : vector<2x8xf32> to vector<2xf32>
      %138 = vector.shape_cast %137 : vector<2xf32> to vector<2x1xf32>
      %139 = tpu.reciprocal %138 {approx = true} : vector<2x1xf32> -> vector<2x1xf32>
      %140 = vector.broadcast %139 : vector<2x1xf32> to vector<2x8xf32>
      %141 = arith.mulf %136, %140 : vector<2x8xf32>
      %142 = vector.shape_cast %141 : vector<2x8xf32> to vector<2x8x1xf32>
      %143 = vector.broadcast %142 : vector<2x8x1xf32> to vector<2x8x32xf32>
      %144 = arith.mulf %143, %12 : vector<2x8x32xf32>
      %cst_65 = arith.constant dense<0.000000e+00> : vector<2x32xf32>
      %145 = vector.multi_reduction <add>, %144, %cst_65 [1] : vector<2x8x32xf32> to vector<2x32xf32>
      %146 = arith.truncf %145 : vector<2x32xf32> to vector<2x32xbf16>
      %c0_66 = arith.constant 0 : index
      %c0_67 = arith.constant 0 : index
      %147 = vector.load %arg12[%c0_66, %c0_67] : memref<32x64xbf16, #tpu.memory_space<vmem>>, vector<32x64xbf16>
      %cst_68 = arith.constant dense<0.000000e+00> : vector<2x64xf32>
      %148 = tpu.matmul %146, %147, %cst_68 {dimension_numbers = #tpu.dot_dimension_numbers<[1], [0], [0], [1], [0, 0, 1, 1], [], []>} : vector<2x32xbf16>, vector<32x64xbf16>, vector<2x64xf32> -> vector<2x64xf32>
      %149 = vector.broadcast %9 : vector<1x64xf32> to vector<2x64xf32>
      %150 = arith.addf %148, %149 : vector<2x64xf32>
      %151 = vector.extract_strided_slice %150 {offsets = [0, 0], sizes = [2, 32], strides = [1, 1]} : vector<2x64xf32> to vector<2x32xf32>
      %152 = vector.extract_strided_slice %150 {offsets = [0, 32], sizes = [2, 32], strides = [1, 1]} : vector<2x64xf32> to vector<2x32xf32>
      %153 = arith.truncf %arg20 : vector<32x32xf32> to vector<32x32xbf16>
      %c0_69 = arith.constant 0 : index
      %c0_70 = arith.constant 0 : index
      %154 = vector.load %arg10[%c0_69, %c0_70] : memref<32x128xbf16, #tpu.memory_space<vmem>>, vector<32x128xbf16>
      %cst_71 = arith.constant dense<0.000000e+00> : vector<32x128xf32>
      %155 = tpu.matmul %153, %154, %cst_71 {dimension_numbers = #tpu.dot_dimension_numbers<[1], [0], [0], [1], [0, 0, 1, 1], [], []>} : vector<32x32xbf16>, vector<32x128xbf16>, vector<32x128xf32> -> vector<32x128xf32>
      %156 = vector.broadcast %8 : vector<1x128xf32> to vector<32x128xf32>
      %157 = arith.addf %155, %156 : vector<32x128xf32>
      %158 = vector.extract_strided_slice %157 {offsets = [0, 0], sizes = [32, 32], strides = [1, 1]} : vector<32x128xf32> to vector<32x32xf32>
      %159 = arith.mulf %35, %158 : vector<32x32xf32>
      %160 = vector.extract_strided_slice %157 {offsets = [0, 32], sizes = [32, 96], strides = [1, 1]} : vector<32x128xf32> to vector<32x96xf32>
      %161 = arith.addf %36, %160 : vector<32x96xf32>
      %162 = arith.truncf %159 : vector<32x32xf32> to vector<32x32xbf16>
      %c0_72 = arith.constant 0 : index
      %c0_73 = arith.constant 0 : index
      %163 = vector.load %arg11[%c0_72, %c0_73] : memref<32x96xbf16, #tpu.memory_space<vmem>>, vector<32x96xbf16>
      %cst_74 = arith.constant dense<0.000000e+00> : vector<32x96xf32>
      %164 = tpu.matmul %162, %163, %cst_74 {dimension_numbers = #tpu.dot_dimension_numbers<[1], [0], [0], [1], [0, 0, 1, 1], [], []>} : vector<32x32xbf16>, vector<32x96xbf16>, vector<32x96xf32> -> vector<32x96xf32>
      %165 = arith.addf %161, %164 : vector<32x96xf32>
      %166 = vector.extract_strided_slice %165 {offsets = [0, 0], sizes = [32, 32], strides = [1, 1]} : vector<32x96xf32> to vector<32x32xf32>
      %167 = vector.extract_strided_slice %165 {offsets = [0, 32], sizes = [32, 32], strides = [1, 1]} : vector<32x96xf32> to vector<32x32xf32>
      %168 = vector.shape_cast %167 : vector<32x32xf32> to vector<2x16x32xf32>
      %169 = vector.shape_cast %151 : vector<2x32xf32> to vector<2x1x32xf32>
      %170 = vector.broadcast %169 : vector<2x1x32xf32> to vector<2x16x32xf32>
      %171 = arith.mulf %168, %170 : vector<2x16x32xf32>
      %172 = vector.shape_cast %171 : vector<2x16x32xf32> to vector<32x32xf32>
      %173 = vector.extract_strided_slice %165 {offsets = [0, 64], sizes = [32, 32], strides = [1, 1]} : vector<32x96xf32> to vector<32x32xf32>
      %174 = vector.shape_cast %173 : vector<32x32xf32> to vector<2x16x32xf32>
      %175 = vector.shape_cast %152 : vector<2x32xf32> to vector<2x1x32xf32>
      %176 = vector.broadcast %175 : vector<2x1x32xf32> to vector<2x16x32xf32>
      %177 = arith.mulf %174, %176 : vector<2x16x32xf32>
      %178 = vector.shape_cast %177 : vector<2x16x32xf32> to vector<32x32xf32>
      %179 = arith.truncf %166 : vector<32x32xf32> to vector<32x32xbf16>
      %180 = arith.truncf %172 : vector<32x32xf32> to vector<32x32xbf16>
      "tpu.trace_start"() <{level = 10 : i32, message = "nd,md->nm"}> : () -> ()
      %cst_75 = arith.constant dense<0.000000e+00> : vector<32x32xf32>
      %181 = tpu.matmul %179, %180, %cst_75 {dimension_numbers = #tpu.dot_dimension_numbers<[1], [1], [0], [0], [0, 0, 1, 0], [], []>} : vector<32x32xbf16>, vector<32x32xbf16>, vector<32x32xf32> -> vector<32x32xf32>
      "tpu.trace_stop"() : () -> ()
      %cst_76 = arith.constant 0.176776692 : f32
      %182 = vector.broadcast %cst_76 : f32 to vector<32x32xf32>
      %183 = arith.mulf %181, %182 : vector<32x32xf32>
      %cst_77 = arith.constant -1.000000e+30 : f32
      %184 = vector.broadcast %cst_77 : f32 to vector<32x32xf32>
      %185 = arith.select %83, %184, %183 : vector<32x32xi1>, vector<32x32xf32>
      %cst_78 = arith.constant -2.000000e+30 : f32
      %186 = vector.broadcast %cst_78 : f32 to vector<32x32xf32>
      %187 = arith.select %86, %186, %185 : vector<32x32xi1>, vector<32x32xf32>
      %cst_79 = arith.constant dense<0xFF800000> : vector<32xf32>
      %188 = vector.multi_reduction <maximumf>, %187, %cst_79 [1] : vector<32x32xf32> to vector<32xf32>
      %189 = vector.shape_cast %188 : vector<32xf32> to vector<32x1xf32>
      %190 = vector.broadcast %189 : vector<32x1xf32> to vector<32x32xf32>
      %191 = arith.subf %187, %190 : vector<32x32xf32>
      %192 = math.exp %191 : vector<32x32xf32>
      %cst_80 = arith.constant dense<0.000000e+00> : vector<32xf32>
      %193 = vector.multi_reduction <add>, %192, %cst_80 [1] : vector<32x32xf32> to vector<32xf32>
      %194 = vector.shape_cast %193 : vector<32xf32> to vector<32x1xf32>
      %195 = tpu.reciprocal %194 {approx = true} : vector<32x1xf32> -> vector<32x1xf32>
      %196 = vector.broadcast %195 : vector<32x1xf32> to vector<32x32xf32>
      %197 = arith.mulf %192, %196 : vector<32x32xf32>
      %198 = arith.truncf %197 : vector<32x32xf32> to vector<32x32xbf16>
      %199 = arith.truncf %178 : vector<32x32xf32> to vector<32x32xbf16>
      %cst_81 = arith.constant dense<0.000000e+00> : vector<32x32xf32>
      %200 = tpu.matmul %198, %199, %cst_81 {dimension_numbers = #tpu.dot_dimension_numbers<[1], [0], [0], [1], [0, 0, 1, 1], [], []>} : vector<32x32xbf16>, vector<32x32xbf16>, vector<32x32xf32> -> vector<32x32xf32>
      %c0_82 = arith.constant 0 : index
      %c0_83 = arith.constant 0 : index
      %201 = vector.load %arg13[%c0_82, %c0_83] : memref<64x32xbf16, #tpu.memory_space<vmem>>, vector<32x32xbf16>
      %cst_84 = arith.constant dense<0.000000e+00> : vector<32x32xf32>
      %202 = tpu.matmul %153, %201, %cst_84 {dimension_numbers = #tpu.dot_dimension_numbers<[1], [0], [0], [1], [0, 0, 1, 1], [], []>} : vector<32x32xbf16>, vector<32x32xbf16>, vector<32x32xf32> -> vector<32x32xf32>
      %203 = arith.truncf %200 : vector<32x32xf32> to vector<32x32xbf16>
      %c32_85 = arith.constant 32 : index
      %c0_86 = arith.constant 0 : index
      %204 = vector.load %arg13[%c32_85, %c0_86] : memref<64x32xbf16, #tpu.memory_space<vmem>>, vector<32x32xbf16>
      %cst_87 = arith.constant dense<0.000000e+00> : vector<32x32xf32>
      %205 = tpu.matmul %203, %204, %cst_87 {dimension_numbers = #tpu.dot_dimension_numbers<[1], [0], [0], [1], [0, 0, 1, 1], [], []>} : vector<32x32xbf16>, vector<32x32xbf16>, vector<32x32xf32> -> vector<32x32xf32>
      %206 = arith.addf %202, %205 : vector<32x32xf32>
      %207 = vector.broadcast %3 : vector<1x32xf32> to vector<32x32xf32>
      %208 = arith.addf %206, %207 : vector<32x32xf32>
      scf.yield %208 : vector<32x32xf32>
    }
    %c3_i32_47 = arith.constant 3 : i32
    %c0_48 = arith.constant 0 : index
    %c0_49 = arith.constant 0 : index
    %103 = vector.load %arg14[%c0_48, %c0_49] : memref<64x32xbf16, #tpu.memory_space<vmem>>, vector<32x32xbf16>
    %cst_50 = arith.constant dense<0.000000e+00> : vector<32x32xf32>
    %104 = tpu.matmul %28, %103, %cst_50 {dimension_numbers = #tpu.dot_dimension_numbers<[1], [0], [0], [1], [0, 0, 1, 1], [], []>} : vector<32x32xbf16>, vector<32x32xbf16>, vector<32x32xf32> -> vector<32x32xf32>
    %105 = arith.truncf %102 : vector<32x32xf32> to vector<32x32xbf16>
    %c32 = arith.constant 32 : index
    %c0_51 = arith.constant 0 : index
    %106 = vector.load %arg14[%c32, %c0_51] : memref<64x32xbf16, #tpu.memory_space<vmem>>, vector<32x32xbf16>
    %cst_52 = arith.constant dense<0.000000e+00> : vector<32x32xf32>
    %107 = tpu.matmul %105, %106, %cst_52 {dimension_numbers = #tpu.dot_dimension_numbers<[1], [0], [0], [1], [0, 0, 1, 1], [], []>} : vector<32x32xbf16>, vector<32x32xbf16>, vector<32x32xf32> -> vector<32x32xf32>
    %108 = arith.addf %104, %107 : vector<32x32xf32>
    %109 = vector.broadcast %4 : vector<1x32xf32> to vector<32x32xf32>
    %110 = arith.addf %108, %109 : vector<32x32xf32>
    %111 = vector.shape_cast %110 : vector<32x32xf32> to vector<2x16x32xf32>
    %c0_53 = arith.constant 0 : index
    %c0_54 = arith.constant 0 : index
    %c0_55 = arith.constant 0 : index
    %112 = vector.load %arg18[%c0_53, %c0_54, %c0_55] : memref<2x16x32xf32, #tpu.memory_space<vmem>>, vector<2x16x32xf32>
    tpu.vector_store %arg18[%c0_53, %c0_54, %c0_55], %111 {strides = array<i32>} : memref<2x16x32xf32, #tpu.memory_space<vmem>>, vector<2x16x32xf32>,
    return
  }
  func.func @transform_0(%arg0: i32, %arg1: memref<4xi32, #tpu.memory_space<smem>>, %arg2: memref<4xi32, #tpu.memory_space<smem>>) -> (i32, i32, i32) {
    %c0_i32 = arith.constant 0 : i32
    %c0_i32_0 = arith.constant 0 : i32
    %c0_i32_1 = arith.constant 0 : i32
    return %arg0, %c0_i32, %c0_i32_0 : i32, i32, i32
  }
  func.func @transform_1(%arg0: i32, %arg1: memref<4xi32, #tpu.memory_space<smem>>, %arg2: memref<4xi32, #tpu.memory_space<smem>>) -> (i32, i32, i32) {
    %c0_i32 = arith.constant 0 : i32
    %c0_i32_0 = arith.constant 0 : i32
    %c0_i32_1 = arith.constant 0 : i32
    return %arg0, %c0_i32, %c0_i32_0 : i32, i32, i32
  }
  func.func @transform_2(%arg0: i32, %arg1: memref<4xi32, #tpu.memory_space<smem>>, %arg2: memref<4xi32, #tpu.memory_space<smem>>) -> (i32, i32, i32) {
    %c0_i32 = arith.constant 0 : i32
    %c0_i32_0 = arith.constant 0 : i32
    %c0_i32_1 = arith.constant 0 : i32
    return %arg0, %c0_i32, %c0_i32_0 : i32, i32, i32
  }
  func.func @transform_3(%arg0: i32, %arg1: memref<4xi32, #tpu.memory_space<smem>>, %arg2: memref<4xi32, #tpu.memory_space<smem>>) -> (i32, i32) {
    %c0_i32 = arith.constant 0 : i32
    %c0_i32_0 = arith.constant 0 : i32
    %c0_i32_1 = arith.constant 0 : i32
    return %c0_i32, %c0_i32_0 : i32, i32
  }
  func.func @transform_4(%arg0: i32, %arg1: memref<4xi32, #tpu.memory_space<smem>>, %arg2: memref<4xi32, #tpu.memory_space<smem>>) -> (i32, i32) {
    %c0_i32 = arith.constant 0 : i32
    %c0_i32_0 = arith.constant 0 : i32
    %c0_i32_1 = arith.constant 0 : i32
    return %c0_i32, %c0_i32_0 : i32, i32
  }
  func.func @transform_5(%arg0: i32, %arg1: memref<4xi32, #tpu.memory_space<smem>>, %arg2: memref<4xi32, #tpu.memory_space<smem>>) -> (i32, i32, i32) {
    %c0_i32 = arith.constant 0 : i32
    %c0_i32_0 = arith.constant 0 : i32
    %c0_i32_1 = arith.constant 0 : i32
    %c0_i32_2 = arith.constant 0 : i32
    return %c0_i32, %c0_i32_0, %c0_i32_1 : i32, i32, i32
  }
  func.func @transform_6(%arg0: i32, %arg1: memref<4xi32, #tpu.memory_space<smem>>, %arg2: memref<4xi32, #tpu.memory_space<smem>>) -> (i32, i32) {
    %c0_i32 = arith.constant 0 : i32
    %c0_i32_0 = arith.constant 0 : i32
    %c0_i32_1 = arith.constant 0 : i32
    return %c0_i32, %c0_i32_0 : i32, i32
  }
  func.func @transform_7(%arg0: i32, %arg1: memref<4xi32, #tpu.memory_space<smem>>, %arg2: memref<4xi32, #tpu.memory_space<smem>>) -> (i32, i32) {
    %c0_i32 = arith.constant 0 : i32
    %c0_i32_0 = arith.constant 0 : i32
    %c0_i32_1 = arith.constant 0 : i32
    return %c0_i32, %c0_i32_0 : i32, i32
  }
  func.func @transform_8(%arg0: i32, %arg1: memref<4xi32, #tpu.memory_space<smem>>, %arg2: memref<4xi32, #tpu.memory_space<smem>>) -> (i32, i32) {
    %c0_i32 = arith.constant 0 : i32
    %c0_i32_0 = arith.constant 0 : i32
    %c0_i32_1 = arith.constant 0 : i32
    return %c0_i32, %c0_i32_0 : i32, i32
  }
  func.func @transform_9(%arg0: i32, %arg1: memref<4xi32, #tpu.memory_space<smem>>, %arg2: memref<4xi32, #tpu.memory_space<smem>>) -> (i32, i32) {
    %c0_i32 = arith.constant 0 : i32
    %c0_i32_0 = arith.constant 0 : i32
    %c0_i32_1 = arith.constant 0 : i32
    return %c0_i32, %c0_i32_0 : i32, i32
  }
  func.func @transform_10(%arg0: i32, %arg1: memref<4xi32, #tpu.memory_space<smem>>, %arg2: memref<4xi32, #tpu.memory_space<smem>>) -> (i32, i32) {
    %c0_i32 = arith.constant 0 : i32
    %c0_i32_0 = arith.constant 0 : i32
    %c0_i32_1 = arith.constant 0 : i32
    return %c0_i32, %c0_i32_0 : i32, i32
  }
  func.func @transform_11(%arg0: i32, %arg1: memref<4xi32, #tpu.memory_space<smem>>, %arg2: memref<4xi32, #tpu.memory_space<smem>>) -> (i32, i32) {
    %c0_i32 = arith.constant 0 : i32
    %c0_i32_0 = arith.constant 0 : i32
    %c0_i32_1 = arith.constant 0 : i32
    return %c0_i32, %c0_i32_0 : i32, i32
  }
  func.func @transform_12(%arg0: i32, %arg1: memref<4xi32, #tpu.memory_space<smem>>, %arg2: memref<4xi32, #tpu.memory_space<smem>>) -> (i32, i32, i32) {
    %c0_i32 = arith.constant 0 : i32
    %c0_i32_0 = arith.constant 0 : i32
    %c0_i32_1 = arith.constant 0 : i32
    %c0_i32_2 = arith.constant 0 : i32
    return %c0_i32, %c0_i32_0, %c0_i32_1 : i32, i32, i32
  }
  func.func @transform_13(%arg0: i32, %arg1: memref<4xi32, #tpu.memory_space<smem>>, %arg2: memref<4xi32, #tpu.memory_space<smem>>) -> (i32, i32) {
    %c0_i32 = arith.constant 0 : i32
    %c0_i32_0 = arith.constant 0 : i32
    %c0_i32_1 = arith.constant 0 : i32
    return %c0_i32, %c0_i32_0 : i32, i32
  }
  func.func @transform_14(%arg0: i32, %arg1: memref<4xi32, #tpu.memory_space<smem>>, %arg2: memref<4xi32, #tpu.memory_space<smem>>) -> (i32, i32) {
    %c0_i32 = arith.constant 0 : i32
    %c0_i32_0 = arith.constant 0 : i32
    %c0_i32_1 = arith.constant 0 : i32
    return %c0_i32, %c0_i32_0 : i32, i32
  }
  func.func @transform_15(%arg0: i32, %arg1: memref<4xi32, #tpu.memory_space<smem>>, %arg2: memref<4xi32, #tpu.memory_space<smem>>) -> (i32, i32, i32) {
    %c0_i32 = arith.constant 0 : i32
    %c0_i32_0 = arith.constant 0 : i32
    %c0_i32_1 = arith.constant 0 : i32
    return %arg0, %c0_i32, %c0_i32_0 : i32, i32, i32
  }
}

module attributes {stable_mosaic.version = 11 : i64} {
  func.func @lcgn_kernel(%arg0: i32, %arg1: memref<4xi32, #tpu.memory_space<smem>>, %arg2: memref<4xi32, #tpu.memory_space<smem>>, %arg3: memref<2x16x64xf32, #tpu.memory_space<vmem>>, %arg4: memref<2x1x32xf32, #tpu.memory_space<vmem>>, %arg5: memref<2x8x32xf32, #tpu.memory_space<vmem>>, %arg6: memref<64x32xbf16, #tpu.memory_space<vmem>>, %arg7: memref<32x32xbf16, #tpu.memory_space<vmem>>, %arg8: memref<3x32x32xbf16, #tpu.memory_space<vmem>>, %arg9: memref<32x128xbf16, #tpu.memory_space<vmem>>, %arg10: memref<32x128xbf16, #tpu.memory_space<vmem>>, %arg11: memref<32x96xbf16, #tpu.memory_space<vmem>>, %arg12: memref<32x64xbf16, #tpu.memory_space<vmem>>, %arg13: memref<64x32xbf16, #tpu.memory_space<vmem>>, %arg14: memref<64x32xbf16, #tpu.memory_space<vmem>>, %arg15: memref<3x1x32xf32, #tpu.memory_space<vmem>>, %arg16: memref<3x128xf32, #tpu.memory_space<vmem>>, %arg17: memref<7x32xf32, #tpu.memory_space<vmem>>, %arg18: memref<2x16x32xf32, #tpu.memory_space<vmem>>) attributes {dimension_semantics = [#tpu.dimension_semantics<parallel>], iteration_bounds = array<i64: 2>, scalar_prefetch = 2 : i64, scratch_operands = 0 : i64, tpu.core_type = #tpu.core_type<tc>, window_params = [{transform_indices = @transform_0, window_bounds = array<i64: 2, 16, 64>}, {transform_indices = @transform_1, window_bounds = array<i64: 2, 1, 32>}, {transform_indices = @transform_2, window_bounds = array<i64: 2, 8, 32>}, {pipeline_mode = #tpu.pipeline_mode<synchronous>, transform_indices = @transform_3, window_bounds = array<i64: 64, 32>}, {pipeline_mode = #tpu.pipeline_mode<synchronous>, transform_indices = @transform_4, window_bounds = array<i64: 32, 32>}, {pipeline_mode = #tpu.pipeline_mode<synchronous>, transform_indices = @transform_5, window_bounds = array<i64: 3, 32, 32>}, {pipeline_mode = #tpu.pipeline_mode<synchronous>, transform_indices = @transform_6, window_bounds = array<i64: 32, 128>}, {pipeline_mode = #tpu.pipeline_mode<synchronous>, transform_indices = @transform_7, window_bounds = array<i64: 32, 128>}, {pipeline_mode = #tpu.pipeline_mode<synchronous>, transform_indices = @transform_8, window_bounds = array<i64: 32, 96>}, {pipeline_mode = #tpu.pipeline_mode<synchronous>, transform_indices = @transform_9, window_bounds = array<i64: 32, 64>}, {pipeline_mode = #tpu.pipeline_mode<synchronous>, transform_indices = @transform_10, window_bounds = array<i64: 64, 32>}, {pipeline_mode = #tpu.pipeline_mode<synchronous>, transform_indices = @transform_11, window_bounds = array<i64: 64, 32>}, {pipeline_mode = #tpu.pipeline_mode<synchronous>, transform_indices = @transform_12, window_bounds = array<i64: 3, 1, 32>}, {pipeline_mode = #tpu.pipeline_mode<synchronous>, transform_indices = @transform_13, window_bounds = array<i64: 3, 128>}, {pipeline_mode = #tpu.pipeline_mode<synchronous>, transform_indices = @transform_14, window_bounds = array<i64: 7, 32>}, {transform_indices = @transform_15, window_bounds = array<i64: 2, 16, 32>}]} {
    %c0 = arith.constant 0 : index
    %c0_0 = arith.constant 0 : index
    %0 = vector.load %arg17[%c0, %c0_0] : memref<7x32xf32, #tpu.memory_space<vmem>>, vector<1x32xf32>
    %c1 = arith.constant 1 : index
    %c0_1 = arith.constant 0 : index
    %1 = vector.load %arg17[%c1, %c0_1] : memref<7x32xf32, #tpu.memory_space<vmem>>, vector<1x32xf32>
    %c2 = arith.constant 2 : index
    %c0_2 = arith.constant 0 : index
    %2 = vector.load %arg17[%c2, %c0_2] : memref<7x32xf32, #tpu.memory_space<vmem>>, vector<1x32xf32>
    %c3 = arith.constant 3 : index
    %c0_3 = arith.constant 0 : index
    %3 = vector.load %arg17[%c3, %c0_3] : memref<7x32xf32, #tpu.memory_space<vmem>>, vector<1x32xf32>
    %c4 = arith.constant 4 : index
    %c0_4 = arith.constant 0 : index
    %4 = vector.load %arg17[%c4, %c0_4] : memref<7x32xf32, #tpu.memory_space<vmem>>, vector<1x32xf32>
    %c5 = arith.constant 5 : index
    %c0_5 = arith.constant 0 : index
    %5 = vector.load %arg17[%c5, %c0_5] : memref<7x32xf32, #tpu.memory_space<vmem>>, vector<1x32xf32>
    %c6 = arith.constant 6 : index
    %c0_6 = arith.constant 0 : index
    %6 = vector.load %arg17[%c6, %c0_6] : memref<7x32xf32, #tpu.memory_space<vmem>>, vector<1x1xf32>
    %c0_7 = arith.constant 0 : index
    %c0_8 = arith.constant 0 : index
    %7 = vector.load %arg16[%c0_7, %c0_8] : memref<3x128xf32, #tpu.memory_space<vmem>>, vector<1x128xf32>
    %c1_9 = arith.constant 1 : index
    %c0_10 = arith.constant 0 : index
    %8 = vector.load %arg16[%c1_9, %c0_10] : memref<3x128xf32, #tpu.memory_space<vmem>>, vector<1x128xf32>
    %c2_11 = arith.constant 2 : index
    %c0_12 = arith.constant 0 : index
    %9 = vector.load %arg16[%c2_11, %c0_12] : memref<3x128xf32, #tpu.memory_space<vmem>>, vector<1x64xf32>
    %c0_13 = arith.constant 0 : index
    %c0_14 = arith.constant 0 : index
    %c0_15 = arith.constant 0 : index
    %10 = vector.load %arg3[%c0_13, %c0_14, %c0_15] : memref<2x16x64xf32, #tpu.memory_space<vmem>>, vector<2x16x64xf32>
    %11 = vector.shape_cast %10 : vector<2x16x64xf32> to vector<32x64xf32>
    %c0_16 = arith.constant 0 : index
    %c0_17 = arith.constant 0 : index
    %c0_18 = arith.constant 0 : index
    %12 = vector.load %arg5[%c0_16, %c0_17, %c0_18] : memref<2x8x32xf32, #tpu.memory_space<vmem>>, vector<2x8x32xf32>
    %c0_19 = arith.constant 0 : index
    %c0_20 = arith.constant 0 : index
    %c0_21 = arith.constant 0 : index
    %13 = vector.load %arg4[%c0_19, %c0_20, %c0_21] : memref<2x1x32xf32, #tpu.memory_space<vmem>>, vector<2x1x32xf32>
    %14 = vector.shape_cast %13 : vector<2x1x32xf32> to vector<2x32xf32>
    %15 = arith.mulf %11, %11 : vector<32x64xf32>
    %cst = arith.constant dense<0.000000e+00> : vector<32xf32>
    %16 = vector.multi_reduction <add>, %15, %cst [1] : vector<32x64xf32> to vector<32xf32>
    %17 = vector.shape_cast %16 : vector<32xf32> to vector<32x1xf32>
    %cst_22 = arith.constant 1.000000e-24 : f32
    %18 = vector.broadcast %cst_22 : f32 to vector<32x1xf32>
    %19 = arith.maximumf %17, %18 : vector<32x1xf32>
    %20 = math.rsqrt %19 : vector<32x1xf32>
    %21 = vector.broadcast %20 : vector<32x1xf32> to vector<32x64xf32>
    %22 = arith.mulf %11, %21 : vector<32x64xf32>
    %23 = arith.truncf %22 : vector<32x64xf32> to vector<32x64xbf16>
    %c0_23 = arith.constant 0 : index
    %c0_24 = arith.constant 0 : index
    %24 = vector.load %arg6[%c0_23, %c0_24] : memref<64x32xbf16, #tpu.memory_space<vmem>>, vector<64x32xbf16>
    %cst_25 = arith.constant dense<0.000000e+00> : vector<32x32xf32>
    %25 = tpu.matmul %23, %24, %cst_25 {dimension_numbers = #tpu.dot_dimension_numbers<[1], [0], [0], [1], [0, 0, 1, 1], [], []>} : vector<32x64xbf16>, vector<64x32xbf16>, vector<32x32xf32> -> vector<32x32xf32>
    %26 = vector.broadcast %0 : vector<1x32xf32> to vector<32x32xf32>
    %27 = arith.addf %25, %26 : vector<32x32xf32>
    %28 = arith.truncf %27 : vector<32x32xf32> to vector<32x32xbf16>
    %29 = vector.shape_cast %1 : vector<1x32xf32> to vector<1x32xf32>
    %30 = vector.broadcast %29 : vector<1x32xf32> to vector<32x32xf32>
    %c0_26 = arith.constant 0 : index
    %c0_27 = arith.constant 0 : index
    %31 = vector.load %arg9[%c0_26, %c0_27] : memref<32x128xbf16, #tpu.memory_space<vmem>>, vector<32x128xbf16>
    %cst_28 = arith.constant dense<0.000000e+00> : vector<32x128xf32>
    %32 = tpu.matmul %28, %31, %cst_28 {dimension_numbers = #tpu.dot_dimension_numbers<[1], [0], [0], [1], [0, 0, 1, 1], [], []>} : vector<32x32xbf16>, vector<32x128xbf16>, vector<32x128xf32> -> vector<32x128xf32>
    %33 = vector.broadcast %7 : vector<1x128xf32> to vector<32x128xf32>
    %34 = arith.addf %32, %33 : vector<32x128xf32>
    %35 = vector.extract_strided_slice %34 {offsets = [0, 0], sizes = [32, 32], strides = [1, 1]} : vector<32x128xf32> to vector<32x32xf32>
    %36 = vector.extract_strided_slice %34 {offsets = [0, 32], sizes = [32, 96], strides = [1, 1]} : vector<32x128xf32> to vector<32x96xf32>
    %c2_i32 = arith.constant 2 : i32
    %37 = arith.muli %arg0, %c2_i32 : i32
    %c0_i32 = arith.constant 0 : i32
    %38 = arith.addi %37, %c0_i32 : i32
    %39 = arith.index_cast %38 : i32 to index
    %40 = memref.load %arg2[%39] : memref<4xi32, #tpu.memory_space<smem>>
    %c2_i32_29 = arith.constant 2 : i32
    %41 = arith.muli %arg0, %c2_i32_29 : i32
    %c1_i32 = arith.constant 1 : i32
    %42 = arith.addi %41, %c1_i32 : i32
    %43 = arith.index_cast %42 : i32 to index
    %44 = memref.load %arg2[%43] : memref<4xi32, #tpu.memory_space<smem>>
    %c2_i32_30 = arith.constant 2 : i32
    %45 = arith.muli %arg0, %c2_i32_30 : i32
    %c0_i32_31 = arith.constant 0 : i32
    %46 = arith.addi %45, %c0_i32_31 : i32
    %47 = arith.index_cast %46 : i32 to index
    %48 = memref.load %arg1[%47] : memref<4xi32, #tpu.memory_space<smem>>
    %c2_i32_32 = arith.constant 2 : i32
    %49 = arith.muli %arg0, %c2_i32_32 : i32
    %c1_i32_33 = arith.constant 1 : i32
    %50 = arith.addi %49, %c1_i32_33 : i32
    %51 = arith.index_cast %50 : i32 to index
    %52 = memref.load %arg1[%51] : memref<4xi32, #tpu.memory_space<smem>>
    %53 = vector.broadcast %48 : i32 to vector<1x1xi32>
    %54 = vector.broadcast %52 : i32 to vector<1x1xi32>
    %55 = tpu.concatenate %53, %54 in 0 : vector<1x1xi32>, vector<1x1xi32> -> vector<2x1xi32>
    %56 = tpu.iota {dimensions = array<i32: 1>} : vector<2x8xi32>
    %57 = vector.broadcast %55 : vector<2x1xi32> to vector<2x8xi32>
    %58 = arith.cmpi sge, %56, %57 : vector<2x8xi32>
    %59 = vector.broadcast %40 : i32 to vector<1x16xi32>
    %60 = vector.broadcast %44 : i32 to vector<1x16xi32>
    %61 = tpu.concatenate %59, %60 in 1 : vector<1x16xi32>, vector<1x16xi32> -> vector<1x32xi32>
    %62 = vector.broadcast %40 : i32 to vector<16x1xi32>
    %63 = vector.broadcast %44 : i32 to vector<16x1xi32>
    %64 = tpu.concatenate %62, %63 in 0 : vector<16x1xi32>, vector<16x1xi32> -> vector<32x1xi32>
    %c0_i32_34 = arith.constant 0 : i32
    %65 = vector.broadcast %c0_i32_34 : i32 to vector<1x16xi32>
    %c1_i32_35 = arith.constant 1 : i32
    %66 = vector.broadcast %c1_i32_35 : i32 to vector<1x16xi32>
    %67 = tpu.concatenate %65, %66 in 1 : vector<1x16xi32>, vector<1x16xi32> -> vector<1x32xi32>
    %c0_i32_36 = arith.constant 0 : i32
    %68 = vector.broadcast %c0_i32_36 : i32 to vector<16x1xi32>
    %c1_i32_37 = arith.constant 1 : i32
    %69 = vector.broadcast %c1_i32_37 : i32 to vector<16x1xi32>
    %70 = tpu.concatenate %68, %69 in 0 : vector<16x1xi32>, vector<16x1xi32> -> vector<32x1xi32>
    %71 = tpu.iota {dimensions = array<i32: 1>} : vector<1x32xi32>
    %c16_i32 = arith.constant 16 : i32
    %72 = vector.broadcast %c16_i32 : i32 to vector<1x32xi32>
    %73 = arith.muli %72, %67 : vector<1x32xi32>
    %74 = arith.subi %71, %73 : vector<1x32xi32>
    %75 = tpu.iota {dimensions = array<i32: 0>} : vector<32x1xi32>
    %c16_i32_38 = arith.constant 16 : i32
    %76 = vector.broadcast %c16_i32_38 : i32 to vector<32x1xi32>
    %77 = arith.muli %76, %70 : vector<32x1xi32>
    %78 = arith.subi %75, %77 : vector<32x1xi32>
    %79 = arith.cmpi sge, %78, %64 : vector<32x1xi32>
    %80 = arith.cmpi sge, %74, %61 : vector<1x32xi32>
    %81 = vector.broadcast %79 : vector<32x1xi1> to vector<32x32xi1>
    %82 = vector.broadcast %80 : vector<1x32xi1> to vector<32x32xi1>
    %83 = arith.ori %81, %82 : vector<32x32xi1>
    %84 = vector.broadcast %70 : vector<32x1xi32> to vector<32x32xi32>
    %85 = vector.broadcast %67 : vector<1x32xi32> to vector<32x32xi32>
    %86 = arith.cmpi ne, %84, %85 : vector<32x32xi32>
    %87 = arith.truncf %14 : vector<2x32xf32> to vector<2x32xbf16>
    %c0_39 = arith.constant 0 : index
    %c0_40 = arith.constant 0 : index
    %88 = vector.load %arg7[%c0_39, %c0_40] : memref<32x32xbf16, #tpu.memory_space<vmem>>, vector<32x32xbf16>
    %cst_41 = arith.constant dense<0.000000e+00> : vector<2x32xf32>
    %89 = tpu.matmul %87, %88, %cst_41 {dimension_numbers = #tpu.dot_dimension_numbers<[1], [0], [0], [1], [0, 0, 1, 1], [], []>} : vector<2x32xbf16>, vector<32x32xbf16>, vector<2x32xf32> -> vector<2x32xf32>
    %90 = vector.broadcast %2 : vector<1x32xf32> to vector<2x32xf32>
    %91 = arith.addf %89, %90 : vector<2x32xf32>
    %cst_42 = arith.constant 0.000000e+00 : f32
    %92 = vector.broadcast %cst_42 : f32 to vector<2x32xf32>
    %93 = arith.cmpf ogt, %91, %92 : vector<2x32xf32>
    %cst_43 = arith.constant 0.000000e+00 : f32
    %94 = vector.broadcast %cst_43 : f32 to vector<2x32xf32>
    %95 = arith.minimumf %91, %94 : vector<2x32xf32>
    %96 = math.exp %95 : vector<2x32xf32>
    %cst_44 = arith.constant 1.000000e+00 : f32
    %97 = vector.broadcast %cst_44 : f32 to vector<2x32xf32>
    %98 = arith.subf %96, %97 : vector<2x32xf32>
    %99 = arith.select %93, %91, %98 : vector<2x32xi1>, vector<2x32xf32>
    %100 = arith.truncf %99 : vector<2x32xf32> to vector<2x32xbf16>
    %c0_i32_45 = arith.constant 0 : i32
    %c3_i32 = arith.constant 3 : i32
    %101 = arith.addi %c0_i32_45, %c3_i32 : i32
    %c1_i32_46 = arith.constant 1 : i32
    %102 = scf.for %arg19 = %c0_i32_45 to %101 step %c1_i32_46 iter_args(%arg20 = %30) -> (vector<32x32xf32>)  : i32 {
      %113 = arith.index_cast %arg19 : i32 to index
      %c0_56 = arith.constant 0 : index
      %c0_57 = arith.constant 0 : index
      %114 = vector.load %arg8[%113, %c0_56, %c0_57] : memref<3x32x32xbf16, #tpu.memory_space<vmem>>, vector<1x32x32xbf16>
      %115 = vector.shape_cast %114 : vector<1x32x32xbf16> to vector<32x32xbf16>
      %116 = arith.index_cast %arg19 : i32 to index
      %c0_58 = arith.constant 0 : index
      %c0_59 = arith.constant 0 : index
      %117 = vector.load %arg15[%116, %c0_58, %c0_59] : memref<3x1x32xf32, #tpu.memory_space<vmem>>, vector<1x1x32xf32>
      %118 = vector.shape_cast %117 : vector<1x1x32xf32> to vector<1x32xf32>
      %cst_60 = arith.constant dense<0.000000e+00> : vector<2x32xf32>
      %119 = tpu.matmul %100, %115, %cst_60 {dimension_numbers = #tpu.dot_dimension_numbers<[1], [0], [0], [1], [0, 0, 1, 1], [], []>} : vector<2x32xbf16>, vector<32x32xbf16>, vector<2x32xf32> -> vector<2x32xf32>
      %120 = vector.broadcast %118 : vector<1x32xf32> to vector<2x32xf32>
      %121 = arith.addf %119, %120 : vector<2x32xf32>
      %122 = vector.broadcast %5 : vector<1x32xf32> to vector<2x32xf32>
      %123 = arith.mulf %121, %122 : vector<2x32xf32>
      %124 = vector.shape_cast %123 : vector<2x32xf32> to vector<2x1x32xf32>
      %125 = vector.broadcast %124 : vector<2x1x32xf32> to vector<2x8x32xf32>
      %126 = arith.mulf %125, %12 : vector<2x8x32xf32>
      %cst_61 = arith.constant dense<0.000000e+00> : vector<2x8xf32>
      %127 = vector.multi_reduction <add>, %126, %cst_61 [2] : vector<2x8x32xf32> to vector<2x8xf32>
      %128 = vector.broadcast %6 : vector<1x1xf32> to vector<2x8xf32>
      %129 = arith.addf %127, %128 : vector<2x8xf32>
      %cst_62 = arith.constant -1.000000e+30 : f32
      %130 = vector.broadcast %cst_62 : f32 to vector<2x8xf32>
      %131 = arith.select %58, %130, %129 : vector<2x8xi1>, vector<2x8xf32>
      %cst_63 = arith.constant dense<0xFF800000> : vector<2xf32>
      %132 = vector.multi_reduction <maximumf>, %131, %cst_63 [1] : vector<2x8xf32> to vector<2xf32>
      %133 = vector.shape_cast %132 : vector<2xf32> to vector<2x1xf32>
      %134 = vector.broadcast %133 : vector<2x1xf32> to vector<2x8xf32>
      %135 = arith.subf %131, %134 : vector<2x8xf32>
      %136 = math.exp %135 : vector<2x8xf32>
      %cst_64 = arith.constant dense<0.000000e+00> : vector<2xf32>
      %137 = vector.multi_reduction <add>, %136, %cst_64 [1] : vector<2x8xf32> to vector<2xf32>
      %138 = vector.shape_cast %137 : vector<2xf32> to vector<2x1xf32>
      %139 = tpu.reciprocal %138 {approx = true} : vector<2x1xf32> -> vector<2x1xf32>
      %140 = vector.broadcast %139 : vector<2x1xf32> to vector<2x8xf32>
      %141 = arith.mulf %136, %140 : vector<2x8xf32>
      %142 = vector.shape_cast %141 : vector<2x8xf32> to vector<2x8x1xf32>
      %143 = vector.broadcast %142 : vector<2x8x1xf32> to vector<2x8x32xf32>
      %144 = arith.mulf %143, %12 : vector<2x8x32xf32>
      %cst_65 = arith.constant dense<0.000000e+00> : vector<2x32xf32>
      %145 = vector.multi_reduction <add>, %144, %cst_65 [1] : vector<2x8x32xf32> to vector<2x32xf32>
      %146 = arith.truncf %145 : vector<2x32xf32> to vector<2x32xbf16>
      %c0_66 = arith.constant 0 : index
      %c0_67 = arith.constant 0 : index
      %147 = vector.load %arg12[%c0_66, %c0_67] : memref<32x64xbf16, #tpu.memory_space<vmem>>, vector<32x64xbf16>
      %cst_68 = arith.constant dense<0.000000e+00> : vector<2x64xf32>
      %148 = tpu.matmul %146, %147, %cst_68 {dimension_numbers = #tpu.dot_dimension_numbers<[1], [0], [0], [1], [0, 0, 1, 1], [], []>} : vector<2x32xbf16>, vector<32x64xbf16>, vector<2x64xf32> -> vector<2x64xf32>
      %149 = vector.broadcast %9 : vector<1x64xf32> to vector<2x64xf32>
      %150 = arith.addf %148, %149 : vector<2x64xf32>
      %151 = vector.extract_strided_slice %150 {offsets = [0, 0], sizes = [2, 32], strides = [1, 1]} : vector<2x64xf32> to vector<2x32xf32>
      %152 = vector.extract_strided_slice %150 {offsets = [0, 32], sizes = [2, 32], strides = [1, 1]} : vector<2x64xf32> to vector<2x32xf32>
      %153 = arith.truncf %arg20 : vector<32x32xf32> to vector<32x32xbf16>
      %c0_69 = arith.constant 0 : index
      %c0_70 = arith.constant 0 : index
      %154 = vector.load %arg10[%c0_69, %c0_70] : memref<32x128xbf16, #tpu.memory_space<vmem>>, vector<32x128xbf16>
      %cst_71 = arith.constant dense<0.000000e+00> : vector<32x128xf32>
      %155 = tpu.matmul %153, %154, %cst_71 {dimension_numbers = #tpu.dot_dimension_numbers<[1], [0], [0], [1], [0, 0, 1, 1], [], []>} : vector<32x32xbf16>, vector<32x128xbf16>, vector<32x128xf32> -> vector<32x128xf32>
      %156 = vector.broadcast %8 : vector<1x128xf32> to vector<32x128xf32>
      %157 = arith.addf %155, %156 : vector<32x128xf32>
      %158 = vector.extract_strided_slice %157 {offsets = [0, 0], sizes = [32, 32], strides = [1, 1]} : vector<32x128xf32> to vector<32x32xf32>
      %159 = arith.mulf %35, %158 : vector<32x32xf32>
      %160 = vector.extract_strided_slice %157 {offsets = [0, 32], sizes = [32, 96], strides = [1, 1]} : vector<32x128xf32> to vector<32x96xf32>
      %161 = arith.addf %36, %160 : vector<32x96xf32>
      %162 = arith.truncf %159 : vector<32x32xf32> to vector<32x32xbf16>
      %c0_72 = arith.constant 0 : index
      %c0_73 = arith.constant 0 : index
      %163 = vector.load %arg11[%c0_72, %c0_73] : memref<32x96xbf16, #tpu.memory_space<vmem>>, vector<32x96xbf16>
      %cst_74 = arith.constant dense<0.000000e+00> : vector<32x96xf32>
      %164 = tpu.matmul %162, %163, %cst_74 {dimension_numbers = #tpu.dot_dimension_numbers<[1], [0], [0], [1], [0, 0, 1, 1], [], []>} : vector<32x32xbf16>, vector<32x96xbf16>, vector<32x96xf32> -> vector<32x96xf32>
      %165 = arith.addf %161, %164 : vector<32x96xf32>
      %166 = vector.extract_strided_slice %165 {offsets = [0, 0], sizes = [32, 32], strides = [1, 1]} : vector<32x96xf32> to vector<32x32xf32>
      %167 = vector.extract_strided_slice %165 {offsets = [0, 32], sizes = [32, 32], strides = [1, 1]} : vector<32x96xf32> to vector<32x32xf32>
      %168 = vector.shape_cast %167 : vector<32x32xf32> to vector<2x16x32xf32>
      %169 = vector.shape_cast %151 : vector<2x32xf32> to vector<2x1x32xf32>
      %170 = vector.broadcast %169 : vector<2x1x32xf32> to vector<2x16x32xf32>
      %171 = arith.mulf %168, %170 : vector<2x16x32xf32>
      %172 = vector.shape_cast %171 : vector<2x16x32xf32> to vector<32x32xf32>
      %173 = vector.extract_strided_slice %165 {offsets = [0, 64], sizes = [32, 32], strides = [1, 1]} : vector<32x96xf32> to vector<32x32xf32>
      %174 = vector.shape_cast %173 : vector<32x32xf32> to vector<2x16x32xf32>
      %175 = vector.shape_cast %152 : vector<2x32xf32> to vector<2x1x32xf32>
      %176 = vector.broadcast %175 : vector<2x1x32xf32> to vector<2x16x32xf32>
      %177 = arith.mulf %174, %176 : vector<2x16x32xf32>
      %178 = vector.shape_cast %177 : vector<2x16x32xf32> to vector<32x32xf32>
      %179 = arith.truncf %166 : vector<32x32xf32> to vector<32x32xbf16>
      %180 = arith.truncf %172 : vector<32x32xf32> to vector<32x32xbf16>
      "tpu.trace_start"() <{level = 10 : i32, message = "nd,md->nm"}> : () -> ()
      %cst_75 = arith.constant dense<0.000000e+00> : vector<32x32xf32>
      %181 = tpu.matmul %179, %180, %cst_75 {dimension_numbers = #tpu.dot_dimension_numbers<[1], [1], [0], [0], [0, 0, 1, 0], [], []>} : vector<32x32xbf16>, vector<32x32xbf16>, vector<32x32xf32> -> vector<32x32xf32>
      "tpu.trace_stop"() : () -> ()
      %cst_76 = arith.constant 0.176776692 : f32
      %182 = vector.broadcast %cst_76 : f32 to vector<32x32xf32>
      %183 = arith.mulf %181, %182 : vector<32x32xf32>
      %cst_77 = arith.constant -1.000000e+30 : f32
      %184 = vector.broadcast %cst_77 : f32 to vector<32x32xf32>
      %185 = arith.select %83, %184, %183 : vector<32x32xi1>, vector<32x32xf32>
      %cst_78 = arith.constant -2.000000e+30 : f32
      %186 = vector.broadcast %cst_78 : f32 to vector<32x32xf32>
      %187 = arith.select %86, %186, %185 : vector<32x32xi1>, vector<32x32xf32>
      %cst_79 = arith.constant dense<0xFF800000> : vector<32xf32>
      %188 = vector.multi_reduction <maximumf>, %187, %cst_79 [1] : vector<32x32xf32> to vector<32xf32>
      %189 = vector.shape_cast %188 : vector<32xf32> to vector<32x1xf32>
      %190 = vector.broadcast %189 : vector<32x1xf32> to vector<32x32xf32>
      %191 = arith.subf %187, %190 : vector<32x32xf32>
      %192 = math.exp %191 : vector<32x32xf32>
      %cst_80 = arith.constant dense<0.000000e+00> : vector<32xf32>
      %193 = vector.multi_reduction <add>, %192, %cst_80 [1] : vector<32x32xf32> to vector<32xf32>
      %194 = vector.shape_cast %193 : vector<32xf32> to vector<32x1xf32>
      %195 = tpu.reciprocal %194 {approx = true} : vector<32x1xf32> -> vector<32x1xf32>
      %196 = vector.broadcast %195 : vector<32x1xf32> to vector<32x32xf32>
      %197 = arith.mulf %192, %196 : vector<32x32xf32>
      %198 = arith.truncf %197 : vector<32x32xf32> to vector<32x32xbf16>
      %199 = arith.truncf %178 : vector<32x32xf32> to vector<32x32xbf16>
      %cst_81 = arith.constant dense<0.000000e+00> : vector<32x32xf32>
      %200 = tpu.matmul %198, %199, %cst_81 {dimension_numbers = #tpu.dot_dimension_numbers<[1], [0], [0], [1], [0, 0, 1, 1], [], []>} : vector<32x32xbf16>, vector<32x32xbf16>, vector<32x32xf32> -> vector<32x32xf32>
      %c0_82 = arith.constant 0 : index
      %c0_83 = arith.constant 0 : index
      %201 = vector.load %arg13[%c0_82, %c0_83] : memref<64x32xbf16, #tpu.memory_space<vmem>>, vector<32x32xbf16>
      %cst_84 = arith.constant dense<0.000000e+00> : vector<32x32xf32>
      %202 = tpu.matmul %153, %201, %cst_84 {dimension_numbers = #tpu.dot_dimension_numbers<[1], [0], [0], [1], [0, 0, 1, 1], [], []>} : vector<32x32xbf16>, vector<32x32xbf16>, vector<32x32xf32> -> vector<32x32xf32>
      %203 = arith.truncf %200 : vector<32x32xf32> to vector<32x32xbf16>
      %c32_85 = arith.constant 32 : index
      %c0_86 = arith.constant 0 : index
      %204 = vector.load %arg13[%c32_85, %c0_86] : memref<64x32xbf16, #tpu.memory_space<vmem>>, vector<32x32xbf16>
      %cst_87 = arith.constant dense<0.000000e+00> : vector<32x32xf32>
      %205 = tpu.matmul %203, %204, %cst_87 {dimension_numbers = #tpu.dot_dimension_numbers<[1], [0], [0], [1], [0, 0, 1, 1], [], []>} : vector<32x32xbf16>, vector<32x32xbf16>, vector<32x32xf32> -> vector<32x32xf32>
      %206 = arith.addf %202, %205 : vector<32x32xf32>
      %207 = vector.broadcast %3 : vector<1x32xf32> to vector<32x32xf32>
      %208 = arith.addf %206, %207 : vector<32x32xf32>
      scf.yield %208 : vector<32x32xf32>
    }
    %c3_i32_47 = arith.constant 3 : i32
    %c0_48 = arith.constant 0 : index
    %c0_49 = arith.constant 0 : index
    %103 = vector.load %arg14[%c0_48, %c0_49] : memref<64x32xbf16, #tpu.memory_space<vmem>>, vector<32x32xbf16>
    %cst_50 = arith.constant dense<0.000000e+00> : vector<32x32xf32>
    %104 = tpu.matmul %28, %103, %cst_50 {dimension_numbers = #tpu.dot_dimension_numbers<[1], [0], [0], [1], [0, 0, 1, 1], [], []>} : vector<32x32xbf16>, vector<32x32xbf16>, vector<32x32xf32> -> vector<32x32xf32>
    %105 = arith.truncf %102 : vector<32x32xf32> to vector<32x32xbf16>
    %c32 = arith.constant 32 : index
    %c0_51 = arith.constant 0 : index
    %106 = vector.load %arg14[%c32, %c0_51] : memref<64x32xbf16, #tpu.memory_space<vmem>>, vector<32x32xbf16>
    %cst_52 = arith.constant dense<0.000000e+00> : vector<32x32xf32>
    %107 = tpu.matmul %105, %106, %cst_52 {dimension_numbers = #tpu.dot_dimension_numbers<[1], [0], [0], [1], [0, 0, 1, 1], [], []>} : vector<32x32xbf16>, vector<32x32xbf16>, vector<32x32xf32> -> vector<32x32xf32>
    %108 = arith.addf %104, %107 : vector<32x32xf32>
    %109 = vector.broadcast %4 : vector<1x32xf32> to vector<32x32xf32>
    %110 = arith.addf %108, %109 : vector<32x32xf32>
    %111 = vector.shape_cast %110 : vector<32x32xf32> to vector<2x16x32xf32>
    %c0_53 = arith.constant 0 : index
    %c0_54 = arith.constant 0 : index
    %c0_55 = arith.constant 0 : index
    %112 = vector.load %arg18[%c0_53, %c0_54, %c0_55] : memref<2x16x32xf32, #tpu.memory_space<vmem>>, vector<2x16x32xf32>
    tpu.vector_store %arg18[%c0_53, %c0_54, %c0_55], %111 {strides = array<i32>} : memref<2x16x32xf32, #tpu.memory_space<vmem>>, vector<2x16x32xf32>,
    return
  }
  func.func @transform_0(%arg0: i32, %arg1: memref<4xi32, #tpu.memory_space<smem>>, %arg2: memref<4xi32, #tpu.memory_space<smem>>) -> (i32, i32, i32) {
    %c0_i32 = arith.constant 0 : i32
    %c0_i32_0 = arith.constant 0 : i32
    %c0_i32_1 = arith.constant 0 : i32
    return %arg0, %c0_i32, %c0_i32_0 : i32, i32, i32
  }
  func.func @transform_1(%arg0: i32, %arg1: memref<4xi32, #tpu.memory_space<smem>>, %arg2: memref<4xi32, #tpu.memory_space<smem>>) -> (i32, i32, i32) {
    %c0_i32 = arith.constant 0 : i32
    %c0_i32_0 = arith.constant 0 : i32
    %c0_i32_1 = arith.constant 0 : i32
    return %arg0, %c0_i32, %c0_i32_0 : i32, i32, i32
  }
  func.func @transform_2(%arg0: i32, %arg1: memref<4xi32, #tpu.memory_space<smem>>, %arg2: memref<4xi32, #tpu.memory_space<smem>>) -> (i32, i32, i32) {
    %c0_i32 = arith.constant 0 : i32
    %c0_i32_0 = arith.constant 0 : i32
    %c0_i32_1 = arith.constant 0 : i32
    return %arg0, %c0_i32, %c0_i32_0 : i32, i32, i32
  }
  func.func @transform_3(%arg0: i32, %arg1: memref<4xi32, #tpu.memory_space<smem>>, %arg2: memref<4xi32, #tpu.memory_space<smem>>) -> (i32, i32) {
    %c0_i32 = arith.constant 0 : i32
    %c0_i32_0 = arith.constant 0 : i32
    %c0_i32_1 = arith.constant 0 : i32
    return %c0_i32, %c0_i32_0 : i32, i32
  }
  func.func @transform_4(%arg0: i32, %arg1: memref<4xi32, #tpu.memory_space<smem>>, %arg2: memref<4xi32, #tpu.memory_space<smem>>) -> (i32, i32) {
    %c0_i32 = arith.constant 0 : i32
    %c0_i32_0 = arith.constant 0 : i32
    %c0_i32_1 = arith.constant 0 : i32
    return %c0_i32, %c0_i32_0 : i32, i32
  }
  func.func @transform_5(%arg0: i32, %arg1: memref<4xi32, #tpu.memory_space<smem>>, %arg2: memref<4xi32, #tpu.memory_space<smem>>) -> (i32, i32, i32) {
    %c0_i32 = arith.constant 0 : i32
    %c0_i32_0 = arith.constant 0 : i32
    %c0_i32_1 = arith.constant 0 : i32
    %c0_i32_2 = arith.constant 0 : i32
    return %c0_i32, %c0_i32_0, %c0_i32_1 : i32, i32, i32
  }
  func.func @transform_6(%arg0: i32, %arg1: memref<4xi32, #tpu.memory_space<smem>>, %arg2: memref<4xi32, #tpu.memory_space<smem>>) -> (i32, i32) {
    %c0_i32 = arith.constant 0 : i32
    %c0_i32_0 = arith.constant 0 : i32
    %c0_i32_1 = arith.constant 0 : i32
    return %c0_i32, %c0_i32_0 : i32, i32
  }
  func.func @transform_7(%arg0: i32, %arg1: memref<4xi32, #tpu.memory_space<smem>>, %arg2: memref<4xi32, #tpu.memory_space<smem>>) -> (i32, i32) {
    %c0_i32 = arith.constant 0 : i32
    %c0_i32_0 = arith.constant 0 : i32
    %c0_i32_1 = arith.constant 0 : i32
    return %c0_i32, %c0_i32_0 : i32, i32
  }
  func.func @transform_8(%arg0: i32, %arg1: memref<4xi32, #tpu.memory_space<smem>>, %arg2: memref<4xi32, #tpu.memory_space<smem>>) -> (i32, i32) {
    %c0_i32 = arith.constant 0 : i32
    %c0_i32_0 = arith.constant 0 : i32
    %c0_i32_1 = arith.constant 0 : i32
    return %c0_i32, %c0_i32_0 : i32, i32
  }
  func.func @transform_9(%arg0: i32, %arg1: memref<4xi32, #tpu.memory_space<smem>>, %arg2: memref<4xi32, #tpu.memory_space<smem>>) -> (i32, i32) {
    %c0_i32 = arith.constant 0 : i32
    %c0_i32_0 = arith.constant 0 : i32
    %c0_i32_1 = arith.constant 0 : i32
    return %c0_i32, %c0_i32_0 : i32, i32
  }
  func.func @transform_10(%arg0: i32, %arg1: memref<4xi32, #tpu.memory_space<smem>>, %arg2: memref<4xi32, #tpu.memory_space<smem>>) -> (i32, i32) {
    %c0_i32 = arith.constant 0 : i32
    %c0_i32_0 = arith.constant 0 : i32
    %c0_i32_1 = arith.constant 0 : i32
    return %c0_i32, %c0_i32_0 : i32, i32
  }
  func.func @transform_11(%arg0: i32, %arg1: memref<4xi32, #tpu.memory_space<smem>>, %arg2: memref<4xi32, #tpu.memory_space<smem>>) -> (i32, i32) {
    %c0_i32 = arith.constant 0 : i32
    %c0_i32_0 = arith.constant 0 : i32
    %c0_i32_1 = arith.constant 0 : i32
    return %c0_i32, %c0_i32_0 : i32, i32
  }
  func.func @transform_12(%arg0: i32, %arg1: memref<4xi32, #tpu.memory_space<smem>>, %arg2: memref<4xi32, #tpu.memory_space<smem>>) -> (i32, i32, i32) {
    %c0_i32 = arith.constant 0 : i32
    %c0_i32_0 = arith.constant 0 : i32
    %c0_i32_1 = arith.constant 0 : i32
    %c0_i32_2 = arith.constant 0 : i32
    return %c0_i32, %c0_i32_0, %c0_i32_1 : i32, i32, i32
  }
  func.func @transform_13(%arg0: i32, %arg1: memref<4xi32, #tpu.memory_space<smem>>, %arg2: memref<4xi32, #tpu.memory_space<smem>>) -> (i32, i32) {
    %c0_i32 = arith.constant 0 : i32
    %c0_i32_0 = arith.constant 0 : i32
    %c0_i32_1 = arith.constant 0 : i32
    return %c0_i32, %c0_i32_0 : i32, i32
  }
  func.func @transform_14(%arg0: i32, %arg1: memref<4xi32, #tpu.memory_space<smem>>, %arg2: memref<4xi32, #tpu.memory_space<smem>>) -> (i32, i32) {
    %c0_i32 = arith.constant 0 : i32
    %c0_i32_0 = arith.constant 0 : i32
    %c0_i32_1 = arith.constant 0 : i32
    return %c0_i32, %c0_i32_0 : i32, i32
  }
  func.func @transform_15(%arg0: i32, %arg1: memref<4xi32, #tpu.memory_space<smem>>, %arg2: memref<4xi32, #tpu.memory_space<smem>>) -> (i32, i32, i32) {
    %c0_i32 = arith.constant 0 : i32
    %c0_i32_0 = arith.constant 0 : i32
    %c0_i32_1 = arith.constant 0 : i32
    return %arg0, %c0_i32, %c0_i32_0 : i32, i32, i32
  }
}

</mosaic_0001>

<bundles_post_ra>
// kernel: tpu_custom_call.1
= control target key start
LH: loop header
LB: loop body
LE: loop exit
PB: predicated region body
PF: predicated region fallthrough
CT: control target
= control target key end

     0   :  { %s3063_s24 = smov [#allocation3]   ;;  %s3064_s27 = smov [#allocation4]   ;;  %s3824_s0 = inlined_call_operand.hbm [shape: s32[4], index: 0, kind: input, shape index: {}]   ;;  %s3825_s2 = inlined_call_operand.vmem [shape: f32[4,16,64], index: 2, kind: input, shape index: {}]   ;;  %s3826_s3 = inlined_call_operand.hbm [shape: f32[4,1,32], index: 3, kind: input, shape index: {}]   ;;  %s3827_s4 = inlined_call_operand.vmem [shape: f32[4,8,32], index: 4, kind: input, shape index: {}]   ;;  %s3828_s5 = inlined_call_operand.vmem [shape: bf16[64,32], index: 5, kind: input, shape index: {}]   ;;  %s3829_s6 = inlined_call_operand.hbm [shape: bf16[32,32], index: 6, kind: input, shape index: {}]   ;;  %s3830_s7 = inlined_call_operand.vmem [shape: bf16[3,32,32], index: 7, kind: input, shape index: {}]   ;;  %s3831_s8 = inlined_call_operand.hbm [shape: bf16[32,128], index: 8, kind: input, shape index: {}]   ;;  %s3832_s9 = inlined_call_operand.hbm [shape: bf16[32,128], index: 9, kind: input, shape index: {}]   ;;  %s3833_s10 = inlined_call_operand.hbm [shape: bf16[32,96], index: 10, kind: input, shape index: {}]   ;;  %s3834_s11 = inlined_call_operand.hbm [shape: bf16[32,64], index: 11, kind: input, shape index: {}]   ;;  %s3835_s12 = inlined_call_operand.vmem [shape: bf16[64,32], index: 12, kind: input, shape index: {}]   ;;  %s3836_s13 = inlined_call_operand.vmem [shape: bf16[64,32], index: 13, kind: input, shape index: {}]   ;;  %s3837_s14 = inlined_call_operand.hbm [shape: f32[3,1,32], index: 14, kind: input, shape index: {}]   ;;  %s3838_s15 = inlined_call_operand.hbm [shape: f32[3,128], index: 15, kind: input, shape index: {}]   ;;  %s3839_s16 = inlined_call_operand.vmem [shape: f32[7,32], index: 16, kind: input, shape index: {}]   ;;  %s3840_s17 = inlined_call_operand.hbm [shape: f32[4,16,32], index: 17, kind: output, shape index: {}]   ;;  %s3841_s1 = inlined_call_operand.hbm [shape: s32[4], index: 1, kind: input, shape index: {}]  }
   0x1   :  { %3850 = sst [smem:[#allocation29_spill]] %s3824_s0 }
   0x2   :  { %3851 = sst [smem:[#allocation30_spill]] %s3825_s2 }
   0x3   :  { %3852 = sst [smem:[#allocation31_spill]] %s3826_s3 }
   0x4   :  { %3853 = sst [smem:[#allocation32_spill]] %s3829_s6 }
   0x5   :  { %3854 = sst [smem:[#allocation33_spill]] %s3831_s8 }
   0x6   :  { %3855 = sst [smem:[#allocation34_spill]] %s3832_s9 }
   0x7   :  { %3856 = sst [smem:[#allocation35_spill]] %s3833_s10 }
   0x8   :  { %3857 = sst [smem:[#allocation36_spill]] %s3834_s11 }
   0x9   :  { %3858 = sst [smem:[#allocation37_spill]] %s3835_s12 }
   0xa   :  { %3859 = sst [smem:[#allocation38_spill]] %s3837_s14 }
   0xb   :  { %3860 = sst [smem:[#allocation39_spill]] %s3838_s15 }
   0xc   :  { %s3861_s12 = sld [smem:[#allocation29_spill]] }
  0x12   :  { %23 = dma.hbm_to_smem %s3861_s12, 16, %s3063_s24, [#allocation2] }
  0x13   :  { %25 = dma.hbm_to_smem %s3841_s1, 16, %s3064_s27, [#allocation2] }
  0x14   :  { %3001 = dma.done.wait [#allocation2], 32 }
  0x15   :  { %3002 = vsyncadd [#allocation2], 4294967264 }
  0x16   :  { %27 = sfence }
  0x17   :  { %28 = vsyncpa [#allocation6], 0 }
  0x18   :  { %30 = vsyncpa [#allocation6 + $0x1], 0 }
  0x19   :  { %31 = vsyncpa [#allocation9], 0 }
  0x1a   :  { %32 = vsyncpa [#allocation12], 0 }
  0x1b   :  { %33 = vsyncpa [#allocation15], 0 }
  0x1c   :  { %34 = vsyncpa [#allocation18], 0 }
  0x1d   :  { %35 = vsyncpa [#allocation7], 0 }
  0x1e   :  { %37 = vsyncpa [#allocation7 + $0x1], 0  ;;  %s3186_s0 = smov 0   ;;  %s3188_s30 = smov 0  }
  0x1f   :  { %s3190_s12 = smov 0   ;;  %s3192_s18 = smov 0  }
  0x20 LB: > { %3862 = sst [smem:[#allocation27_spill]] %s3037_s12  ;;  %s3065_s1 = smov [#allocation8]   ;;  %s3041_s18 = sphi %s3192_s18, %s3915_s18   ;;  %s3037_s12 = sphi %s3190_s12, %s3912_s12   ;;  %s3033_s30 = sphi %s3188_s30, %s3914_s30   ;;  %s3029_s0 = sphi %s3186_s0, %s3913_s0  }
  0x21   : > { %s419_s19 = sshll.u32 %s3065_s1, 4  ;;  %s3207_s2 = sadd.s32 4294967295, %s3041_s18   ;;  %s420_s19 = int_to_ptr.vmem [resolvable:$true] %s419_s19 }
  0x22   : > { %p2217_p0 = scmp.ge.s32.totalorder %s3041_s18, 1  ;;  %p3845_p1 = scmp.eq.s32.totalorder %s3207_s2, 0 }
  0x23   : > { %p404_p2 = scmp.lt.s32.totalorder %s3041_s18, 3  ;;  %s3066_s21 = smov [#allocation11]  }
  0x24   : > { %s448_s22 = sshll.u32 %s3066_s21, 4  ;;  %s3067_s24 = smov [#allocation14]   ;;  %s3225_s22 = int_to_ptr.vmem [resolvable:$true] %s448_s22 }
  0x25   : > { %p3212_p3 = pnand %p2217_p0, %p404_p2  ;;  %s474_s25 = sshll.u32 %s3067_s24, 4  ;;  %s3227_s25 = int_to_ptr.vmem [resolvable:$true] %s474_s25 }
  0x26   : > { %s2740_s27 = scalar_lea.vmem %s420_s19, 256  ;;  %p2748_p11 = scmp.lt.s32.totalorder %s420_s19, %s420_s19 }
  0x27   : > { %s3863_s20 = scalar_select %p3212_p3, 1, 0 }
  0x28   : > { %p2514_p5 = pneg %p3212_p3  ;;  %p2741_p8 = scmp.ne.s32.totalorder %s420_s19, %s2740_s27 }
  0x29   : > { %p2749_p12 = scmp.lt.s32.totalorder %s2740_s27, %s2740_s27 }
  0x2a   : > { %p3221_p6 = pnand %p2514_p5, %p3845_p1 }
  0x2b   : > { %p2750_p13 = por %p2749_p12, %p2748_p11 }
  0x2c   : > { %p3231_p7 = pneg %p3221_p6 }
  0x2e   : > { %p2743_p9 = pnand %p2741_p8, %p3231_p7 }
  0x30   : > { %p2744_p10 = pneg %p2743_p9 }
  0x32   : > { %p2751_p0 = pnand %p2750_p13, %p2744_p10 }
  0x34   : > { %2754 = shalt.err (!%p2751_p0)
}
  0x35   : > { %s3068_s28 = smov 64   ;;  %s3069_s29 = smov 4  }
  0x36   : > { %s3866_s6 = sld [smem:[#allocation32_spill]]  ;;  %s2766_s24 = scalar_lea.vmem %s3225_s22, 256 }
  0x37   : > { %p2767_p2 = scmp.ne.s32.totalorder %s3225_s22, %s2766_s24  ;;  %p2774_p9 = scmp.lt.s32.totalorder %s3225_s22, %s3225_s22 }
  0x38   : > { %p2775_p10 = scmp.lt.s32.totalorder %s2766_s24, %s2766_s24 }
  0x39   : > { %p2769_p5 = pnand %p2767_p2, %p3231_p7 }
  0x3a   : > { %p2776_p11 = por %p2775_p10, %p2774_p9 }
  0x3b   : > { %p2770_p8 = pneg %p2769_p5 }
  0x3c   : > { %2517 = dma.hbm_to_vmem [thread:$0]  (!%p3221_p6), %s3866_s6, 256, %s420_s19, [#allocation9], %s3068_s28, %s3068_s28, %s3069_s29  }
  0x3d   : > { %p2777_p12 = pnand %p2776_p11, %p2770_p8 }
  0x3f   : > { %2780 = shalt.err (!%p2777_p12)
}
  0x40   : > { %s3867_s9 = sld [smem:[#allocation34_spill]]  ;;  %s2792_s19 = scalar_lea.vmem %s3227_s25, 256 }
  0x41   : > { %p2793_p13 = scmp.ne.s32.totalorder %s3227_s25, %s2792_s19  ;;  %p2800_p5 = scmp.lt.s32.totalorder %s3227_s25, %s3227_s25 }
  0x42   : > { %p2801_p8 = scmp.lt.s32.totalorder %s2792_s19, %s2792_s19 }
  0x43   : > { %p2795_p0 = pnand %p2793_p13, %p3231_p7 }
  0x44   : > { %p2802_p9 = por %p2801_p8, %p2800_p5 }
  0x45   : > { %p2796_p2 = pneg %p2795_p0 }
  0x46   : > { %2523 = dma.hbm_to_vmem [thread:$0]  (!%p3221_p6), %s3867_s9, 256, %s3225_s22, [#allocation12], %s3068_s28, %s3068_s28, %s3069_s29  }
  0x47   : > { %p2803_p10 = pnand %p2802_p9, %p2796_p2 }
  0x49   : > { %2806 = shalt.err (!%p2803_p10)
}
  0x4a   : > { %s3868_s11 = sld [smem:[#allocation36_spill]]  ;;  %s3070_s22 = smov [#allocation10]  }
  0x4b   : > { %s435_s27 = sshll.u32 %s3070_s22, 4  ;;  %s3071_s1 = smov [#allocation13]   ;;  %s436_s27 = int_to_ptr.vmem [resolvable:$true] %s435_s27 }
  0x4c   : > { %s461_s6 = sshll.u32 %s3071_s1, 4  ;;  %s2818_s19 = scalar_lea.vmem %s436_s27, 256  ;;  %s462_s6 = int_to_ptr.vmem [resolvable:$true] %s461_s6 }
  0x4d   : > { %p2819_p11 = scmp.ne.s32.totalorder %s436_s27, %s2818_s19  ;;  %p2826_p0 = scmp.lt.s32.totalorder %s436_s27, %s436_s27 }
  0x4e   : > { %p2827_p2 = scmp.lt.s32.totalorder %s2818_s19, %s2818_s19 }
  0x4f   : > { %p2821_p12 = pnand %p2819_p11, %p3231_p7 }
  0x50   : > { %2529 = dma.hbm_to_vmem [thread:$0]  (!%p3221_p6), %s3868_s11, 256, %s3227_s25, [#allocation15], %s3068_s28, %s3068_s28, %s3069_s29  }
  0x51   : > { %p2822_p13 = pneg %p2821_p12  ;;  %p2828_p5 = por %p2827_p2, %p2826_p0 }
  0x53   : > { %p2829_p8 = pnand %p2828_p5, %p2822_p13 }
  0x55   : > { %2832 = shalt.err (!%p2829_p8)
}
  0x56   : > { %s3869_s8 = sld [smem:[#allocation33_spill]]  ;;  %s2844_s24 = scalar_lea.vmem %s462_s6, 256 }
  0x57   : > { %p2845_p9 = scmp.ne.s32.totalorder %s462_s6, %s2844_s24  ;;  %p2852_p12 = scmp.lt.s32.totalorder %s462_s6, %s462_s6 }
  0x58   : > { %p2853_p0 = scmp.lt.s32.totalorder %s2844_s24, %s2844_s24 }
  0x59   : > { %p2847_p10 = pnand %p2845_p9, %p3231_p7 }
  0x5a   : > { %p2854_p13 = por %p2853_p0, %p2852_p12 }
  0x5b   : > { %p2848_p11 = pneg %p2847_p10 }
  0x5c   : > { %2520 = dma.hbm_to_vmem [thread:$0]  (!%p3221_p6), %s3869_s8, 256, %s436_s27, [#allocation9], %s3068_s28, %s3068_s28, %s3069_s29  }
  0x5d   : > { %p2855_p2 = pnand %p2854_p13, %p2848_p11 }
  0x5f   : > { %2858 = shalt.err (!%p2855_p2)
}
  0x60   : > { %s3870_s10 = sld [smem:[#allocation35_spill]]  ;;  %s3072_s27 = smov [#allocation16]  }
  0x61   : > { %s493_s19 = sshll.u32 %s3072_s27, 4  ;;  %s494_s19 = int_to_ptr.vmem [resolvable:$true] %s493_s19 }
  0x62   : > { %s2870_s25 = scalar_lea.vmem %s494_s19, 48  ;;  %s2877_s21 = scalar_lea.vmem %s494_s19, 64 }
  0x63   : > { %p2871_p5 = scmp.ne.s32.totalorder %s494_s19, %s2870_s25  ;;  %p2878_p10 = scmp.lt.s32.totalorder %s494_s19, %s494_s19 }
  0x64   : > { %p2879_p11 = scmp.lt.s32.totalorder %s2877_s21, %s2870_s25 }
  0x65   : > { %p2873_p8 = pnand %p2871_p5, %p3231_p7 }
  0x66   : > { %2526 = dma.hbm_to_vmem [thread:$0]  (!%p3221_p6), %s3870_s10, 256, %s462_s6, [#allocation12], %s3068_s28, %s3068_s28, %s3069_s29  }
  0x67   : > { %p2874_p9 = pneg %p2873_p8  ;;  %p2880_p12 = por %p2879_p11, %p2878_p10 }
  0x69   : > { %p2881_p0 = pnand %p2880_p12, %p2874_p9 }
  0x6b   : > { %2884 = shalt.err (!%p2881_p0)
}
  0x6c   : > { %s3843_s24 = smov 16   ;;  %s3844_s22 = smov 1  }
  0x6d   : > { %s3871_s14 = sld [smem:[#allocation38_spill]]  ;;  %s3075_s29 = smov [#allocation17]  }
  0x6e   : > { %s507_s1 = sshll.u32 %s3075_s29, 4  ;;  %s508_s1 = int_to_ptr.vmem [resolvable:$true] %s507_s1 }
  0x6f   : > { %s2896_s27 = scalar_lea.vmem %s508_s1, 64  ;;  %p2904_p8 = scmp.lt.s32.totalorder %s508_s1, %s508_s1 }
  0x70   : > { %p2897_p13 = scmp.ne.s32.totalorder %s508_s1, %s2896_s27  ;;  %p2905_p9 = scmp.lt.s32.totalorder %s2896_s27, %s2896_s27 }
  0x72   : > { %p2899_p2 = pnand %p2897_p13, %p3231_p7  ;;  %p2906_p10 = por %p2905_p9, %p2904_p8 }
  0x73   : > { %2532 = dma.hbm_to_vmem [thread:$0]  (!%p3221_p6), %s3871_s14, 48, %s494_s19, [#allocation15], %s3843_s24, %s3843_s24, %s3844_s22  }
  0x74   : > { %p2900_p5 = pneg %p2899_p2 }
  0x76   : > { %p2907_p11 = pnand %p2906_p10, %p2900_p5 }
  0x78   : > { %2910 = shalt.err (!%p2907_p11)
}
  0x79   : > { %s3872_s15 = sld [smem:[#allocation39_spill]]  ;;  %s2216_s26 = sadd.s32 4294967294, %s3041_s18  }
  0x7a   : > { %s3314_s23 = sadd.s32 1, %s3041_s18   ;;  %s76_s19 = sadd.s32 1, %s3037_s12 }
  0x7b   : > { %s73_s6 = ssub.s32 %s3041_s18, %s3314_s23  ;;  %p83_p7 = scmp.ne.s32.totalorder %s3037_s12, %s3033_s30 }
  0x7c   : > { %p74_p12 = scmp.eq.s32.totalorder %s73_s6, 0  ;;  %p84_p0 = scmp.eq.s32.totalorder %s3041_s18, 0 }
  0x7d   : > { %p89_p13 = scmp.ne.s32.totalorder %s3033_s30, %s3029_s0  ;;  %p391_p2 = scmp.eq.s32.totalorder %s3207_s2, 1 }
  0x7e   : > { %s3326_s28 = scalar_select %p74_p12, %s3037_s12, %s76_s19  }
  0x7f   : > { %2535 = dma.hbm_to_vmem [thread:$0]  (!%p3221_p6), %s3872_s15, 64, %s508_s1, [#allocation18]  }
  0x80   : > { %3873 = sst [smem:[#allocation28_spill]] %s3326_s28  ;;  %p85_p5 = por %p84_p0, %p83_p7 }
  0x81   : > { %p3330_p8 = por %p3845_p1, %p89_p13  ;;  %p3334_p6 = por %p391_p2, %p83_p7 }
  0x82   : > { %p397_p9 = scmp.eq.s32.totalorder %s2216_s26, 1  ;;  %p2551_p10 = scmp.lt.s32.totalorder %s3041_s18, 2 }
  0x83   : > { %s3874_s29 = scalar_select %p3330_p8, 1, 0 }
  0x84   : > { %s3875_s1 = scalar_select %p3334_p6, 1, 0 }
  0x85   : > { %s531_s27 = sand.u32 1, %s3037_s12   ;;  %p3340_p11 = por %p397_p9, %p89_p13 }
  0x86   : > { %s2226_s21 = sshll.u32 %s531_s27, 1  ;;  %s2314_s19 = sshll.u32 %s3041_s18, 5 }
  0x87   : > { %s3876_s25 = scalar_select %p3340_p11, 1, 0 }
  0x88   : > { %s3877_s3 = sld [smem:[#allocation31_spill]]  ;;  %s535_s8 = scalar_lea.vmem [#allocation5], %s2226_s21 }
  0x89   : > { %s542_s9 = sshll.u32 %s535_s8, 4  ;;  %p3350_p7 = pnand %p2551_p10, %p85_p5  ;;  %s3354_s9 = int_to_ptr.vmem [resolvable:$true] %s542_s9 }
  0x8a   : > { %s3356_s10 = scalar_lea.sflag [#allocation6], %s531_s27 }
  0x8b   : > { %p2913_p0 = pneg %p3350_p7 }
  0x8e   : > { %s3348_s22 = scalar_lea.hbm %s3877_s3, %s2314_s19  ;;  %s2916_s21 = scalar_lea.hbm %s3877_s3, 64 }
  0x8f   : > { %s2911_s11 = scalar_lea.hbm %s3348_s22, 32  ;;  %p2917_p5 = scmp.lt.s32.totalorder %s3348_s22, %s3877_s3 }
  0x90   : > { %p2912_p12 = scmp.ne.s32.totalorder %s3348_s22, %s2911_s11  ;;  %p2918_p9 = scmp.lt.s32.totalorder %s2916_s21, %s2911_s11 }
  0x92   : > { %p2914_p13 = pnand %p2913_p0, %p2912_p12  ;;  %p2919_p10 = por %p2918_p9, %p2917_p5 }
  0x94   : > { %p2915_p2 = pneg %p2914_p13 }
  0x96   : > { %p2920_p4 = pnand %p2919_p10, %p2915_p2 }
  0x98   : > { %2923 = shalt.err (!%p2920_p4)
}
  0x99   : > { %s2924_s27 = scalar_lea.vmem %s3354_s9, 32  ;;  %s3076_s14 = smov [#allocation5]  }
  0x9a   : > { %p2925_p1 = scmp.ne.s32.totalorder %s3354_s9, %s2924_s27  ;;  %s2929_s15 = sshll.u32 %s3076_s14, 4  ;;  %s2930_s15 = int_to_ptr.vmem [resolvable:$false] %s2929_s15 }
  0x9b   : > { %s2931_s24 = scalar_lea.vmem %s2930_s15, 64  ;;  %p2932_p13 = scmp.lt.s32.totalorder %s3354_s9, %s2930_s15 }
  0x9c   : > { %p2927_p11 = pnand %p2925_p1, %p2913_p0  ;;  %p2933_p6 = scmp.lt.s32.totalorder %s2931_s24, %s2924_s27 }
  0x9e   : > { %p2928_p12 = pneg %p2927_p11  ;;  %p2934_p8 = por %p2933_p6, %p2932_p13 }
  0xa0   : > { %p2935_p3 = pnand %p2934_p8, %p2928_p12 }
  0xa2   : > { %2938 = shalt.err (!%p2935_p3)
}
  0xa3   : > { %s3879_s11 = smov 1   ;;  %s3880_s19 = smov 16  }
  0xa4   : > { %2539 = dma.hbm_to_vmem [thread:$0]  (!%p3350_p7), %s3348_s22, 32, %s3354_s9, %s3356_s10, %s3880_s19, %s3880_s19, %s3879_s11  }
  0xa5   : > { %p3881_p1 = scmp.ne.s32.totalorder %s3863_s20, 0 }
  0xa6   : > { %s3383_s14 = sand.u32 (!%p3881_p1), 1, %s3033_s30   ;;  %p3882_p3 = scmp.ne.s32.totalorder (!%p3881_p1), %s3874_s29, 0 }
  0xa7   : > { %563 = sbr.rel (%p3881_p1) target bundleno = 3213 (0xc8d), region = 80  ;;  %s2230_s15 = sshll.u32 (!%p3881_p1), %s3383_s14, 1 }
  0xa8   : > { %s566_s21 = scalar_lea.sflag (!%p3881_p1), [#allocation6], %s3383_s14  ;;  %s3387_s8 = scalar_lea.vmem (!%p3881_p1), [#allocation5], %s2230_s15 }
  0xac   : > { %3004 = dma.done.wait (%p3882_p3), %s566_s21, 32  }
  0xad   : > { %3006 = vsyncadd (%p3882_p3), %s566_s21, 4294967264  ;;  %p3883_p4 = scmp.eq.s32.totalorder %s3207_s2, 0 }
  0xaf   : > { %3008 = dma.done.wait (%p3883_p4), [#allocation9], 512   ;;  %p3884_p8 = pmov %p3883_p4 }
  0xb0   : > { %p3885_p6 = pmov %p3883_p4 }
  0xb1   : > { %3010 = vsyncadd (%p3884_p8), [#allocation9], 4294966784 }
  0xb2   : > { %3012 = dma.done.wait (%p3885_p6), [#allocation12], 512   ;;  %p3886_p11 = pmov %p3883_p4 }
  0xb3   : > { %p3887_p7 = pmov %p3883_p4 }
  0xb4   : > { %3014 = vsyncadd (%p3886_p11), [#allocation12], 4294966784 }
  0xb5   : > { %3016 = dma.done.wait (%p3887_p7), [#allocation15], 304   ;;  %p3888_p0 = pmov %p3883_p4 }
  0xb7   : > { %3018 = vsyncadd (%p3888_p0), [#allocation15], 4294966992  ;;  %p3889_p2 = pmov %p3888_p0 }
  0xb8   : > { %p3890_p5 = pmov %p3888_p0 }
  0xb9   : > { %3020 = dma.done.wait (%p3889_p2), [#allocation18], 64  }
  0xba   : > { %3022 = vsyncadd (%p3890_p5), [#allocation18], 4294967232  ;;  %s3410_s9 = sshll.u32 %s3207_s2, 1  ;;  %s3891_s6 = sld [smem:[#allocation30_spill]]  ;;  %v3423_v0 = vld [vmem:[%s3839_s16 + $0x1] ss:$0 sm:$0xff]   ;;  %v903_v46 = vlaneseq }
  0xbb   : > { %p656_p9 = scmp.lt.s32.totalorder %s3410_s9, 3  ;;  %v3428_v1 = vld [vmem:[%s3839_s16 + $0x3] ss:$0 sm:$0xff]  ;;  %v3433_v2 = vld [vmem:[%s3839_s16 + $0x4] ss:$0 sm:$0xff]  ;;  %vm693_vm0 = vcmask 523264  }
  0xbc   : > { %v3438_v3 = vld [vmem:[%s3839_s16 + $0x5] ss:$0 sm:$0xff]  ;;  %v3443_v4 = vld [vmem:[%s3839_s16 + $0x6] sm:$0x1]  ;;  %v3445_v5 = vld [vmem:[#allocation17 + $0x1] ss:$0 sm:$0xff] }
  0xbd   : > { %s657_s10 = scalar_select %p656_p9, %s3410_s9, 3  ;;  %v3447_v6 = vld [vmem:[#allocation17 + $0x2] ss:$0 sm:$0xff]  ;;  %v2660_v22 = vld [vmem:[%s3828_s5 + $0x10] sm:$0xff]   ;;  %v2661_v23 = vld [vmem:[%s3828_s5 + $0x8] sm:$0xff]   ;;  %v3077_v45 = vmov 0.0  }
  0xbe   : > { %s2238_s3 = sshll.u32 %s3383_s14, 5  ;;  %v2659_v21 = vld [vmem:[%s3828_s5 + $0x18] sm:$0xff]   ;;  %v2662_v24 = vld [vmem:[%s3828_s5] sm:$0xff]   ;;  %s894_s21 = sld [smem:[#allocation4 + %s3410_s9]]  ;;  %v3078_v47 = vmov 0   ;;  %v3478_v48 = vshrl.u32 %v903_v46, 7 }
  0xbf   : > { %s2315_s20 = sshll.u32 %s657_s10, 4  ;;  %s2243_s22 = sshll.u32 %s657_s10, 3  ;;  %2370 = vmatprep.subr.bf16.mxu0 %v2659_v21  ;;  %v2663_v43 = vld [vmem:[#allocation10 + $0x8] sm:$0xff]   ;;  %v2664_v44 = vld [vmem:[#allocation10] sm:$0xff]   ;;  %2658 = vset.pattern.permute.xlu1 %v3078_v47  ;;  %vm911_vm1 = vcmask 130048   ;;  %vm901_vm6 = vcmask 1040384  }
  0xc0   : > { %s660_s27 = scalar_lea.vmem %s3891_s6, %s2315_s20  ;;  %s667_s19 = scalar_lea.vmem %s3827_s4, %s2243_s22  ;;  %2371 = vmatpush3.bf16.msra.mxu0 %v2659_v21  ;;  %2382 = vmatprep.subr.bf16.mxu1 %v2663_v43  ;;  %v918_v49 = vadd.s32 8, %v3478_v48  ;;  %v919_v50 = vadd.s32 24, %v3478_v48  ;;  %v688_v62 = vld [vmem:[%s3387_s8 + $0x1] sm:$0x1]  ;;  %vm837_vm7 = vcmask 261120   ;;  %vm983_vm8 = vcmask 1041409  }
  0xc1   : > { %v683_v7 = vld [vmem:[%s660_s27 + $0x10] sm:$0xff]  ;;  %v3449_v8 = vld [vmem:[%s667_s19] sm:$0xff]  ;;  %v3451_v9 = vld [vmem:[%s667_s19 + $0x8] sm:$0xff]  ;;  %2372 = vmatprep.subr.bf16.mxu0 %v2660_v22  ;;  %2383 = vmatpush3.bf16.msra.mxu1 %v2663_v43  ;;  %s895_s10 = sadd.s32 1, %s3410_s9  ;;  %s897_s29 = sld [smem:[#allocation3 + %s3410_s9]]  ;;  %vm3079_vm9 = vmmov 0  }
  0xc2   : > { %v691_v10 = vmul.f32 %v683_v7, %v683_v7  ;;  %v681_v11 = vld [vmem:[%s660_s27] sm:$0xff]  ;;  %v684_v12 = vld [vmem:[%s660_s27 + $0x18] sm:$0xff]  ;;  %v682_v15 = vld [vmem:[%s660_s27 + $0x8] sm:$0xff]  ;;  %2384 = vmatprep.subr.bf16.mxu1 %v2664_v44  ;;  %s896_s20 = sld [smem:[#allocation4 + %s895_s10]]  ;;  %2657 = vset.pattern.permute.xlu0 %v3078_v47  ;;  %v2258_v53 = vadd.s32 4294967280, %v919_v50  ;;  %s3559_s28 = scalar_lea.vmem [#allocation19], %s2238_s3 }
  0xc3   : > { %v689_v13 = vmul.f32 %v681_v11, %v681_v11  ;;  %v692_v14 = vmul.f32 %v684_v12, %v684_v12  ;;  %v690_v17 = vmul.f32 %v682_v15, %v682_v15  ;;  %s898_s22 = sld [smem:[#allocation3 + %s895_s10]]  ;;  %s3573_s6 = smov 0  }
  0xc4   : > { %v700_v16 = vsel %vm693_vm0, %v691_v10, 0.0  ;;  %2373 = vmatpush3.bf16.msra.mxu0 %v2660_v22  ;;  %v909_v51 = vstv %s894_s21  ;;  %v2665_v22 = vld [vmem:[#allocation8 + $0x8] sm:$0xff]  }
  0xc5   : > { %701 = vadd.xlane.f32.xlu1 %v700_v16  ;;  %v694_v18 = vsel %vm693_vm0, %v689_v13, 0.0  ;;  %v703_v19 = vsel %vm693_vm0, %v692_v14, 0.0  ;;  %v697_v20 = vsel %vm693_vm0, %v690_v17, 0.0  ;;  %2374 = vmatprep.subr.bf16.mxu0 %v2661_v23  ;;  %vm922_vm2 = vcmp.ge.s32.totalorder %v918_v49, %v909_v51  ;;  %v2244_v13 = vld [vmem:[%s3839_s16] ss:$0 sm:$0xff] }
  0xc6   : > { %695 = vadd.xlane.f32.xlu0 %v694_v18  ;;  %2385 = vmatpush3.bf16.msra.mxu1 %v2664_v44  ;;  %vm921_vm3 = vcmp.ge.s32.totalorder %v3478_v48, %v909_v51  ;;  %v927_v54 = vsel %vm922_vm2, 1, %v3078_v47 }
  0xc7   : > { %2390 = vmatprep.subr.bf16.mxu1 %v3077_v45  ;;  %v926_v57 = vsel %vm921_vm3, 1, %v3078_v47  ;;  %v899_v59 = vstv %s897_s29 }
  0xc8   : > { %2375 = vmatpush3.bf16.msra.mxu0 %v2661_v23  ;;  %v910_v52 = vstv %s896_s20 }
  0xc9   : > { %704 = vadd.xlane.f32.xlu1 %v703_v19  ;;  %2376 = vmatprep.subr.bf16.mxu0 %v2662_v24  ;;  %v912_v55 = vsel %vm911_vm1, %v909_v51, %v910_v52  ;;  %vm923_vm4 = vcmp.ge.s32.totalorder %v3478_v48, %v910_v52  ;;  %vm924_vm5 = vcmp.ge.s32.totalorder %v2258_v53, %v910_v52  ;;  %v900_v60 = vstv %s898_s22 }
  0xca   : > { %698 = vadd.xlane.f32.xlu0 %v697_v20  ;;  %v928_v56 = vsel %vm923_vm4, 1, %v3078_v47  ;;  %v929_v58 = vsel %vm924_vm5, 1, %v3078_v47  ;;  %v902_v61 = vsel %vm901_vm6, %v899_v59, %v900_v60 }
  0xcc   : > { %2377 = vmatpush3.bf16.msra.mxu0 %v2662_v24 }
  0xda   : > { %934 = vperm.xlu1 %2658, %v927_v54  }
  0xde   : > { %937 = vperm.xlu1 %2658, %v928_v56   ;;  %v2261_v56 = vld [vmem:[%s3839_s16 + $0x2] ss:$0 sm:$0xff] }
  0xe0   : > { %931 = vperm.xlu0 %2657, %v926_v57  }
  0xe2   : > { %940 = vperm.xlu1 %2658, %v929_v58  }
  0xe6   : > { %906 = vperm.xlu1 %2658, %v902_v61  }
 0x14e   : > { %v702_v25 = vpop.xlane.xlu1 %701 }
 0x14f   : > { %v708_v26 = vmax.f32 %v702_v25, 1e-24  ;;  %v696_v27 = vpop.xlane.xlu0 %695 }
 0x150   : > { %v706_v28 = vmax.f32 %v696_v27, 1e-24 }
 0x151   : > { %2667 = vrsqrt.f32 %v708_v26  ;;  %v2666_v26 = vld [vmem:[#allocation8] sm:$0xff]  }
 0x152   : > { %v705_v29 = vpop.xlane.xlu1 %704  ;;  %2669 = vrsqrt.f32 %v706_v28 }
 0x153   : > { %v709_v30 = vmax.f32 %v705_v29, 1e-24  ;;  %v699_v31 = vpop.xlane.xlu0 %698  ;;  %v3080_v29 = vmov 1  }
 0x154   : > { %v707_v32 = vmax.f32 %v699_v31, 1e-24 }
 0x155   : > { %2671 = vrsqrt.f32 %v709_v30  ;;  %v913_v30 = vsel %vm911_vm1, 0, %v3080_v29 }
 0x156   : > { %2673 = vrsqrt.f32 %v707_v32  ;;  %v914_v31 = vmul.u32 16, %v913_v30  ;;  %v3509_v32 = vand.u32 127, %v903_v46 }
 0x15e   : > { %v2668_v33 = vpop.eup %2667 }
 0x15f   : > { %v2670_v34 = vpop.eup %2669  ;;  %v716_v37 = vmul.f32 %v2668_v33, %v683_v7  ;;  %v969_v7 = vpack.c.bf16 %v688_v62, %v688_v62  ;;  %v3512_v33 = vsub.s32 0, %v3478_v48 }
 0x160   : > { %v714_v39 = vmul.f32 %v2670_v34, %v681_v11  ;;  %v687_v11 = vld [vmem:[%s3387_s8] sm:$0x1]  ;;  %v935_v34 = vpop.permute.xlu1 %934 }
 0x161   : > { %v968_v14 = vpack.c.bf16 %v687_v11, %v687_v11  ;;  %vm943_vm13 = vcmp.eq.s32.totalorder %v935_v34, 1 }
 0x162   : > { %v2672_v35 = vpop.eup %2671 }
 0x163   : > { %v2674_v36 = vpop.eup %2673  ;;  %v717_v38 = vmul.f32 %v2672_v35, %v684_v12  ;;  %v980_v23 = vunpack.c.l.b16 %v968_v14  ;;  %v915_v35 = vsub.s32 %v3509_v32, %v914_v31  ;;  %v3900_v14 = vmov %v3423_v0 }
 0x164   : > { %v715_v40 = vmul.f32 %v2674_v36, %v682_v15  ;;  %v981_v15 = vunpack.c.l.b16 %v969_v7  ;;  %v3516_v36 = vrot.slane %v913_v30, %v3512_v33 }
 0x165   : > { %v719_v41 = vpack.c.bf16 %v717_v38, %v716_v37  ;;  %vm925_vm10 = vcmp.ge.s32.totalorder %v915_v35, %v912_v55  ;;  %v938_v37 = vpop.permute.xlu1 %937 }
 0x166   : > { %v718_v42 = vpack.c.bf16 %v715_v40, %v714_v39  ;;  %v982_v24 = vrot.slane %v981_v15, 7  ;;  %vm2259_vm11 = vcmp.ne.s32.totalorder %v3516_v36, 0  ;;  %vm2260_vm12 = vcmp.ne.s32.totalorder %v3516_v36, 1 }
 0x167   : > { %v946_v38 = vsel %vm925_vm10, 1, %v3078_v47  ;;  %v2252_v47 = vld [vmem:[#allocation17] ss:$0 sm:$0xff]  ;;  %v3901_v15 = vmov %v3423_v0 }
 0x168   : > { %2378 = vmatprep.mubr.msk.bf16.mxu0 %vm693_vm0, %v718_v42  ;;  %v984_v27 = vsel %vm983_vm8, %v982_v24, %v980_v23  ;;  %v950_v39 = vrot.slane %v946_v38, %v3512_v33 }
 0x169   : > { %2379 = vmatmul.mubr.msk.bf16.vlgmr.msra.gmra.mxu0 %vm693_vm0, %v719_v41  ;;  %v985_v28 = vpack.c.b16 %v984_v27, %v984_v27  ;;  %v941_v40 = vpop.permute.xlu1 %940  ;;  %vm944_vm0 = vcmp.eq.s32.totalorder %v938_v37, 1 }
 0x16a   : > { %vm951_vm14 = vcmp.eq.s32.totalorder %v950_v39, 1  ;;  %vm945_vm1 = vcmp.eq.s32.totalorder %v941_v40, 1 }
 0x16b   : > { %vm3522_vm15 = vmor %vm943_vm13, %vm951_vm14 }
 0x16c   : > { %vm3530_vm3 = vmor %vm944_vm0, %vm951_vm14 }
 0x16d   : > { %v3526_v42 = vpop.permute.xlu1 %906  ;;  %vm3534_vm4 = vmor %vm945_vm1, %vm951_vm14 }
 0x16e   : > { %vm908_vm2 = vcmp.ge.s32.totalorder %v3509_v32, %v3526_v42 }
 0x229   : > { %v2380_v63 = vpop.f32.mrf.mxu0 }
 0x22a   : > { %v805_v20 = vadd.f32 %v2380_v63, %v2244_v13 }
 0x22b   : > { %v796_v10 = vpop.f32.mrf.mxu0 }
 0x22c   : > { %v797_v18 = vadd.f32 %v2244_v13, %v796_v10 }
 0x22d   : > { %v2381_v12 = vpop.f32.mrf.mxu0 }
 0x22e   : > { %v808_v16 = vadd.f32 %v2381_v12, %v2244_v13 }
 0x22f   : > { %v799_v17 = vpop.f32.mrf.mxu0 }
 0x230   : > { %v800_v19 = vadd.f32 %v2244_v13, %v799_v17  ;;  %v3497_v25 = vpack.c.bf16 %v808_v16, %v805_v20  ;;  %v3902_v16 = vmov %v3423_v0 }
 0x232   : > { %v3495_v21 = vpack.c.bf16 %v800_v19, %v797_v18 }
 0x234   : > { %2386 = vmatprep.mubr.msk.bf16.mxu1 %vm837_vm7, %v3495_v21 }
 0x235   : > { %2387 = vmatmul.mubr.msk.bf16.vlgmr.msra.gmra.mxu1 %vm837_vm7, %v3497_v25 }
 0x236   : > { %2391 = vmatpush3.bf16.msra.mxu1 %v2665_v22  ;;  %2394 = vmatprep.mubr.msk.bf16.mxu1 %vm3079_vm9, %v3077_v45 }
 0x237   : > { %2392 = vmatprep.subr.bf16.mxu1 %v3077_v45  ;;  %v932_v45 = vpop.permute.xlu0 %931 }
 0x238   : > { %vm942_vm5 = vcmp.eq.s32.totalorder %v932_v45, 1 }
 0x239   : > { %vm3538_vm6 = vmor %vm942_vm5, %vm951_vm14 }
 0x23a   : > { %2393 = vmatpush3.bf16.msra.mxu1 %v2666_v26 }
 0x23d   : > { %2395 = vmatmul.mubr.msk.bf16.vlgmr.msra.gmra.mxu1 %vm837_vm7, %v985_v28 }
 0x2f5   : > { %v2388_v49 = vpop.f32.mrf.mxu1 }
 0x2f6   : > { %v3542_v50 = vadd.f32 %v2388_v49, %v2252_v47 }
 0x2f7   : > { %v878_v51 = vpop.f32.mrf.mxu1 }
 0x2f8   : > { %v3544_v52 = vadd.f32 %v2252_v47, %v878_v51 }
 0x2f9   : > { %v2389_v53 = vpop.f32.mrf.mxu1 }
 0x2fa   : > { %v3546_v54 = vadd.f32 %v2389_v53, %v2252_v47 }
 0x2fb   : > { %v881_v55 = vpop.f32.mrf.mxu1 }
 0x2fc   : > { %v3551_v57 = vadd.f32 %v2252_v47, %v881_v55 }
 0x2fd   : > { %v1035_v58 = vpop.f32.mrf.mxu1 }
 0x2fe   : > { %v1036_v59 = vadd.f32 %v2261_v56, %v1035_v58 }
 0x2ff   : > { %v2396_v60 = vpop.f32.mrf.mxu1 }
 0x300   : > { %v1042_v61 = vmin.f32 %v1036_v59, 0.0  ;;  %vm1041_vm9 = vcmp.gt.f32.partialorder %v1036_v59, 0.0 }
 0x301   : > { %v1038_v62 = vpop.f32.mrf.mxu1 }
 0x302   : > { %v1043_v63 = vmul.f32 1.442695, %v1042_v61 }
 0x303   : > { %v2397_v7 = vpop.f32.mrf.mxu1 }
 0x304   : > { %2675 = vpow2.f32 %v1043_v63 }
 0x311   : > { %v2676_v10 = vpop.eup %2675 }
 0x312   : > { %v2265_v11 = vadd.f32 -1.0, %v2676_v10 }
 0x314   : > { %v3553_v12 = vsel %vm1041_vm9, %v1036_v59, %v2265_v11 }
 0x315   : > { %v1047_v13 = vpack.c.bf16 %v3553_v12, %v3553_v12 }
 0x316 LB: >> { %2480 = vpush %v3443_v4  ;;  %v3081_v17 = vmov 0.0   ;;  %vm3082_vm10 = vmmov 0   ;;  %s2316_s3 = sshll.u32 %s3061_s6, 4  ;;  %v3083_v20 = vmov 1966171168   ;;  %s1065_s19 = scalar_lea.vmem [#allocation16], %s3061_s6  ;;  %v1184_v58 = vsub.s32 %v3509_v32, %v3478_v48  ;;  %s3061_s6 = sphi %s3573_s6, %s1053_s6   ;;  %v3057_v0 = vphi %v3423_v0, %v3907_v0   ;;  %v3053_v16 = vphi %v3902_v16, %v3906_v16   ;;  %v3049_v15 = vphi %v3901_v15, %v3905_v15   ;;  %v3045_v14 = vphi %v3900_v14, %v3904_v14  }
 0x317   : >> { %2398 = vmatprep.subr.bf16.mxu0 %v3081_v17  ;;  %2402 = vmatprep.mubr.msk.bf16.mxu0 %vm3082_vm10, %v3081_v17  ;;  %s1060_s11 = scalar_lea.vmem %s3830_s7, %s2316_s3  ;;  %v1135_v22 = vunpack.c.l.s4 %v3083_v20  ;;  %v2268_v24 = vld [vmem:[%s1065_s19] ss:$0 sm:$0xff]  ;;  %vm1193_vm13 = vcmask 58368   ;;  %v3621_v20 = vpack.c.bf16 %v3053_v16, %v3057_v0  ;;  %s3084_s21 = smov 32  }
 0x318   : >> { %2406 = vmatprep.subr.bf16.mxu1 %v3081_v17  ;;  %2410 = vmatprep.mubr.msk.bf16.mxu1 %vm3082_vm10, %v3081_v17  ;;  %v2677_v18 = vld [vmem:[%s1060_s11 + $0x8] sm:$0xff]   ;;  %v2678_v19 = vld [vmem:[%s1060_s11] sm:$0xff]   ;;  %s3085_s10 = smov 64   ;;  %s3086_s20 = smov 96  }
 0x319   : >> { %2399 = vmatpush3.bf16.msra.mxu0 %v2677_v18  ;;  %v1136_v23 = vunpack.c.0.s8 %v1135_v22  ;;  %v2679_v18 = vld [vmem:[#allocation11 + $0x8] sm:$0xff]   ;;  %v3627_v22 = vpack.c.bf16 %v3045_v14, %v3049_v15  ;;  %s3903_s9 = sld [smem:[#allocation37_spill]]  ;;  %s1053_s6 = sadd.s32 1, %s3061_s6  }
 0x31a   : >> { %2400 = vmatprep.subr.bf16.mxu0 %v3081_v17  ;;  %p1050_p10 = scmp.ge.s32.totalorder %s1053_s6, 3  }
 0x31b   : >> { %v3602_v28 = vsub.s32 %v1136_v23, %v3478_v48  ;;  %s2318_s22 = sshll.u32 (%p1050_p10), %s3207_s2, 9  ;;  %s2032_s26 = sshll.u32 (%p1050_p10), %s3559_s28, 4  ;;  %s3776_s26 = int_to_ptr.vmem [resolvable:$true] %s2032_s26 }
 0x31c   : > { %s3774_s3 = scalar_lea.hbm (%p1050_p10), %s3840_s17, %s2318_s22  ;;  %s2018_s2 = scalar_lea.sflag (%p1050_p10), [#allocation7], %s3383_s14 }
 0x31d   : >> { %2401 = vmatpush3.bf16.msra.mxu0 %v2678_v19  ;;  %v2680_v19 = vld [vmem:[#allocation11] sm:$0xff]   ;;  %s2939_s27 = scalar_lea.vmem (%p1050_p10), %s3776_s26, 512  ;;  %p3908_p13 = scmp.ne.s32.totalorder (%p1050_p10), %s3875_s1, 0 }
 0x31e   : >> { %2414 = vmatprep.subr.bf16.mxu0 %v2679_v18  ;;  %p2940_p12 = scmp.ne.s32.totalorder (%p1050_p10), %s3776_s26, %s2939_s27  ;;  %s3087_s24 = smov (%p1050_p10), [#allocation19]  }
 0x31f   : > { %s2943_s11 = sshll.u32 (%p1050_p10), %s3087_s24, 4  ;;  %s2944_s11 = int_to_ptr.vmem [resolvable:$false] %s2943_s11 }
 0x320   : >> { %2403 = vmatmul.mubr.msk.bf16.vlgmr.msra.gmra.mxu0 %vm837_vm7, %v1047_v13  ;;  %p2941_p1 = pnand (%p1050_p10), %p2940_p12, %p3908_p13  ;;  %s2945_s19 = scalar_lea.vmem (%p1050_p10), %s2944_s11, 1024 }
 0x321   : >> { %2415 = vmatpush3.bf16.msra.mxu0 %v2679_v18  ;;  %2418 = vmatprep.mubr.msk.bf16.mxu0 %vm837_vm7, %v3621_v20  ;;  %p2946_p4 = scmp.lt.s32.totalorder (%p1050_p10), %s3776_s26, %s2944_s11  ;;  %p2947_p8 = scmp.lt.s32.totalorder (%p1050_p10), %s2945_s19, %s2939_s27 }
 0x322   : >> { %2416 = vmatprep.subr.bf16.mxu0 %v2680_v19  ;;  %p2942_p3 = pneg (%p1050_p10), %p2941_p1 }
 0x323   : > { %p2948_p6 = por (%p1050_p10), %p2947_p8, %p2946_p4 }
 0x325   : >> { %2417 = vmatpush3.bf16.msra.mxu0 %v2680_v19  ;;  %p2949_p11 = pnand (%p1050_p10), %p2948_p6, %p2942_p3 }
 0x328   : >> { %2419 = vmatmul.mubr.msk.bf16.vlgmr.msra.gmra.mxu0 %vm837_vm7, %v3627_v22 }
 0x347   : >> { %s2481_s15 = spop %2480 }
 0x348   : >> { %v1176_v55 = vstv %s2481_s15 }
 0x3e0   : >> { %v1122_v26 = vpop.f32.mrf.mxu0 }
 0x3e1   : >> { %v1123_v27 = vadd.f32 %v2268_v24, %v1122_v26 }
 0x3e2   : >> { %v2404_v29 = vpop.f32.mrf.mxu0 }
 0x3e3   : >> { %v1132_v30 = vmul.f32 %v3438_v3, %v1123_v27  ;;  %v1214_v29 = vsub.s32 1, %v3478_v48 }
 0x3e4   : >> { %v1125_v31 = vpop.f32.mrf.mxu0 }
 0x3e5   : >> { %v1140_v34 = vrot.slane %v1132_v30, %v3602_v28 }
 0x3e6   : >> { %v2405_v35 = vpop.f32.mrf.mxu0 }
 0x3e7   : >> { %v1148_v37 = vrot.slane %v1140_v34, %v3602_v28  ;;  %v1141_v38 = vcombine.high %v1140_v34, %v1140_v34  ;;  %v2681_v34 = vld [vmem:[#allocation14 + $0x8] sm:$0xff]   ;;  %v2682_v35 = vld [vmem:[#allocation14] sm:$0xff]  }
 0x3e8   : >> { %2407 = vmatpush3.bf16.msra.mxu1 %v2681_v34 }
 0x3e9   : >> { %v1159_v39 = vrot.slane %v1148_v37, %v3512_v33  ;;  %v1155_v40 = vrot.slane %v1141_v38, %v3602_v28  ;;  %2408 = vmatprep.subr.bf16.mxu1 %v3081_v17  ;;  %v2683_v37 = vld [vmem:[#allocation13 + $0x8] sm:$0xff]   ;;  %v2420_v38 = vpop.f32.mrf.mxu0 }
 0x3eb   : >> { %v1166_v45 = vmul.f32 %v1159_v39, %v3449_v8  ;;  %v1163_v47 = vrot.slane %v1155_v40, %v3512_v33 }
 0x3ec   : >> { %2409 = vmatpush3.bf16.msra.mxu1 %v2682_v35 }
 0x3ed   : >> { %v1168_v49 = vsel %vm837_vm7, %v1166_v45, 0.0  ;;  %v1167_v51 = vmul.f32 %v1163_v47, %v3451_v9  ;;  %2422 = vmatprep.subr.bf16.mxu1 %v2683_v37 }
 0x3ee   : >> { %1169 = vadd.xlane.f32.xlu0 %v1168_v49  ;;  %v1368_v49 = vpop.f32.mrf.mxu0 }
 0x3ef   : >> { %v1171_v53 = vsel %vm837_vm7, %v1167_v51, 0.0  ;;  %v1369_v18 = vadd.f32 %v3445_v5, %v1368_v49 }
 0x3f2   : >> { %1172 = vadd.xlane.f32.xlu0 %v1171_v53 }
 0x477   : >> { %v1170_v56 = vpop.xlane.xlu0 %1169 }
 0x478   : >> { %v1178_v59 = vadd.f32 %v1176_v55, %v1170_v56 }
 0x47a   : >> { %v1185_v62 = vrot.slane %v1178_v59, %v1184_v58 }
 0x47b   : >> { %v1173_v60 = vpop.xlane.xlu0 %1172 }
 0x47c   : >> { %v1179_v61 = vadd.f32 %v1176_v55, %v1173_v60 }
 0x47e   : >> { %v1189_v63 = vrot.slane %v1179_v61, %v1184_v58  ;;  %v2421_v58 = vpop.f32.mrf.mxu0 }
 0x47f   : >> { %v1380_v34 = vadd.f32 %v2421_v58, %v3445_v5 }
 0x480   : >> { %v1190_v7 = vsel %vm983_vm8, %v1189_v63, %v1185_v62  ;;  %v1371_v62 = vpop.f32.mrf.mxu0 }
 0x481   : >> { %v1192_v10 = vsel %vm908_vm2, -1e+30, %v1190_v7  ;;  %v1372_v19 = vadd.f32 %v3445_v5, %v1371_v62 }
 0x482   : >> { %v1194_v11 = vsel %vm1193_vm13, %v1192_v10, -inf }
 0x483   : >> { %1195 = vmax.xlane.f32.xlu1 %v1194_v11 }
 0x50c   : >> { %v1196_v23 = vpop.xlane.xlu1 %1195 }
 0x50d   : >> { %v1197_v24 = vsub.f32 %v1192_v10, %v1196_v23 }
 0x50f   : >> { %v1198_v26 = vmul.f32 1.442695, %v1197_v24 }
 0x511   : >> { %2689 = vpow2.f32 %v1198_v26 }
 0x51e   : >> { %v2690_v27 = vpop.eup %2689 }
 0x51f   : >> { %v1200_v0 = vsel %vm1193_vm13, %v2690_v27, 0.0 }
 0x520   : >> { %1201 = vadd.xlane.f32.xlu1 %v1200_v0  ;;  %v1383_v0 = vmul.f32 %v1369_v18, %v3544_v52 }
 0x5a9   : >> { %v1202_v16 = vpop.xlane.xlu1 %1201 }
 0x5aa   : >> { %2691 = vrcp.f32 %v1202_v16  ;;  %v1384_v16 = vmul.f32 %v1372_v19, %v3551_v57 }
 0x5b7   : >> { %v2692_v30 = vpop.eup %2691 }
 0x5b8   : >> { %v1204_v31 = vmul.f32 %v2692_v30, %v2690_v27 }
 0x5ba   : >> { %v1215_v14 = vrot.slane %v1204_v31, %v1214_v29  ;;  %v1208_v15 = vrot.slane %v1204_v31, %v3512_v33 }
 0x5bc   : >> { %1217 = vbcast.lane.b32.xlu1 %v1215_v14, 256  ;;  %1210 = vbcast.lane.b32.xlu0 %v1208_v15, 256  ;;  %v1391_v14 = vpack.c.bf16 %v1384_v16, %v1383_v0  ;;  %v1377_v15 = vadd.f32 %v2420_v38, %v3445_v5  ;;  %v1388_v16 = vadd.f32 %v1372_v19, %v3551_v57 }
 0x62e   : >> { %v1218_v39 = vpop.permute.xlu1 %1217  ;;  %v1211_v40 = vpop.permute.xlu0 %1210 }
 0x62f   : >> { %v1220_v45 = vmul.f32 %v1218_v39, %v3451_v9  ;;  %v1219_v47 = vmul.f32 %v1211_v40, %v3449_v8  ;;  %v2684_v39 = vld [vmem:[#allocation13] sm:$0xff]   ;;  %v1385_v40 = vmul.f32 %v1377_v15, %v3542_v50 }
 0x631   : >> { %v1228_v51 = vsel %vm837_vm7, %v1220_v45, 0.0  ;;  %v1221_v53 = vsel %vm837_vm7, %v1219_v47, 0.0  ;;  %v1386_v45 = vmul.f32 %v1380_v34, %v3546_v54 }
 0x632   : >> { %v1229_v55 = vrot.slane %v1228_v51, 4  ;;  %v1222_v56 = vrot.slane %v1221_v53, 4 }
 0x633   : >> { %v1392_v47 = vpack.c.bf16 %v1386_v45, %v1385_v40 }
 0x634   : >> { %v1230_v59 = vadd.f32 %v1229_v55, %v1228_v51  ;;  %v1223_v17 = vadd.f32 %v1222_v56, %v1221_v53 }
 0x636   : >> { %v1231_v60 = vrot.slane %v1230_v59, 2  ;;  %v1224_v61 = vrot.slane %v1223_v17, 2 }
 0x638   : >> { %v1232_v63 = vadd.f32 %v1231_v60, %v1230_v59  ;;  %v1225_v7 = vadd.f32 %v1224_v61, %v1223_v17 }
 0x63a   : >> { %v1233_v10 = vrot.slane %v1232_v63, 1  ;;  %v1226_v11 = vrot.slane %v1225_v7, 1 }
 0x63c   : >> { %v1234_v23 = vadd.f32 %v1233_v10, %v1232_v63  ;;  %v1227_v24 = vadd.f32 %v1226_v11, %v1225_v7  ;;  %v1389_v11 = vadd.f32 %v1377_v15, %v3542_v50 }
 0x63e   : >> { %v1236_v26 = vpack.c.bf16 %v1234_v23, %v1234_v23  ;;  %v1235_v27 = vpack.c.bf16 %v1227_v24, %v1227_v24 }
 0x640   : >> { %v1247_v29 = vunpack.c.l.b16 %v1235_v27  ;;  %v1248_v30 = vunpack.c.l.b16 %v1236_v26  ;;  %v1390_v26 = vadd.f32 %v1380_v34, %v3546_v54 }
 0x642   : >> { %v1249_v31 = vsel %vm983_vm8, %v1248_v30, %v1247_v29 }
 0x643   : >> { %v1250_v35 = vpack.c.b16 %v1249_v31, %v1249_v31 }
 0x645   : >> { %2411 = vmatmul.mubr.msk.bf16.vlgmr.msra.gmra.mxu1 %vm837_vm7, %v1250_v35 }
 0x646   : >> { %2423 = vmatpush3.bf16.msra.mxu1 %v2683_v37  ;;  %2426 = vmatprep.mubr.msk.bf16.mxu1 %vm837_vm7, %v1391_v14  ;;  %v1387_v14 = vadd.f32 %v1369_v18, %v3544_v52 }
 0x647   : >> { %2424 = vmatprep.subr.bf16.mxu1 %v2684_v39 }
 0x64a   : >> { %2425 = vmatpush3.bf16.msra.mxu1 %v2684_v39 }
 0x64d   : >> { %2427 = vmatmul.mubr.msk.bf16.vlgmr.msra.gmra.mxu1 %vm837_vm7, %v1392_v47 }
 0x705   : >> { %v1300_v49 = vpop.f32.mrf.mxu1 }
 0x706   : >> { %v1301_v38 = vadd.f32 %v3447_v6, %v1300_v49 }
 0x707   : >> { %v2412_v51 = vpop.f32.mrf.mxu1 }
 0x708   : >> { %v1491_v53 = vrot.slane %v1301_v38, %v3602_v28 }
 0x709   : >> { %v1303_v55 = vpop.f32.mrf.mxu1 }
 0x70a   : >> { %v1492_v56 = vcombine.high %v1491_v53, %v1491_v53  ;;  %v1499_v63 = vrot.slane %v1491_v53, %v3602_v28 }
 0x70b   : >> { %v2413_v37 = vpop.f32.mrf.mxu1 }
 0x70c   : >> { %v1506_v58 = vrot.slane %v1492_v56, %v3602_v28  ;;  %v1510_v7 = vrot.slane %v1499_v63, %v3512_v33 }
 0x70d   : >> { %v2428_v59 = vpop.f32.mrf.mxu1 }
 0x70e   : >> { %1472 = vrot.lane.b32.xlu1 %v2428_v59, %s3084_s21  ;;  %v1514_v17 = vrot.slane %v1506_v58, %v3512_v33 }
 0x70f   : >> { %v1449_v60 = vpop.f32.mrf.mxu1 }
 0x710   : >> { %1517 = vrot.lane.b32.xlu0 %v1514_v17, %s3085_s10 }
 0x711   : >> { %v2429_v61 = vpop.f32.mrf.mxu1 }
 0x712   : >> { %1474 = vrot.lane.b32.xlu1 %v2429_v61, %s3084_s21 }
 0x713   : >> { %v1452_v62 = vpop.f32.mrf.mxu1 }
 0x714   : >> { %1470 = vrot.lane.b32.xlu0 %v1452_v62, %s3084_s21 }
 0x716   : >> { %1468 = vrot.lane.b32.xlu1 %v1449_v60, %s3084_s21 }
 0x71a   : >> { %1515 = vrot.lane.b32.xlu1 %v1510_v7, %s3085_s10 }
 0x780   : >> { %v1473_v10 = vpop.permute.xlu1 %1472 }
 0x781   : >> { %v1482_v24 = vadd.f32 %v1473_v10, %v1389_v11 }
 0x782   : >> { %v1518_v23 = vpop.permute.xlu0 %1517 }
 0x783   : >> { %v1523_v30 = vmul.f32 %v1518_v23, %v1482_v24 }
 0x784   : >> { %v1475_v27 = vpop.permute.xlu1 %1474 }
 0x785   : >> { %v1483_v0 = vadd.f32 %v1475_v27, %v1390_v26 }
 0x786   : >> { %v1471_v29 = vpop.permute.xlu0 %1470 }
 0x787   : >> { %v1524_v28 = vmul.f32 %v1518_v23, %v1483_v0  ;;  %v1526_v31 = vpack.c.bf16 %v1483_v0, %v1482_v24  ;;  %v1481_v39 = vadd.f32 %v1471_v29, %v1388_v16 }
 0x788   : >> { %v1469_v35 = vpop.permute.xlu1 %1468 }
 0x789   : >> { %v1480_v40 = vadd.f32 %v1469_v35, %v1387_v14  ;;  %v3667_v45 = vpack.c.bf16 %v1524_v28, %v1523_v30 }
 0x78b   : >> { %v1525_v15 = vpack.c.bf16 %v1481_v39, %v1480_v40  ;;  %1539 = vrot.lane.b32.xlu0 %v3667_v45, %s3085_s10 }
 0x78c   : >> { %v1516_v34 = vpop.permute.xlu1 %1515 }
 0x78d   : >> { %v1521_v47 = vmul.f32 %v1516_v34, %v1480_v40  ;;  %v1522_v49 = vmul.f32 %v1516_v34, %v1481_v39 }
 0x78f   : >> { %v3671_v38 = vpack.c.bf16 %v1522_v49, %v1521_v47  ;;  %1531 = vrot.lane.b32.xlu0 %v1525_v15, %s3086_s20 }
 0x791   : >> { %1537 = vrot.lane.b32.xlu1 %v3671_v38, %s3085_s10 }
 0x795   : >> { %1533 = vrot.lane.b32.xlu1 %v1526_v31, %s3086_s20 }
 0x7fd   : >> { %v1540_v18 = vpop.permute.xlu0 %1539 }
 0x7fe   : >> { %v1551_v19 = vsel %vm837_vm7, %v1540_v18, 0  ;;  %2478 = vmatprep.subr.msk.bf16.mxu0 %vm837_vm7, %v1540_v18 }
 0x7ff   : >> { %2431 = vmatpush3.bf16.xpose.msra.mxu0 %v1551_v19 }
 0x801   : >> { %v1532_v51 = vpop.permute.xlu0 %1531 }
 0x802   : >> { %2434 = vmatprep.mubr.msk.bf16.mxu0 %vm837_vm7, %v1532_v51 }
 0x803   : >> { %v1538_v53 = vpop.permute.xlu1 %1537 }
 0x804   : >> { %2479 = vmatprep.subr.msk.bf16.mxu0 %vm837_vm7, %v1538_v53  ;;  %v1548_v55 = vsel %vm837_vm7, %v1538_v53, 0 }
 0x807   : >> { %2433 = vmatpush3.bf16.xpose.msra.mxu0 %v1548_v55  ;;  %v1534_v56 = vpop.permute.xlu1 %1533 }
 0x80e   : >> { %2435 = vmatmul.mubr.msk.bf16.vlgmr.msra.gmra.mxu0 %vm837_vm7, %v1534_v56 }
 0x80f   : >> { %2458 = vmatprep.mubr.msk.bf16.mxu0 %vm837_vm7, %v3621_v20 }
 0x8ce   : >> { %v2436_v37 = vpop.f32.mrf.mxu0 }
 0x8cf   : >> { %v1604_v58 = vmul.f32 0.17677669, %v2436_v37 }
 0x8d0   : >> { %v1587_v59 = vpop.f32.mrf.mxu0 }
 0x8d1   : >> { %v1602_v17 = vmul.f32 0.17677669, %v1587_v59  ;;  %v1608_v61 = vsel %vm3530_vm3, -1e+30, %v1604_v58 }
 0x8d2   : >> { %v2437_v60 = vpop.f32.mrf.mxu0  ;;  %v1612_v20 = vsel %vm2260_vm12, -2e+30, %v1608_v61 }
 0x8d3   : >> { %v1606_v62 = vsel %vm3538_vm6, -1e+30, %v1602_v17  ;;  %v1605_v63 = vmul.f32 0.17677669, %v2437_v60  ;;  %v1620_v0 = vsel %vm837_vm7, %v1612_v20, -inf  ;;  %v2685_v60 = vld [vmem:[%s3903_s9 + $0x8] sm:$0xff]  }
 0x8d4   : >> { %v1610_v7 = vsel %vm2259_vm11, -2e+30, %v1606_v62  ;;  %v1590_v10 = vpop.f32.mrf.mxu0  ;;  %2454 = vmatprep.subr.bf16.mxu0 %v2685_v60 }
 0x8d5   : >> { %v1603_v11 = vmul.f32 0.17677669, %v1590_v10  ;;  %v1614_v23 = vsel %vm837_vm7, %v1610_v7, -inf  ;;  %v1609_v24 = vsel %vm3534_vm4, -1e+30, %v1605_v63  ;;  %2455 = vmatpush3.bf16.msra.mxu0 %v2685_v60 }
 0x8d6   : >> { %1615 = vmax.xlane.f32.xlu0 %v1614_v23  ;;  %v1613_v29 = vsel %vm2260_vm12, -2e+30, %v1609_v24 }
 0x8d7   : >> { %v1607_v26 = vsel %vm3522_vm15, -1e+30, %v1603_v11  ;;  %v1623_v30 = vsel %vm837_vm7, %v1613_v29, -inf }
 0x8d8   : >> { %v1611_v27 = vsel %vm2259_vm11, -2e+30, %v1607_v26 }
 0x8d9   : >> { %v1617_v16 = vsel %vm837_vm7, %v1611_v27, -inf }
 0x8da   : >> { %1621 = vmax.xlane.f32.xlu0 %v1620_v0  ;;  %1618 = vmax.xlane.f32.xlu1 %v1617_v16 }
 0x8de   : >> { %1624 = vmax.xlane.f32.xlu0 %v1623_v30  ;;  %v2686_v30 = vld [vmem:[%s3903_s9] sm:$0xff]  }
 0x8df   : >> { %2456 = vmatprep.subr.bf16.mxu0 %v2686_v30 }
 0x8e0   : >> { %2457 = vmatpush3.bf16.msra.mxu0 %v2686_v30 }
 0x8e3   : >> { %2459 = vmatmul.mubr.msk.bf16.vlgmr.msra.gmra.mxu0 %vm837_vm7, %v3627_v22 }
 0x95f   : >> { %v1616_v28 = vpop.xlane.xlu0 %1615 }
 0x960   : >> { %v1626_v31 = vsub.f32 %v1610_v7, %v1616_v28  ;;  %v2687_v28 = vld [vmem:[%s3903_s9 + $0x18] sm:$0xff]  }
 0x962   : >> { %v1630_v40 = vmul.f32 1.442695, %v1626_v31  ;;  %v2688_v31 = vld [vmem:[%s3903_s9 + $0x10] sm:$0xff]  }
 0x963   : >> { %v1622_v14 = vpop.xlane.xlu0 %1621  ;;  %v1619_v35 = vpop.xlane.xlu1 %1618 }
 0x964   : >> { %v1628_v39 = vsub.f32 %v1612_v20, %v1622_v14  ;;  %v1627_v34 = vsub.f32 %v1611_v27, %v1619_v35 }
 0x966   : >> { %v1634_v15 = vmul.f32 1.442695, %v1628_v39  ;;  %v1632_v18 = vmul.f32 1.442695, %v1627_v34 }
 0x967   : >> { %v1625_v47 = vpop.xlane.xlu0 %1624 }
 0x968   : >> { %2693 = vpow2.f32 %v1634_v15  ;;  %v1629_v49 = vsub.f32 %v1613_v29, %v1625_v47 }
 0x969   : >> { %2695 = vpow2.f32 %v1630_v40 }
 0x96a   : >> { %v1636_v19 = vmul.f32 1.442695, %v1629_v49 }
 0x96c   : >> { %2697 = vpow2.f32 %v1636_v19 }
 0x96d   : >> { %2699 = vpow2.f32 %v1632_v18 }
 0x975   : >> { %v2694_v51 = vpop.eup %2693 }
 0x976   : >> { %v1644_v53 = vsel %vm837_vm7, %v2694_v51, 0.0  ;;  %v2696_v55 = vpop.eup %2695 }
 0x977   : >> { %1645 = vadd.xlane.f32.xlu0 %v1644_v53  ;;  %v1638_v37 = vsel %vm837_vm7, %v2696_v55, 0.0 }
 0x979   : >> { %v2698_v56 = vpop.eup %2697 }
 0x97a   : >> { %v1647_v58 = vsel %vm837_vm7, %v2698_v56, 0.0  ;;  %v2700_v59 = vpop.eup %2699 }
 0x97b   : >> { %1639 = vadd.xlane.f32.xlu0 %v1638_v37  ;;  %1648 = vadd.xlane.f32.xlu1 %v1647_v58  ;;  %v1641_v17 = vsel %vm837_vm7, %v2700_v59, 0.0 }
 0x97f   : >> { %1642 = vadd.xlane.f32.xlu1 %v1641_v17 }
 0x990   : >> { %1660 = vrot.lane.b32.xlu1 %v3671_v38, %s3084_s21 }
 0x991   : >> { %1662 = vrot.lane.b32.xlu0 %v3667_v45, %s3084_s21 }
 0x9a3   : >> { %v2460_v47 = vpop.f32.mrf.mxu0 }
 0x9a5   : >> { %v1844_v49 = vpop.f32.mrf.mxu0 }
 0x9a7   : >> { %v2461_v19 = vpop.f32.mrf.mxu0 }
 0xa00   : >> { %v1646_v61 = vpop.xlane.xlu0 %1645 }
 0xa04   : >> { %v1640_v62 = vpop.xlane.xlu0 %1639  ;;  %v1649_v63 = vpop.xlane.xlu1 %1648 }
 0xa05   : >> { %2701 = vrcp.f32 %v1649_v63  ;;  %v2709_v63 = vld [vmem:[%s3836_s13 + $0x18] sm:$0xff] (%p1050_p10)  }
 0xa06   : >> { %2703 = vrcp.f32 %v1640_v62  ;;  %2462 = vmatprep.subr.bf16.mxu0 (%p1050_p10), %v2709_v63 }
 0xa07   : >> { %2705 = vrcp.f32 %v1646_v61  ;;  %2463 = vmatpush3.bf16.msra.mxu0 (%p1050_p10), %v2709_v63 }
 0xa08   : >> { %v1663_v7 = vpop.permute.xlu0 %1662  ;;  %v1643_v10 = vpop.xlane.xlu1 %1642 }
 0xa09   : >> { %2707 = vrcp.f32 %v1643_v10  ;;  %2438 = vmatprep.subr.bf16.mxu1 %v1663_v7  ;;  %v2710_v10 = vld [vmem:[%s3836_s13 + $0x8] sm:$0xff] (%p1050_p10)  }
 0xa0a   : >> { %2439 = vmatpush3.bf16.msra.mxu1 %v1663_v7 }
 0xa0c   : >> { %v1661_v38 = vpop.permute.xlu1 %1660 }
 0xa0d   : >> { %2440 = vmatprep.subr.bf16.mxu1 %v1661_v38 }
 0xa0e   : >> { %2441 = vmatpush3.bf16.msra.mxu1 %v1661_v38  ;;  %v2711_v38 = vld [vmem:[%s3836_s13 + $0x10] sm:$0xff] (%p1050_p10)  }
 0xa0f   : >> { %2446 = vmatprep.subr.bf16.mxu1 %v2687_v28  ;;  %2464 = vmatprep.subr.bf16.mxu0 (%p1050_p10), %v2711_v38 }
 0xa10   : > { %2465 = vmatpush3.bf16.msra.mxu0 (%p1050_p10), %v2711_v38 }
 0xa12   : >> { %v2702_v45 = vpop.eup %2701 }
 0xa13   : >> { %v2704_v11 = vpop.eup %2703  ;;  %v1657_v24 = vmul.f32 %v2702_v45, %v2698_v56 }
 0xa14   : >> { %v2706_v23 = vpop.eup %2705  ;;  %v1654_v26 = vmul.f32 %v2704_v11, %v2696_v55 }
 0xa15   : >> { %v1656_v0 = vmul.f32 %v2706_v23, %v2694_v51 }
 0xa16   : >> { %v2708_v20 = vpop.eup %2707 }
 0xa17   : >> { %v1655_v27 = vmul.f32 %v2708_v20, %v2700_v59  ;;  %v1659_v29 = vpack.c.bf16 %v1657_v24, %v1656_v0  ;;  %v1847_v59 = vpop.f32.mrf.mxu0 }
 0xa19   : >> { %v1658_v16 = vpack.c.bf16 %v1655_v27, %v1654_v26 }
 0xa1b   : >> { %2442 = vmatprep.mubr.msk.bf16.mxu1 %vm837_vm7, %v1658_v16 }
 0xa1c   : >> { %2443 = vmatmul.mubr.msk.bf16.vlgmr.msra.gmra.mxu1 %vm837_vm7, %v1659_v29 }
 0xa1d   : >> { %2447 = vmatpush3.bf16.msra.mxu1 %v2687_v28 }
 0xa1e   : >> { %2448 = vmatprep.subr.bf16.mxu1 %v2688_v31 }
 0xa21   : >> { %2449 = vmatpush3.bf16.msra.mxu1 %v2688_v31 }
 0xa22   : > { %2470 = vmatprep.subr.bf16.mxu1 (%p1050_p10), %v2710_v10 }
 0xadc   : >> { %v2444_v14 = vpop.f32.mrf.mxu1 }
 0xade   : >> { %v1706_v35 = vpop.f32.mrf.mxu1 }
 0xae0   : >> { %v2445_v39 = vpop.f32.mrf.mxu1 }
 0xae1   : >> { %v1726_v34 = vpack.c.bf16 %v2445_v39, %v2444_v14 }
 0xae2   : >> { %v1709_v40 = vpop.f32.mrf.mxu1 }
 0xae3   : >> { %v1725_v15 = vpack.c.bf16 %v1709_v40, %v1706_v35 }
 0xae5   : >> { %2450 = vmatprep.mubr.msk.bf16.mxu1 %vm837_vm7, %v1725_v15 }
 0xae6   : >> { %2451 = vmatmul.mubr.msk.bf16.vlgmr.msra.gmra.mxu1 %vm837_vm7, %v1726_v34 }
 0xae7   : > { %2474 = vmatprep.mubr.msk.bf16.mxu1 (%p1050_p10), %vm837_vm7, %v3495_v21  ;;  %2471 = vmatpush3.bf16.msra.mxu1 (%p1050_p10), %v2710_v10 }
 0xba6   : >> { %v2452_v18 = vpop.f32.mrf.mxu1 }
 0xba7   : >> { %v1853_v22 = vadd.f32 %v2460_v47, %v2452_v18 }
 0xba8   : >> { %v1783_v51 = vpop.f32.mrf.mxu1 }
 0xba9   : >> { %v1865_v53 = vadd.f32 %v3428_v1, %v1853_v22   ;;  %v1845_v55 = vadd.f32 %v1844_v49, %v1783_v51 }
 0xbaa   : >> { %v2453_v56 = vpop.f32.mrf.mxu1 }
 0xbab   : >> { %v1863_v37 = vadd.f32 %v3428_v1, %v1845_v55   ;;  %v1856_v58 = vadd.f32 %v2461_v19, %v2453_v56  ;;  %v3905_v15 = vmov %v1865_v53 }
 0xbac   : >> { %v1786_v17 = vpop.f32.mrf.mxu1 }
 0xbad   : >> { %v1866_v60 = vadd.f32 %v3428_v1, %v1856_v58   ;;  %v1848_v61 = vadd.f32 %v1847_v59, %v1786_v17  ;;  %v3907_v0 = vmov %v1863_v37  ;;  %1052 = sbr.rel (!%p1050_p10) target bundleno = 790 (0x316), region = 168 }
 0xbaf   : >> { %v1864_v62 = vadd.f32 %v3428_v1, %v1848_v61   ;;  %v3904_v14 = vmov %v1866_v60  ;;  %v2712_v1 = vld [vmem:[%s3836_s13] sm:$0xff] (%p1050_p10)   ;;  %v1872_v3 = vpack.c.bf16 (%p1050_p10), %v1866_v60, %v1865_v53 }
 0xbb0   : > { %2472 = vmatprep.subr.bf16.mxu1 (%p1050_p10), %v2712_v1 }
 0xbb1   : >> { %v3906_v16 = vmov %v1864_v62  ;;  %v1871_v7 = vpack.c.bf16 (%p1050_p10), %v1864_v62, %v1863_v37  ;;  %2473 = vmatpush3.bf16.msra.mxu1 (%p1050_p10), %v2712_v1 }
 0xbb3   : > { %2466 = vmatprep.mubr.msk.bf16.mxu0 %vm837_vm7, %v1871_v7 }
 0xbb4   : > { %2467 = vmatmul.mubr.msk.bf16.vlgmr.msra.gmra.mxu0 %vm837_vm7, %v1872_v3  ;;  %2475 = vmatmul.mubr.msk.bf16.vlgmr.msra.gmra.mxu1 %vm837_vm7, %v3497_v25 }
 0xc74   : > { %v2468_v4 = vpop.f32.mrf.mxu0  ;;  %v2476_v5 = vpop.f32.mrf.mxu1 }
 0xc75   : > { %v1999_v6 = vadd.f32 %v2476_v5, %v2468_v4 }
 0xc76   : > { %v1929_v8 = vpop.f32.mrf.mxu0  ;;  %v1990_v9 = vpop.f32.mrf.mxu1 }
 0xc77   : > { %v2011_v48 = vadd.f32 %v3433_v2, %v1999_v6  ;;  %v1991_v21 = vadd.f32 %v1990_v9, %v1929_v8 }
 0xc78   : > { %v2469_v32 = vpop.f32.mrf.mxu0  ;;  %v2477_v33 = vpop.f32.mrf.mxu1 }
 0xc79   : > { %2015 = vst.msk [vmem:[%s3559_s28 + $0x10] sm:$0xff] %vm837_vm7, %v2011_v48  ;;  %v2009_v36 = vadd.f32 %v3433_v2, %v1991_v21  ;;  %v2002_v41 = vadd.f32 %v2477_v33, %v2469_v32 }
 0xc7a   : > { %v1932_v25 = vpop.f32.mrf.mxu0  ;;  %v1993_v42 = vpop.f32.mrf.mxu1 }
 0xc7b   : > { %2013 = vst.msk [vmem:[%s3559_s28] sm:$0xff] %vm837_vm7, %v2009_v36  ;;  %v2012_v43 = vadd.f32 %v3433_v2, %v2002_v41  ;;  %v1994_v44 = vadd.f32 %v1993_v42, %v1932_v25 }
 0xc7d   : > { %2016 = vst.msk [vmem:[%s3559_s28 + $0x18] sm:$0xff] %vm837_vm7, %v2012_v43  ;;  %v2010_v46 = vadd.f32 %v3433_v2, %v1994_v44 }
 0xc7f   : > { %2014 = vst.msk [vmem:[%s3559_s28 + $0x8] sm:$0xff] %vm837_vm7, %v2010_v46 }
 0xc80   : > { %2952 = shalt.err (!%p2949_p11)
}
 0xc81   : > { %s2953_s28 = scalar_lea.hbm %s3774_s3, 512  ;;  %s2957_s10 = scalar_lea.hbm %s3840_s17, 1024 }
 0xc82   : > { %p2954_p7 = scmp.ne.s32.totalorder %s3774_s3, %s2953_s28  ;;  %p2958_p5 = scmp.lt.s32.totalorder %s3774_s3, %s3840_s17 }
 0xc83   : > { %p2959_p9 = scmp.lt.s32.totalorder %s2957_s10, %s2953_s28 }
 0xc84   : > { %p2955_p0 = pnand %p2954_p7, %p3908_p13 }
 0xc85   : > { %p2960_p10 = por %p2959_p9, %p2958_p5 }
 0xc86   : > { %p2956_p2 = pneg %p2955_p0 }
 0xc88   : > { %p2961_p12 = pnand %p2960_p10, %p2956_p2 }
 0xc8a   : > { %2964 = shalt.err (!%p2961_p12)
}
 0xc8b   : > { %s3088_s29 = smov 128   ;;  %s3089_s22 = smov 8  }
 0xc8c   : > { %2512 = dma.vmem_to_hbm [thread:$0]  (%p3908_p13), %s3776_s26, 512, %s3774_s3, %s2018_s2, %s3088_s29, %s3088_s29, %s3089_s22  }
 0xc8d PF: > { %s2047_s8 = sand.u32 1, %s3029_s0   ;;  %p3909_p1 = scmp.ne.s32.totalorder %s3876_s25, 0 }
 0xc8e   : > { %p3910_p3 = scmp.ge.s32.totalorder %s3041_s18, 2  ;;  %s2048_s12 = scalar_lea.sflag [#allocation7], %s2047_s8 }
 0xc90   : > { %p2541_p4 = pnand %p3910_p3, %p3909_p1 }
 0xc92   : > { %p2542_p8 = pneg %p2541_p4 }
 0xc94   : > { %3024 = dma.done.wait (%p2542_p8), %s2048_s12, 512  }
 0xc95   : > { %3026 = vsyncadd (%p2542_p8), %s2048_s12, 4294966784  ;;  %s3911_s27 = sld [smem:[#allocation27_spill]]  ;;  %p40_p6 = scmp.ge.s32.totalorder %s3314_s23, 4  }
 0xc96   : > { %s3912_s12 = sld [smem:[#allocation28_spill]]  ;;  %s3913_s0 = smov %s3033_s30 }
 0xc97   : > { %s3915_s18 = smov %s3314_s23  ;;  %42 = sbr.rel (!%p40_p6) target bundleno = 32 (0x20), region = 179 }
 0xc9b   : > { %s3914_s30 = smov %s3911_s27 }
 0xc9c   :  { %2053 = vsyncpa [#allocation6], 1 }
 0xc9d   :  { %2055 = vsyncpa [#allocation6 + $0x1], 1 }
 0xc9e   :  { %2056 = vsyncpa [#allocation9], 1 }
 0xc9f   :  { %2057 = vsyncpa [#allocation12], 1 }
 0xca0   :  { %2058 = vsyncpa [#allocation15], 1 }
 0xca1   :  { %2059 = vsyncpa [#allocation18], 1 }
 0xca2   :  { %2060 = vsyncpa [#allocation7], 1 }
 0xca3   :  { %2062 = vsyncpa [#allocation7 + $0x1], 1 }

// kernel: tpu_custom_call.1
= control target key start
LH: loop header
LB: loop body
LE: loop exit
PB: predicated region body
PF: predicated region fallthrough
CT: control target
= control target key end

     0   :  { %s3063_s24 = smov [#allocation3]   ;;  %s3064_s27 = smov [#allocation4]   ;;  %s3824_s0 = inlined_call_operand.hbm [shape: s32[4], index: 0, kind: input, shape index: {}]   ;;  %s3825_s2 = inlined_call_operand.vmem [shape: f32[4,16,64], index: 2, kind: input, shape index: {}]   ;;  %s3826_s3 = inlined_call_operand.hbm [shape: f32[4,1,32], index: 3, kind: input, shape index: {}]   ;;  %s3827_s4 = inlined_call_operand.vmem [shape: f32[4,8,32], index: 4, kind: input, shape index: {}]   ;;  %s3828_s5 = inlined_call_operand.vmem [shape: bf16[64,32], index: 5, kind: input, shape index: {}]   ;;  %s3829_s6 = inlined_call_operand.hbm [shape: bf16[32,32], index: 6, kind: input, shape index: {}]   ;;  %s3830_s7 = inlined_call_operand.vmem [shape: bf16[3,32,32], index: 7, kind: input, shape index: {}]   ;;  %s3831_s8 = inlined_call_operand.hbm [shape: bf16[32,128], index: 8, kind: input, shape index: {}]   ;;  %s3832_s9 = inlined_call_operand.hbm [shape: bf16[32,128], index: 9, kind: input, shape index: {}]   ;;  %s3833_s10 = inlined_call_operand.hbm [shape: bf16[32,96], index: 10, kind: input, shape index: {}]   ;;  %s3834_s11 = inlined_call_operand.hbm [shape: bf16[32,64], index: 11, kind: input, shape index: {}]   ;;  %s3835_s12 = inlined_call_operand.vmem [shape: bf16[64,32], index: 12, kind: input, shape index: {}]   ;;  %s3836_s13 = inlined_call_operand.vmem [shape: bf16[64,32], index: 13, kind: input, shape index: {}]   ;;  %s3837_s14 = inlined_call_operand.hbm [shape: f32[3,1,32], index: 14, kind: input, shape index: {}]   ;;  %s3838_s15 = inlined_call_operand.hbm [shape: f32[3,128], index: 15, kind: input, shape index: {}]   ;;  %s3839_s16 = inlined_call_operand.vmem [shape: f32[7,32], index: 16, kind: input, shape index: {}]   ;;  %s3840_s17 = inlined_call_operand.hbm [shape: f32[4,16,32], index: 17, kind: output, shape index: {}]   ;;  %s3841_s1 = inlined_call_operand.hbm [shape: s32[4], index: 1, kind: input, shape index: {}]  }
   0x1   :  { %3850 = sst [smem:[#allocation29_spill]] %s3824_s0 }
   0x2   :  { %3851 = sst [smem:[#allocation30_spill]] %s3825_s2 }
   0x3   :  { %3852 = sst [smem:[#allocation31_spill]] %s3826_s3 }
   0x4   :  { %3853 = sst [smem:[#allocation32_spill]] %s3829_s6 }
   0x5   :  { %3854 = sst [smem:[#allocation33_spill]] %s3831_s8 }
   0x6   :  { %3855 = sst [smem:[#allocation34_spill]] %s3832_s9 }
   0x7   :  { %3856 = sst [smem:[#allocation35_spill]] %s3833_s10 }
   0x8   :  { %3857 = sst [smem:[#allocation36_spill]] %s3834_s11 }
   0x9   :  { %3858 = sst [smem:[#allocation37_spill]] %s3835_s12 }
   0xa   :  { %3859 = sst [smem:[#allocation38_spill]] %s3837_s14 }
   0xb   :  { %3860 = sst [smem:[#allocation39_spill]] %s3838_s15 }
   0xc   :  { %s3861_s12 = sld [smem:[#allocation29_spill]] }
  0x12   :  { %23 = dma.hbm_to_smem %s3861_s12, 16, %s3063_s24, [#allocation2] }
  0x13   :  { %25 = dma.hbm_to_smem %s3841_s1, 16, %s3064_s27, [#allocation2] }
  0x14   :  { %3001 = dma.done.wait [#allocation2], 32 }
  0x15   :  { %3002 = vsyncadd [#allocation2], 4294967264 }
  0x16   :  { %27 = sfence }
  0x17   :  { %28 = vsyncpa [#allocation6], 0 }
  0x18   :  { %30 = vsyncpa [#allocation6 + $0x1], 0 }
  0x19   :  { %31 = vsyncpa [#allocation9], 0 }
  0x1a   :  { %32 = vsyncpa [#allocation12], 0 }
  0x1b   :  { %33 = vsyncpa [#allocation15], 0 }
  0x1c   :  { %34 = vsyncpa [#allocation18], 0 }
  0x1d   :  { %35 = vsyncpa [#allocation7], 0 }
  0x1e   :  { %37 = vsyncpa [#allocation7 + $0x1], 0  ;;  %s3186_s0 = smov 0   ;;  %s3188_s30 = smov 0  }
  0x1f   :  { %s3190_s12 = smov 0   ;;  %s3192_s18 = smov 0  }
  0x20 LB: > { %3862 = sst [smem:[#allocation27_spill]] %s3037_s12  ;;  %s3065_s1 = smov [#allocation8]   ;;  %s3041_s18 = sphi %s3192_s18, %s3915_s18   ;;  %s3037_s12 = sphi %s3190_s12, %s3912_s12   ;;  %s3033_s30 = sphi %s3188_s30, %s3914_s30   ;;  %s3029_s0 = sphi %s3186_s0, %s3913_s0  }
  0x21   : > { %s419_s19 = sshll.u32 %s3065_s1, 4  ;;  %s3207_s2 = sadd.s32 4294967295, %s3041_s18   ;;  %s420_s19 = int_to_ptr.vmem [resolvable:$true] %s419_s19 }
  0x22   : > { %p2217_p0 = scmp.ge.s32.totalorder %s3041_s18, 1  ;;  %p3845_p1 = scmp.eq.s32.totalorder %s3207_s2, 0 }
  0x23   : > { %p404_p2 = scmp.lt.s32.totalorder %s3041_s18, 3  ;;  %s3066_s21 = smov [#allocation11]  }
  0x24   : > { %s448_s22 = sshll.u32 %s3066_s21, 4  ;;  %s3067_s24 = smov [#allocation14]   ;;  %s3225_s22 = int_to_ptr.vmem [resolvable:$true] %s448_s22 }
  0x25   : > { %p3212_p3 = pnand %p2217_p0, %p404_p2  ;;  %s474_s25 = sshll.u32 %s3067_s24, 4  ;;  %s3227_s25 = int_to_ptr.vmem [resolvable:$true] %s474_s25 }
  0x26   : > { %s2740_s27 = scalar_lea.vmem %s420_s19, 256  ;;  %p2748_p11 = scmp.lt.s32.totalorder %s420_s19, %s420_s19 }
  0x27   : > { %s3863_s20 = scalar_select %p3212_p3, 1, 0 }
  0x28   : > { %p2514_p5 = pneg %p3212_p3  ;;  %p2741_p8 = scmp.ne.s32.totalorder %s420_s19, %s2740_s27 }
  0x29   : > { %p2749_p12 = scmp.lt.s32.totalorder %s2740_s27, %s2740_s27 }
  0x2a   : > { %p3221_p6 = pnand %p2514_p5, %p3845_p1 }
  0x2b   : > { %p2750_p13 = por %p2749_p12, %p2748_p11 }
  0x2c   : > { %p3231_p7 = pneg %p3221_p6 }
  0x2e   : > { %p2743_p9 = pnand %p2741_p8, %p3231_p7 }
  0x30   : > { %p2744_p10 = pneg %p2743_p9 }
  0x32   : > { %p2751_p0 = pnand %p2750_p13, %p2744_p10 }
  0x34   : > { %2754 = shalt.err (!%p2751_p0)
}
  0x35   : > { %s3068_s28 = smov 64   ;;  %s3069_s29 = smov 4  }
  0x36   : > { %s3866_s6 = sld [smem:[#allocation32_spill]]  ;;  %s2766_s24 = scalar_lea.vmem %s3225_s22, 256 }
  0x37   : > { %p2767_p2 = scmp.ne.s32.totalorder %s3225_s22, %s2766_s24  ;;  %p2774_p9 = scmp.lt.s32.totalorder %s3225_s22, %s3225_s22 }
  0x38   : > { %p2775_p10 = scmp.lt.s32.totalorder %s2766_s24, %s2766_s24 }
  0x39   : > { %p2769_p5 = pnand %p2767_p2, %p3231_p7 }
  0x3a   : > { %p2776_p11 = por %p2775_p10, %p2774_p9 }
  0x3b   : > { %p2770_p8 = pneg %p2769_p5 }
  0x3c   : > { %2517 = dma.hbm_to_vmem [thread:$0]  (!%p3221_p6), %s3866_s6, 256, %s420_s19, [#allocation9], %s3068_s28, %s3068_s28, %s3069_s29  }
  0x3d   : > { %p2777_p12 = pnand %p2776_p11, %p2770_p8 }
  0x3f   : > { %2780 = shalt.err (!%p2777_p12)
}
  0x40   : > { %s3867_s9 = sld [smem:[#allocation34_spill]]  ;;  %s2792_s19 = scalar_lea.vmem %s3227_s25, 256 }
  0x41   : > { %p2793_p13 = scmp.ne.s32.totalorder %s3227_s25, %s2792_s19  ;;  %p2800_p5 = scmp.lt.s32.totalorder %s3227_s25, %s3227_s25 }
  0x42   : > { %p2801_p8 = scmp.lt.s32.totalorder %s2792_s19, %s2792_s19 }
  0x43   : > { %p2795_p0 = pnand %p2793_p13, %p3231_p7 }
  0x44   : > { %p2802_p9 = por %p2801_p8, %p2800_p5 }
  0x45   : > { %p2796_p2 = pneg %p2795_p0 }
  0x46   : > { %2523 = dma.hbm_to_vmem [thread:$0]  (!%p3221_p6), %s3867_s9, 256, %s3225_s22, [#allocation12], %s3068_s28, %s3068_s28, %s3069_s29  }
  0x47   : > { %p2803_p10 = pnand %p2802_p9, %p2796_p2 }
  0x49   : > { %2806 = shalt.err (!%p2803_p10)
}
  0x4a   : > { %s3868_s11 = sld [smem:[#allocation36_spill]]  ;;  %s3070_s22 = smov [#allocation10]  }
  0x4b   : > { %s435_s27 = sshll.u32 %s3070_s22, 4  ;;  %s3071_s1 = smov [#allocation13]   ;;  %s436_s27 = int_to_ptr.vmem [resolvable:$true] %s435_s27 }
  0x4c   : > { %s461_s6 = sshll.u32 %s3071_s1, 4  ;;  %s2818_s19 = scalar_lea.vmem %s436_s27, 256  ;;  %s462_s6 = int_to_ptr.vmem [resolvable:$true] %s461_s6 }
  0x4d   : > { %p2819_p11 = scmp.ne.s32.totalorder %s436_s27, %s2818_s19  ;;  %p2826_p0 = scmp.lt.s32.totalorder %s436_s27, %s436_s27 }
  0x4e   : > { %p2827_p2 = scmp.lt.s32.totalorder %s2818_s19, %s2818_s19 }
  0x4f   : > { %p2821_p12 = pnand %p2819_p11, %p3231_p7 }
  0x50   : > { %2529 = dma.hbm_to_vmem [thread:$0]  (!%p3221_p6), %s3868_s11, 256, %s3227_s25, [#allocation15], %s3068_s28, %s3068_s28, %s3069_s29  }
  0x51   : > { %p2822_p13 = pneg %p2821_p12  ;;  %p2828_p5 = por %p2827_p2, %p2826_p0 }
  0x53   : > { %p2829_p8 = pnand %p2828_p5, %p2822_p13 }
  0x55   : > { %2832 = shalt.err (!%p2829_p8)
}
  0x56   : > { %s3869_s8 = sld [smem:[#allocation33_spill]]  ;;  %s2844_s24 = scalar_lea.vmem %s462_s6, 256 }
  0x57   : > { %p2845_p9 = scmp.ne.s32.totalorder %s462_s6, %s2844_s24  ;;  %p2852_p12 = scmp.lt.s32.totalorder %s462_s6, %s462_s6 }
  0x58   : > { %p2853_p0 = scmp.lt.s32.totalorder %s2844_s24, %s2844_s24 }
  0x59   : > { %p2847_p10 = pnand %p2845_p9, %p3231_p7 }
  0x5a   : > { %p2854_p13 = por %p2853_p0, %p2852_p12 }
  0x5b   : > { %p2848_p11 = pneg %p2847_p10 }
  0x5c   : > { %2520 = dma.hbm_to_vmem [thread:$0]  (!%p3221_p6), %s3869_s8, 256, %s436_s27, [#allocation9], %s3068_s28, %s3068_s28, %s3069_s29  }
  0x5d   : > { %p2855_p2 = pnand %p2854_p13, %p2848_p11 }
  0x5f   : > { %2858 = shalt.err (!%p2855_p2)
}
  0x60   : > { %s3870_s10 = sld [smem:[#allocation35_spill]]  ;;  %s3072_s27 = smov [#allocation16]  }
  0x61   : > { %s493_s19 = sshll.u32 %s3072_s27, 4  ;;  %s494_s19 = int_to_ptr.vmem [resolvable:$true] %s493_s19 }
  0x62   : > { %s2870_s25 = scalar_lea.vmem %s494_s19, 48  ;;  %s2877_s21 = scalar_lea.vmem %s494_s19, 64 }
  0x63   : > { %p2871_p5 = scmp.ne.s32.totalorder %s494_s19, %s2870_s25  ;;  %p2878_p10 = scmp.lt.s32.totalorder %s494_s19, %s494_s19 }
  0x64   : > { %p2879_p11 = scmp.lt.s32.totalorder %s2877_s21, %s2870_s25 }
  0x65   : > { %p2873_p8 = pnand %p2871_p5, %p3231_p7 }
  0x66   : > { %2526 = dma.hbm_to_vmem [thread:$0]  (!%p3221_p6), %s3870_s10, 256, %s462_s6, [#allocation12], %s3068_s28, %s3068_s28, %s3069_s29  }
  0x67   : > { %p2874_p9 = pneg %p2873_p8  ;;  %p2880_p12 = por %p2879_p11, %p2878_p10 }
  0x69   : > { %p2881_p0 = pnand %p2880_p12, %p2874_p9 }
  0x6b   : > { %2884 = shalt.err (!%p2881_p0)
}
  0x6c   : > { %s3843_s24 = smov 16   ;;  %s3844_s22 = smov 1  }
  0x6d   : > { %s3871_s14 = sld [smem:[#allocation38_spill]]  ;;  %s3075_s29 = smov [#allocation17]  }
  0x6e   : > { %s507_s1 = sshll.u32 %s3075_s29, 4  ;;  %s508_s1 = int_to_ptr.vmem [resolvable:$true] %s507_s1 }
  0x6f   : > { %s2896_s27 = scalar_lea.vmem %s508_s1, 64  ;;  %p2904_p8 = scmp.lt.s32.totalorder %s508_s1, %s508_s1 }
  0x70   : > { %p2897_p13 = scmp.ne.s32.totalorder %s508_s1, %s2896_s27  ;;  %p2905_p9 = scmp.lt.s32.totalorder %s2896_s27, %s2896_s27 }
  0x72   : > { %p2899_p2 = pnand %p2897_p13, %p3231_p7  ;;  %p2906_p10 = por %p2905_p9, %p2904_p8 }
  0x73   : > { %2532 = dma.hbm_to_vmem [thread:$0]  (!%p3221_p6), %s3871_s14, 48, %s494_s19, [#allocation15], %s3843_s24, %s3843_s24, %s3844_s22  }
  0x74   : > { %p2900_p5 = pneg %p2899_p2 }
  0x76   : > { %p2907_p11 = pnand %p2906_p10, %p2900_p5 }
  0x78   : > { %2910 = shalt.err (!%p2907_p11)
}
  0x79   : > { %s3872_s15 = sld [smem:[#allocation39_spill]]  ;;  %s2216_s26 = sadd.s32 4294967294, %s3041_s18  }
  0x7a   : > { %s3314_s23 = sadd.s32 1, %s3041_s18   ;;  %s76_s19 = sadd.s32 1, %s3037_s12 }
  0x7b   : > { %s73_s6 = ssub.s32 %s3041_s18, %s3314_s23  ;;  %p83_p7 = scmp.ne.s32.totalorder %s3037_s12, %s3033_s30 }
  0x7c   : > { %p74_p12 = scmp.eq.s32.totalorder %s73_s6, 0  ;;  %p84_p0 = scmp.eq.s32.totalorder %s3041_s18, 0 }
  0x7d   : > { %p89_p13 = scmp.ne.s32.totalorder %s3033_s30, %s3029_s0  ;;  %p391_p2 = scmp.eq.s32.totalorder %s3207_s2, 1 }
  0x7e   : > { %s3326_s28 = scalar_select %p74_p12, %s3037_s12, %s76_s19  }
  0x7f   : > { %2535 = dma.hbm_to_vmem [thread:$0]  (!%p3221_p6), %s3872_s15, 64, %s508_s1, [#allocation18]  }
  0x80   : > { %3873 = sst [smem:[#allocation28_spill]] %s3326_s28  ;;  %p85_p5 = por %p84_p0, %p83_p7 }
  0x81   : > { %p3330_p8 = por %p3845_p1, %p89_p13  ;;  %p3334_p6 = por %p391_p2, %p83_p7 }
  0x82   : > { %p397_p9 = scmp.eq.s32.totalorder %s2216_s26, 1  ;;  %p2551_p10 = scmp.lt.s32.totalorder %s3041_s18, 2 }
  0x83   : > { %s3874_s29 = scalar_select %p3330_p8, 1, 0 }
  0x84   : > { %s3875_s1 = scalar_select %p3334_p6, 1, 0 }
  0x85   : > { %s531_s27 = sand.u32 1, %s3037_s12   ;;  %p3340_p11 = por %p397_p9, %p89_p13 }
  0x86   : > { %s2226_s21 = sshll.u32 %s531_s27, 1  ;;  %s2314_s19 = sshll.u32 %s3041_s18, 5 }
  0x87   : > { %s3876_s25 = scalar_select %p3340_p11, 1, 0 }
  0x88   : > { %s3877_s3 = sld [smem:[#allocation31_spill]]  ;;  %s535_s8 = scalar_lea.vmem [#allocation5], %s2226_s21 }
  0x89   : > { %s542_s9 = sshll.u32 %s535_s8, 4  ;;  %p3350_p7 = pnand %p2551_p10, %p85_p5  ;;  %s3354_s9 = int_to_ptr.vmem [resolvable:$true] %s542_s9 }
  0x8a   : > { %s3356_s10 = scalar_lea.sflag [#allocation6], %s531_s27 }
  0x8b   : > { %p2913_p0 = pneg %p3350_p7 }
  0x8e   : > { %s3348_s22 = scalar_lea.hbm %s3877_s3, %s2314_s19  ;;  %s2916_s21 = scalar_lea.hbm %s3877_s3, 64 }
  0x8f   : > { %s2911_s11 = scalar_lea.hbm %s3348_s22, 32  ;;  %p2917_p5 = scmp.lt.s32.totalorder %s3348_s22, %s3877_s3 }
  0x90   : > { %p2912_p12 = scmp.ne.s32.totalorder %s3348_s22, %s2911_s11  ;;  %p2918_p9 = scmp.lt.s32.totalorder %s2916_s21, %s2911_s11 }
  0x92   : > { %p2914_p13 = pnand %p2913_p0, %p2912_p12  ;;  %p2919_p10 = por %p2918_p9, %p2917_p5 }
  0x94   : > { %p2915_p2 = pneg %p2914_p13 }
  0x96   : > { %p2920_p4 = pnand %p2919_p10, %p2915_p2 }
  0x98   : > { %2923 = shalt.err (!%p2920_p4)
}
  0x99   : > { %s2924_s27 = scalar_lea.vmem %s3354_s9, 32  ;;  %s3076_s14 = smov [#allocation5]  }
  0x9a   : > { %p2925_p1 = scmp.ne.s32.totalorder %s3354_s9, %s2924_s27  ;;  %s2929_s15 = sshll.u32 %s3076_s14, 4  ;;  %s2930_s15 = int_to_ptr.vmem [resolvable:$false] %s2929_s15 }
  0x9b   : > { %s2931_s24 = scalar_lea.vmem %s2930_s15, 64  ;;  %p2932_p13 = scmp.lt.s32.totalorder %s3354_s9, %s2930_s15 }
  0x9c   : > { %p2927_p11 = pnand %p2925_p1, %p2913_p0  ;;  %p2933_p6 = scmp.lt.s32.totalorder %s2931_s24, %s2924_s27 }
  0x9e   : > { %p2928_p12 = pneg %p2927_p11  ;;  %p2934_p8 = por %p2933_p6, %p2932_p13 }
  0xa0   : > { %p2935_p3 = pnand %p2934_p8, %p2928_p12 }
  0xa2   : > { %2938 = shalt.err (!%p2935_p3)
}
  0xa3   : > { %s3879_s11 = smov 1   ;;  %s3880_s19 = smov 16  }
  0xa4   : > { %2539 = dma.hbm_to_vmem [thread:$0]  (!%p3350_p7), %s3348_s22, 32, %s3354_s9, %s3356_s10, %s3880_s19, %s3880_s19, %s3879_s11  }
  0xa5   : > { %p3881_p1 = scmp.ne.s32.totalorder %s3863_s20, 0 }
  0xa6   : > { %s3383_s14 = sand.u32 (!%p3881_p1), 1, %s3033_s30   ;;  %p3882_p3 = scmp.ne.s32.totalorder (!%p3881_p1), %s3874_s29, 0 }
  0xa7   : > { %563 = sbr.rel (%p3881_p1) target bundleno = 3213 (0xc8d), region = 80  ;;  %s2230_s15 = sshll.u32 (!%p3881_p1), %s3383_s14, 1 }
  0xa8   : > { %s566_s21 = scalar_lea.sflag (!%p3881_p1), [#allocation6], %s3383_s14  ;;  %s3387_s8 = scalar_lea.vmem (!%p3881_p1), [#allocation5], %s2230_s15 }
  0xac   : > { %3004 = dma.done.wait (%p3882_p3), %s566_s21, 32  }
  0xad   : > { %3006 = vsyncadd (%p3882_p3), %s566_s21, 4294967264  ;;  %p3883_p4 = scmp.eq.s32.totalorder %s3207_s2, 0 }
  0xaf   : > { %3008 = dma.done.wait (%p3883_p4), [#allocation9], 512   ;;  %p3884_p8 = pmov %p3883_p4 }
  0xb0   : > { %p3885_p6 = pmov %p3883_p4 }
  0xb1   : > { %3010 = vsyncadd (%p3884_p8), [#allocation9], 4294966784 }
  0xb2   : > { %3012 = dma.done.wait (%p3885_p6), [#allocation12], 512   ;;  %p3886_p11 = pmov %p3883_p4 }
  0xb3   : > { %p3887_p7 = pmov %p3883_p4 }
  0xb4   : > { %3014 = vsyncadd (%p3886_p11), [#allocation12], 4294966784 }
  0xb5   : > { %3016 = dma.done.wait (%p3887_p7), [#allocation15], 304   ;;  %p3888_p0 = pmov %p3883_p4 }
  0xb7   : > { %3018 = vsyncadd (%p3888_p0), [#allocation15], 4294966992  ;;  %p3889_p2 = pmov %p3888_p0 }
  0xb8   : > { %p3890_p5 = pmov %p3888_p0 }
  0xb9   : > { %3020 = dma.done.wait (%p3889_p2), [#allocation18], 64  }
  0xba   : > { %3022 = vsyncadd (%p3890_p5), [#allocation18], 4294967232  ;;  %s3410_s9 = sshll.u32 %s3207_s2, 1  ;;  %s3891_s6 = sld [smem:[#allocation30_spill]]  ;;  %v3423_v0 = vld [vmem:[%s3839_s16 + $0x1] ss:$0 sm:$0xff]   ;;  %v903_v46 = vlaneseq }
  0xbb   : > { %p656_p9 = scmp.lt.s32.totalorder %s3410_s9, 3  ;;  %v3428_v1 = vld [vmem:[%s3839_s16 + $0x3] ss:$0 sm:$0xff]  ;;  %v3433_v2 = vld [vmem:[%s3839_s16 + $0x4] ss:$0 sm:$0xff]  ;;  %vm693_vm0 = vcmask 523264  }
  0xbc   : > { %v3438_v3 = vld [vmem:[%s3839_s16 + $0x5] ss:$0 sm:$0xff]  ;;  %v3443_v4 = vld [vmem:[%s3839_s16 + $0x6] sm:$0x1]  ;;  %v3445_v5 = vld [vmem:[#allocation17 + $0x1] ss:$0 sm:$0xff] }
  0xbd   : > { %s657_s10 = scalar_select %p656_p9, %s3410_s9, 3  ;;  %v3447_v6 = vld [vmem:[#allocation17 + $0x2] ss:$0 sm:$0xff]  ;;  %v2660_v22 = vld [vmem:[%s3828_s5 + $0x10] sm:$0xff]   ;;  %v2661_v23 = vld [vmem:[%s3828_s5 + $0x8] sm:$0xff]   ;;  %v3077_v45 = vmov 0.0  }
  0xbe   : > { %s2238_s3 = sshll.u32 %s3383_s14, 5  ;;  %v2659_v21 = vld [vmem:[%s3828_s5 + $0x18] sm:$0xff]   ;;  %v2662_v24 = vld [vmem:[%s3828_s5] sm:$0xff]   ;;  %s894_s21 = sld [smem:[#allocation4 + %s3410_s9]]  ;;  %v3078_v47 = vmov 0   ;;  %v3478_v48 = vshrl.u32 %v903_v46, 7 }
  0xbf   : > { %s2315_s20 = sshll.u32 %s657_s10, 4  ;;  %s2243_s22 = sshll.u32 %s657_s10, 3  ;;  %2370 = vmatprep.subr.bf16.mxu0 %v2659_v21  ;;  %v2663_v43 = vld [vmem:[#allocation10 + $0x8] sm:$0xff]   ;;  %v2664_v44 = vld [vmem:[#allocation10] sm:$0xff]   ;;  %2658 = vset.pattern.permute.xlu1 %v3078_v47  ;;  %vm911_vm1 = vcmask 130048   ;;  %vm901_vm6 = vcmask 1040384  }
  0xc0   : > { %s660_s27 = scalar_lea.vmem %s3891_s6, %s2315_s20  ;;  %s667_s19 = scalar_lea.vmem %s3827_s4, %s2243_s22  ;;  %2371 = vmatpush3.bf16.msra.mxu0 %v2659_v21  ;;  %2382 = vmatprep.subr.bf16.mxu1 %v2663_v43  ;;  %v918_v49 = vadd.s32 8, %v3478_v48  ;;  %v919_v50 = vadd.s32 24, %v3478_v48  ;;  %v688_v62 = vld [vmem:[%s3387_s8 + $0x1] sm:$0x1]  ;;  %vm837_vm7 = vcmask 261120   ;;  %vm983_vm8 = vcmask 1041409  }
  0xc1   : > { %v683_v7 = vld [vmem:[%s660_s27 + $0x10] sm:$0xff]  ;;  %v3449_v8 = vld [vmem:[%s667_s19] sm:$0xff]  ;;  %v3451_v9 = vld [vmem:[%s667_s19 + $0x8] sm:$0xff]  ;;  %2372 = vmatprep.subr.bf16.mxu0 %v2660_v22  ;;  %2383 = vmatpush3.bf16.msra.mxu1 %v2663_v43  ;;  %s895_s10 = sadd.s32 1, %s3410_s9  ;;  %s897_s29 = sld [smem:[#allocation3 + %s3410_s9]]  ;;  %vm3079_vm9 = vmmov 0  }
  0xc2   : > { %v691_v10 = vmul.f32 %v683_v7, %v683_v7  ;;  %v681_v11 = vld [vmem:[%s660_s27] sm:$0xff]  ;;  %v684_v12 = vld [vmem:[%s660_s27 + $0x18] sm:$0xff]  ;;  %v682_v15 = vld [vmem:[%s660_s27 + $0x8] sm:$0xff]  ;;  %2384 = vmatprep.subr.bf16.mxu1 %v2664_v44  ;;  %s896_s20 = sld [smem:[#allocation4 + %s895_s10]]  ;;  %2657 = vset.pattern.permute.xlu0 %v3078_v47  ;;  %v2258_v53 = vadd.s32 4294967280, %v919_v50  ;;  %s3559_s28 = scalar_lea.vmem [#allocation19], %s2238_s3 }
  0xc3   : > { %v689_v13 = vmul.f32 %v681_v11, %v681_v11  ;;  %v692_v14 = vmul.f32 %v684_v12, %v684_v12  ;;  %v690_v17 = vmul.f32 %v682_v15, %v682_v15  ;;  %s898_s22 = sld [smem:[#allocation3 + %s895_s10]]  ;;  %s3573_s6 = smov 0  }
  0xc4   : > { %v700_v16 = vsel %vm693_vm0, %v691_v10, 0.0  ;;  %2373 = vmatpush3.bf16.msra.mxu0 %v2660_v22  ;;  %v909_v51 = vstv %s894_s21  ;;  %v2665_v22 = vld [vmem:[#allocation8 + $0x8] sm:$0xff]  }
  0xc5   : > { %701 = vadd.xlane.f32.xlu1 %v700_v16  ;;  %v694_v18 = vsel %vm693_vm0, %v689_v13, 0.0  ;;  %v703_v19 = vsel %vm693_vm0, %v692_v14, 0.0  ;;  %v697_v20 = vsel %vm693_vm0, %v690_v17, 0.0  ;;  %2374 = vmatprep.subr.bf16.mxu0 %v2661_v23  ;;  %vm922_vm2 = vcmp.ge.s32.totalorder %v918_v49, %v909_v51  ;;  %v2244_v13 = vld [vmem:[%s3839_s16] ss:$0 sm:$0xff] }
  0xc6   : > { %695 = vadd.xlane.f32.xlu0 %v694_v18  ;;  %2385 = vmatpush3.bf16.msra.mxu1 %v2664_v44  ;;  %vm921_vm3 = vcmp.ge.s32.totalorder %v3478_v48, %v909_v51  ;;  %v927_v54 = vsel %vm922_vm2, 1, %v3078_v47 }
  0xc7   : > { %2390 = vmatprep.subr.bf16.mxu1 %v3077_v45  ;;  %v926_v57 = vsel %vm921_vm3, 1, %v3078_v47  ;;  %v899_v59 = vstv %s897_s29 }
  0xc8   : > { %2375 = vmatpush3.bf16.msra.mxu0 %v2661_v23  ;;  %v910_v52 = vstv %s896_s20 }
  0xc9   : > { %704 = vadd.xlane.f32.xlu1 %v703_v19  ;;  %2376 = vmatprep.subr.bf16.mxu0 %v2662_v24  ;;  %v912_v55 = vsel %vm911_vm1, %v909_v51, %v910_v52  ;;  %vm923_vm4 = vcmp.ge.s32.totalorder %v3478_v48, %v910_v52  ;;  %vm924_vm5 = vcmp.ge.s32.totalorder %v2258_v53, %v910_v52  ;;  %v900_v60 = vstv %s898_s22 }
  0xca   : > { %698 = vadd.xlane.f32.xlu0 %v697_v20  ;;  %v928_v56 = vsel %vm923_vm4, 1, %v3078_v47  ;;  %v929_v58 = vsel %vm924_vm5, 1, %v3078_v47  ;;  %v902_v61 = vsel %vm901_vm6, %v899_v59, %v900_v60 }
  0xcc   : > { %2377 = vmatpush3.bf16.msra.mxu0 %v2662_v24 }
  0xda   : > { %934 = vperm.xlu1 %2658, %v927_v54  }
  0xde   : > { %937 = vperm.xlu1 %2658, %v928_v56   ;;  %v2261_v56 = vld [vmem:[%s3839_s16 + $0x2] ss:$0 sm:$0xff] }
  0xe0   : > { %931 = vperm.xlu0 %2657, %v926_v57  }
  0xe2   : > { %940 = vperm.xlu1 %2658, %v929_v58  }
  0xe6   : > { %906 = vperm.xlu1 %2658, %v902_v61  }
 0x14e   : > { %v702_v25 = vpop.xlane.xlu1 %701 }
 0x14f   : > { %v708_v26 = vmax.f32 %v702_v25, 1e-24  ;;  %v696_v27 = vpop.xlane.xlu0 %695 }
 0x150   : > { %v706_v28 = vmax.f32 %v696_v27, 1e-24 }
 0x151   : > { %2667 = vrsqrt.f32 %v708_v26  ;;  %v2666_v26 = vld [vmem:[#allocation8] sm:$0xff]  }
 0x152   : > { %v705_v29 = vpop.xlane.xlu1 %704  ;;  %2669 = vrsqrt.f32 %v706_v28 }
 0x153   : > { %v709_v30 = vmax.f32 %v705_v29, 1e-24  ;;  %v699_v31 = vpop.xlane.xlu0 %698  ;;  %v3080_v29 = vmov 1  }
 0x154   : > { %v707_v32 = vmax.f32 %v699_v31, 1e-24 }
 0x155   : > { %2671 = vrsqrt.f32 %v709_v30  ;;  %v913_v30 = vsel %vm911_vm1, 0, %v3080_v29 }
 0x156   : > { %2673 = vrsqrt.f32 %v707_v32  ;;  %v914_v31 = vmul.u32 16, %v913_v30  ;;  %v3509_v32 = vand.u32 127, %v903_v46 }
 0x15e   : > { %v2668_v33 = vpop.eup %2667 }
 0x15f   : > { %v2670_v34 = vpop.eup %2669  ;;  %v716_v37 = vmul.f32 %v2668_v33, %v683_v7  ;;  %v969_v7 = vpack.c.bf16 %v688_v62, %v688_v62  ;;  %v3512_v33 = vsub.s32 0, %v3478_v48 }
 0x160   : > { %v714_v39 = vmul.f32 %v2670_v34, %v681_v11  ;;  %v687_v11 = vld [vmem:[%s3387_s8] sm:$0x1]  ;;  %v935_v34 = vpop.permute.xlu1 %934 }
 0x161   : > { %v968_v14 = vpack.c.bf16 %v687_v11, %v687_v11  ;;  %vm943_vm13 = vcmp.eq.s32.totalorder %v935_v34, 1 }
 0x162   : > { %v2672_v35 = vpop.eup %2671 }
 0x163   : > { %v2674_v36 = vpop.eup %2673  ;;  %v717_v38 = vmul.f32 %v2672_v35, %v684_v12  ;;  %v980_v23 = vunpack.c.l.b16 %v968_v14  ;;  %v915_v35 = vsub.s32 %v3509_v32, %v914_v31  ;;  %v3900_v14 = vmov %v3423_v0 }
 0x164   : > { %v715_v40 = vmul.f32 %v2674_v36, %v682_v15  ;;  %v981_v15 = vunpack.c.l.b16 %v969_v7  ;;  %v3516_v36 = vrot.slane %v913_v30, %v3512_v33 }
 0x165   : > { %v719_v41 = vpack.c.bf16 %v717_v38, %v716_v37  ;;  %vm925_vm10 = vcmp.ge.s32.totalorder %v915_v35, %v912_v55  ;;  %v938_v37 = vpop.permute.xlu1 %937 }
 0x166   : > { %v718_v42 = vpack.c.bf16 %v715_v40, %v714_v39  ;;  %v982_v24 = vrot.slane %v981_v15, 7  ;;  %vm2259_vm11 = vcmp.ne.s32.totalorder %v3516_v36, 0  ;;  %vm2260_vm12 = vcmp.ne.s32.totalorder %v3516_v36, 1 }
 0x167   : > { %v946_v38 = vsel %vm925_vm10, 1, %v3078_v47  ;;  %v2252_v47 = vld [vmem:[#allocation17] ss:$0 sm:$0xff]  ;;  %v3901_v15 = vmov %v3423_v0 }
 0x168   : > { %2378 = vmatprep.mubr.msk.bf16.mxu0 %vm693_vm0, %v718_v42  ;;  %v984_v27 = vsel %vm983_vm8, %v982_v24, %v980_v23  ;;  %v950_v39 = vrot.slane %v946_v38, %v3512_v33 }
 0x169   : > { %2379 = vmatmul.mubr.msk.bf16.vlgmr.msra.gmra.mxu0 %vm693_vm0, %v719_v41  ;;  %v985_v28 = vpack.c.b16 %v984_v27, %v984_v27  ;;  %v941_v40 = vpop.permute.xlu1 %940  ;;  %vm944_vm0 = vcmp.eq.s32.totalorder %v938_v37, 1 }
 0x16a   : > { %vm951_vm14 = vcmp.eq.s32.totalorder %v950_v39, 1  ;;  %vm945_vm1 = vcmp.eq.s32.totalorder %v941_v40, 1 }
 0x16b   : > { %vm3522_vm15 = vmor %vm943_vm13, %vm951_vm14 }
 0x16c   : > { %vm3530_vm3 = vmor %vm944_vm0, %vm951_vm14 }
 0x16d   : > { %v3526_v42 = vpop.permute.xlu1 %906  ;;  %vm3534_vm4 = vmor %vm945_vm1, %vm951_vm14 }
 0x16e   : > { %vm908_vm2 = vcmp.ge.s32.totalorder %v3509_v32, %v3526_v42 }
 0x229   : > { %v2380_v63 = vpop.f32.mrf.mxu0 }
 0x22a   : > { %v805_v20 = vadd.f32 %v2380_v63, %v2244_v13 }
 0x22b   : > { %v796_v10 = vpop.f32.mrf.mxu0 }
 0x22c   : > { %v797_v18 = vadd.f32 %v2244_v13, %v796_v10 }
 0x22d   : > { %v2381_v12 = vpop.f32.mrf.mxu0 }
 0x22e   : > { %v808_v16 = vadd.f32 %v2381_v12, %v2244_v13 }
 0x22f   : > { %v799_v17 = vpop.f32.mrf.mxu0 }
 0x230   : > { %v800_v19 = vadd.f32 %v2244_v13, %v799_v17  ;;  %v3497_v25 = vpack.c.bf16 %v808_v16, %v805_v20  ;;  %v3902_v16 = vmov %v3423_v0 }
 0x232   : > { %v3495_v21 = vpack.c.bf16 %v800_v19, %v797_v18 }
 0x234   : > { %2386 = vmatprep.mubr.msk.bf16.mxu1 %vm837_vm7, %v3495_v21 }
 0x235   : > { %2387 = vmatmul.mubr.msk.bf16.vlgmr.msra.gmra.mxu1 %vm837_vm7, %v3497_v25 }
 0x236   : > { %2391 = vmatpush3.bf16.msra.mxu1 %v2665_v22  ;;  %2394 = vmatprep.mubr.msk.bf16.mxu1 %vm3079_vm9, %v3077_v45 }
 0x237   : > { %2392 = vmatprep.subr.bf16.mxu1 %v3077_v45  ;;  %v932_v45 = vpop.permute.xlu0 %931 }
 0x238   : > { %vm942_vm5 = vcmp.eq.s32.totalorder %v932_v45, 1 }
 0x239   : > { %vm3538_vm6 = vmor %vm942_vm5, %vm951_vm14 }
 0x23a   : > { %2393 = vmatpush3.bf16.msra.mxu1 %v2666_v26 }
 0x23d   : > { %2395 = vmatmul.mubr.msk.bf16.vlgmr.msra.gmra.mxu1 %vm837_vm7, %v985_v28 }
 0x2f5   : > { %v2388_v49 = vpop.f32.mrf.mxu1 }
 0x2f6   : > { %v3542_v50 = vadd.f32 %v2388_v49, %v2252_v47 }
 0x2f7   : > { %v878_v51 = vpop.f32.mrf.mxu1 }
 0x2f8   : > { %v3544_v52 = vadd.f32 %v2252_v47, %v878_v51 }
 0x2f9   : > { %v2389_v53 = vpop.f32.mrf.mxu1 }
 0x2fa   : > { %v3546_v54 = vadd.f32 %v2389_v53, %v2252_v47 }
 0x2fb   : > { %v881_v55 = vpop.f32.mrf.mxu1 }
 0x2fc   : > { %v3551_v57 = vadd.f32 %v2252_v47, %v881_v55 }
 0x2fd   : > { %v1035_v58 = vpop.f32.mrf.mxu1 }
 0x2fe   : > { %v1036_v59 = vadd.f32 %v2261_v56, %v1035_v58 }
 0x2ff   : > { %v2396_v60 = vpop.f32.mrf.mxu1 }
 0x300   : > { %v1042_v61 = vmin.f32 %v1036_v59, 0.0  ;;  %vm1041_vm9 = vcmp.gt.f32.partialorder %v1036_v59, 0.0 }
 0x301   : > { %v1038_v62 = vpop.f32.mrf.mxu1 }
 0x302   : > { %v1043_v63 = vmul.f32 1.442695, %v1042_v61 }
 0x303   : > { %v2397_v7 = vpop.f32.mrf.mxu1 }
 0x304   : > { %2675 = vpow2.f32 %v1043_v63 }
 0x311   : > { %v2676_v10 = vpop.eup %2675 }
 0x312   : > { %v2265_v11 = vadd.f32 -1.0, %v2676_v10 }
 0x314   : > { %v3553_v12 = vsel %vm1041_vm9, %v1036_v59, %v2265_v11 }
 0x315   : > { %v1047_v13 = vpack.c.bf16 %v3553_v12, %v3553_v12 }
 0x316 LB: >> { %2480 = vpush %v3443_v4  ;;  %v3081_v17 = vmov 0.0   ;;  %vm3082_vm10 = vmmov 0   ;;  %s2316_s3 = sshll.u32 %s3061_s6, 4  ;;  %v3083_v20 = vmov 1966171168   ;;  %s1065_s19 = scalar_lea.vmem [#allocation16], %s3061_s6  ;;  %v1184_v58 = vsub.s32 %v3509_v32, %v3478_v48  ;;  %s3061_s6 = sphi %s3573_s6, %s1053_s6   ;;  %v3057_v0 = vphi %v3423_v0, %v3907_v0   ;;  %v3053_v16 = vphi %v3902_v16, %v3906_v16   ;;  %v3049_v15 = vphi %v3901_v15, %v3905_v15   ;;  %v3045_v14 = vphi %v3900_v14, %v3904_v14  }
 0x317   : >> { %2398 = vmatprep.subr.bf16.mxu0 %v3081_v17  ;;  %2402 = vmatprep.mubr.msk.bf16.mxu0 %vm3082_vm10, %v3081_v17  ;;  %s1060_s11 = scalar_lea.vmem %s3830_s7, %s2316_s3  ;;  %v1135_v22 = vunpack.c.l.s4 %v3083_v20  ;;  %v2268_v24 = vld [vmem:[%s1065_s19] ss:$0 sm:$0xff]  ;;  %vm1193_vm13 = vcmask 58368   ;;  %v3621_v20 = vpack.c.bf16 %v3053_v16, %v3057_v0  ;;  %s3084_s21 = smov 32  }
 0x318   : >> { %2406 = vmatprep.subr.bf16.mxu1 %v3081_v17  ;;  %2410 = vmatprep.mubr.msk.bf16.mxu1 %vm3082_vm10, %v3081_v17  ;;  %v2677_v18 = vld [vmem:[%s1060_s11 + $0x8] sm:$0xff]   ;;  %v2678_v19 = vld [vmem:[%s1060_s11] sm:$0xff]   ;;  %s3085_s10 = smov 64   ;;  %s3086_s20 = smov 96  }
 0x319   : >> { %2399 = vmatpush3.bf16.msra.mxu0 %v2677_v18  ;;  %v1136_v23 = vunpack.c.0.s8 %v1135_v22  ;;  %v2679_v18 = vld [vmem:[#allocation11 + $0x8] sm:$0xff]   ;;  %v3627_v22 = vpack.c.bf16 %v3045_v14, %v3049_v15  ;;  %s3903_s9 = sld [smem:[#allocation37_spill]]  ;;  %s1053_s6 = sadd.s32 1, %s3061_s6  }
 0x31a   : >> { %2400 = vmatprep.subr.bf16.mxu0 %v3081_v17  ;;  %p1050_p10 = scmp.ge.s32.totalorder %s1053_s6, 3  }
 0x31b   : >> { %v3602_v28 = vsub.s32 %v1136_v23, %v3478_v48  ;;  %s2318_s22 = sshll.u32 (%p1050_p10), %s3207_s2, 9  ;;  %s2032_s26 = sshll.u32 (%p1050_p10), %s3559_s28, 4  ;;  %s3776_s26 = int_to_ptr.vmem [resolvable:$true] %s2032_s26 }
 0x31c   : > { %s3774_s3 = scalar_lea.hbm (%p1050_p10), %s3840_s17, %s2318_s22  ;;  %s2018_s2 = scalar_lea.sflag (%p1050_p10), [#allocation7], %s3383_s14 }
 0x31d   : >> { %2401 = vmatpush3.bf16.msra.mxu0 %v2678_v19  ;;  %v2680_v19 = vld [vmem:[#allocation11] sm:$0xff]   ;;  %s2939_s27 = scalar_lea.vmem (%p1050_p10), %s3776_s26, 512  ;;  %p3908_p13 = scmp.ne.s32.totalorder (%p1050_p10), %s3875_s1, 0 }
 0x31e   : >> { %2414 = vmatprep.subr.bf16.mxu0 %v2679_v18  ;;  %p2940_p12 = scmp.ne.s32.totalorder (%p1050_p10), %s3776_s26, %s2939_s27  ;;  %s3087_s24 = smov (%p1050_p10), [#allocation19]  }
 0x31f   : > { %s2943_s11 = sshll.u32 (%p1050_p10), %s3087_s24, 4  ;;  %s2944_s11 = int_to_ptr.vmem [resolvable:$false] %s2943_s11 }
 0x320   : >> { %2403 = vmatmul.mubr.msk.bf16.vlgmr.msra.gmra.mxu0 %vm837_vm7, %v1047_v13  ;;  %p2941_p1 = pnand (%p1050_p10), %p2940_p12, %p3908_p13  ;;  %s2945_s19 = scalar_lea.vmem (%p1050_p10), %s2944_s11, 1024 }
 0x321   : >> { %2415 = vmatpush3.bf16.msra.mxu0 %v2679_v18  ;;  %2418 = vmatprep.mubr.msk.bf16.mxu0 %vm837_vm7, %v3621_v20  ;;  %p2946_p4 = scmp.lt.s32.totalorder (%p1050_p10), %s3776_s26, %s2944_s11  ;;  %p2947_p8 = scmp.lt.s32.totalorder (%p1050_p10), %s2945_s19, %s2939_s27 }
 0x322   : >> { %2416 = vmatprep.subr.bf16.mxu0 %v2680_v19  ;;  %p2942_p3 = pneg (%p1050_p10), %p2941_p1 }
 0x323   : > { %p2948_p6 = por (%p1050_p10), %p2947_p8, %p2946_p4 }
 0x325   : >> { %2417 = vmatpush3.bf16.msra.mxu0 %v2680_v19  ;;  %p2949_p11 = pnand (%p1050_p10), %p2948_p6, %p2942_p3 }
 0x328   : >> { %2419 = vmatmul.mubr.msk.bf16.vlgmr.msra.gmra.mxu0 %vm837_vm7, %v3627_v22 }
 0x347   : >> { %s2481_s15 = spop %2480 }
 0x348   : >> { %v1176_v55 = vstv %s2481_s15 }
 0x3e0   : >> { %v1122_v26 = vpop.f32.mrf.mxu0 }
 0x3e1   : >> { %v1123_v27 = vadd.f32 %v2268_v24, %v1122_v26 }
 0x3e2   : >> { %v2404_v29 = vpop.f32.mrf.mxu0 }
 0x3e3   : >> { %v1132_v30 = vmul.f32 %v3438_v3, %v1123_v27  ;;  %v1214_v29 = vsub.s32 1, %v3478_v48 }
 0x3e4   : >> { %v1125_v31 = vpop.f32.mrf.mxu0 }
 0x3e5   : >> { %v1140_v34 = vrot.slane %v1132_v30, %v3602_v28 }
 0x3e6   : >> { %v2405_v35 = vpop.f32.mrf.mxu0 }
 0x3e7   : >> { %v1148_v37 = vrot.slane %v1140_v34, %v3602_v28  ;;  %v1141_v38 = vcombine.high %v1140_v34, %v1140_v34  ;;  %v2681_v34 = vld [vmem:[#allocation14 + $0x8] sm:$0xff]   ;;  %v2682_v35 = vld [vmem:[#allocation14] sm:$0xff]  }
 0x3e8   : >> { %2407 = vmatpush3.bf16.msra.mxu1 %v2681_v34 }
 0x3e9   : >> { %v1159_v39 = vrot.slane %v1148_v37, %v3512_v33  ;;  %v1155_v40 = vrot.slane %v1141_v38, %v3602_v28  ;;  %2408 = vmatprep.subr.bf16.mxu1 %v3081_v17  ;;  %v2683_v37 = vld [vmem:[#allocation13 + $0x8] sm:$0xff]   ;;  %v2420_v38 = vpop.f32.mrf.mxu0 }
 0x3eb   : >> { %v1166_v45 = vmul.f32 %v1159_v39, %v3449_v8  ;;  %v1163_v47 = vrot.slane %v1155_v40, %v3512_v33 }
 0x3ec   : >> { %2409 = vmatpush3.bf16.msra.mxu1 %v2682_v35 }
 0x3ed   : >> { %v1168_v49 = vsel %vm837_vm7, %v1166_v45, 0.0  ;;  %v1167_v51 = vmul.f32 %v1163_v47, %v3451_v9  ;;  %2422 = vmatprep.subr.bf16.mxu1 %v2683_v37 }
 0x3ee   : >> { %1169 = vadd.xlane.f32.xlu0 %v1168_v49  ;;  %v1368_v49 = vpop.f32.mrf.mxu0 }
 0x3ef   : >> { %v1171_v53 = vsel %vm837_vm7, %v1167_v51, 0.0  ;;  %v1369_v18 = vadd.f32 %v3445_v5, %v1368_v49 }
 0x3f2   : >> { %1172 = vadd.xlane.f32.xlu0 %v1171_v53 }
 0x477   : >> { %v1170_v56 = vpop.xlane.xlu0 %1169 }
 0x478   : >> { %v1178_v59 = vadd.f32 %v1176_v55, %v1170_v56 }
 0x47a   : >> { %v1185_v62 = vrot.slane %v1178_v59, %v1184_v58 }
 0x47b   : >> { %v1173_v60 = vpop.xlane.xlu0 %1172 }
 0x47c   : >> { %v1179_v61 = vadd.f32 %v1176_v55, %v1173_v60 }
 0x47e   : >> { %v1189_v63 = vrot.slane %v1179_v61, %v1184_v58  ;;  %v2421_v58 = vpop.f32.mrf.mxu0 }
 0x47f   : >> { %v1380_v34 = vadd.f32 %v2421_v58, %v3445_v5 }
 0x480   : >> { %v1190_v7 = vsel %vm983_vm8, %v1189_v63, %v1185_v62  ;;  %v1371_v62 = vpop.f32.mrf.mxu0 }
 0x481   : >> { %v1192_v10 = vsel %vm908_vm2, -1e+30, %v1190_v7  ;;  %v1372_v19 = vadd.f32 %v3445_v5, %v1371_v62 }
 0x482   : >> { %v1194_v11 = vsel %vm1193_vm13, %v1192_v10, -inf }
 0x483   : >> { %1195 = vmax.xlane.f32.xlu1 %v1194_v11 }
 0x50c   : >> { %v1196_v23 = vpop.xlane.xlu1 %1195 }
 0x50d   : >> { %v1197_v24 = vsub.f32 %v1192_v10, %v1196_v23 }
 0x50f   : >> { %v1198_v26 = vmul.f32 1.442695, %v1197_v24 }
 0x511   : >> { %2689 = vpow2.f32 %v1198_v26 }
 0x51e   : >> { %v2690_v27 = vpop.eup %2689 }
 0x51f   : >> { %v1200_v0 = vsel %vm1193_vm13, %v2690_v27, 0.0 }
 0x520   : >> { %1201 = vadd.xlane.f32.xlu1 %v1200_v0  ;;  %v1383_v0 = vmul.f32 %v1369_v18, %v3544_v52 }
 0x5a9   : >> { %v1202_v16 = vpop.xlane.xlu1 %1201 }
 0x5aa   : >> { %2691 = vrcp.f32 %v1202_v16  ;;  %v1384_v16 = vmul.f32 %v1372_v19, %v3551_v57 }
 0x5b7   : >> { %v2692_v30 = vpop.eup %2691 }
 0x5b8   : >> { %v1204_v31 = vmul.f32 %v2692_v30, %v2690_v27 }
 0x5ba   : >> { %v1215_v14 = vrot.slane %v1204_v31, %v1214_v29  ;;  %v1208_v15 = vrot.slane %v1204_v31, %v3512_v33 }
 0x5bc   : >> { %1217 = vbcast.lane.b32.xlu1 %v1215_v14, 256  ;;  %1210 = vbcast.lane.b32.xlu0 %v1208_v15, 256  ;;  %v1391_v14 = vpack.c.bf16 %v1384_v16, %v1383_v0  ;;  %v1377_v15 = vadd.f32 %v2420_v38, %v3445_v5  ;;  %v1388_v16 = vadd.f32 %v1372_v19, %v3551_v57 }
 0x62e   : >> { %v1218_v39 = vpop.permute.xlu1 %1217  ;;  %v1211_v40 = vpop.permute.xlu0 %1210 }
 0x62f   : >> { %v1220_v45 = vmul.f32 %v1218_v39, %v3451_v9  ;;  %v1219_v47 = vmul.f32 %v1211_v40, %v3449_v8  ;;  %v2684_v39 = vld [vmem:[#allocation13] sm:$0xff]   ;;  %v1385_v40 = vmul.f32 %v1377_v15, %v3542_v50 }
 0x631   : >> { %v1228_v51 = vsel %vm837_vm7, %v1220_v45, 0.0  ;;  %v1221_v53 = vsel %vm837_vm7, %v1219_v47, 0.0  ;;  %v1386_v45 = vmul.f32 %v1380_v34, %v3546_v54 }
 0x632   : >> { %v1229_v55 = vrot.slane %v1228_v51, 4  ;;  %v1222_v56 = vrot.slane %v1221_v53, 4 }
 0x633   : >> { %v1392_v47 = vpack.c.bf16 %v1386_v45, %v1385_v40 }
 0x634   : >> { %v1230_v59 = vadd.f32 %v1229_v55, %v1228_v51  ;;  %v1223_v17 = vadd.f32 %v1222_v56, %v1221_v53 }
 0x636   : >> { %v1231_v60 = vrot.slane %v1230_v59, 2  ;;  %v1224_v61 = vrot.slane %v1223_v17, 2 }
 0x638   : >> { %v1232_v63 = vadd.f32 %v1231_v60, %v1230_v59  ;;  %v1225_v7 = vadd.f32 %v1224_v61, %v1223_v17 }
 0x63a   : >> { %v1233_v10 = vrot.slane %v1232_v63, 1  ;;  %v1226_v11 = vrot.slane %v1225_v7, 1 }
 0x63c   : >> { %v1234_v23 = vadd.f32 %v1233_v10, %v1232_v63  ;;  %v1227_v24 = vadd.f32 %v1226_v11, %v1225_v7  ;;  %v1389_v11 = vadd.f32 %v1377_v15, %v3542_v50 }
 0x63e   : >> { %v1236_v26 = vpack.c.bf16 %v1234_v23, %v1234_v23  ;;  %v1235_v27 = vpack.c.bf16 %v1227_v24, %v1227_v24 }
 0x640   : >> { %v1247_v29 = vunpack.c.l.b16 %v1235_v27  ;;  %v1248_v30 = vunpack.c.l.b16 %v1236_v26  ;;  %v1390_v26 = vadd.f32 %v1380_v34, %v3546_v54 }
 0x642   : >> { %v1249_v31 = vsel %vm983_vm8, %v1248_v30, %v1247_v29 }
 0x643   : >> { %v1250_v35 = vpack.c.b16 %v1249_v31, %v1249_v31 }
 0x645   : >> { %2411 = vmatmul.mubr.msk.bf16.vlgmr.msra.gmra.mxu1 %vm837_vm7, %v1250_v35 }
 0x646   : >> { %2423 = vmatpush3.bf16.msra.mxu1 %v2683_v37  ;;  %2426 = vmatprep.mubr.msk.bf16.mxu1 %vm837_vm7, %v1391_v14  ;;  %v1387_v14 = vadd.f32 %v1369_v18, %v3544_v52 }
 0x647   : >> { %2424 = vmatprep.subr.bf16.mxu1 %v2684_v39 }
 0x64a   : >> { %2425 = vmatpush3.bf16.msra.mxu1 %v2684_v39 }
 0x64d   : >> { %2427 = vmatmul.mubr.msk.bf16.vlgmr.msra.gmra.mxu1 %vm837_vm7, %v1392_v47 }
 0x705   : >> { %v1300_v49 = vpop.f32.mrf.mxu1 }
 0x706   : >> { %v1301_v38 = vadd.f32 %v3447_v6, %v1300_v49 }
 0x707   : >> { %v2412_v51 = vpop.f32.mrf.mxu1 }
 0x708   : >> { %v1491_v53 = vrot.slane %v1301_v38, %v3602_v28 }
 0x709   : >> { %v1303_v55 = vpop.f32.mrf.mxu1 }
 0x70a   : >> { %v1492_v56 = vcombine.high %v1491_v53, %v1491_v53  ;;  %v1499_v63 = vrot.slane %v1491_v53, %v3602_v28 }
 0x70b   : >> { %v2413_v37 = vpop.f32.mrf.mxu1 }
 0x70c   : >> { %v1506_v58 = vrot.slane %v1492_v56, %v3602_v28  ;;  %v1510_v7 = vrot.slane %v1499_v63, %v3512_v33 }
 0x70d   : >> { %v2428_v59 = vpop.f32.mrf.mxu1 }
 0x70e   : >> { %1472 = vrot.lane.b32.xlu1 %v2428_v59, %s3084_s21  ;;  %v1514_v17 = vrot.slane %v1506_v58, %v3512_v33 }
 0x70f   : >> { %v1449_v60 = vpop.f32.mrf.mxu1 }
 0x710   : >> { %1517 = vrot.lane.b32.xlu0 %v1514_v17, %s3085_s10 }
 0x711   : >> { %v2429_v61 = vpop.f32.mrf.mxu1 }
 0x712   : >> { %1474 = vrot.lane.b32.xlu1 %v2429_v61, %s3084_s21 }
 0x713   : >> { %v1452_v62 = vpop.f32.mrf.mxu1 }
 0x714   : >> { %1470 = vrot.lane.b32.xlu0 %v1452_v62, %s3084_s21 }
 0x716   : >> { %1468 = vrot.lane.b32.xlu1 %v1449_v60, %s3084_s21 }
 0x71a   : >> { %1515 = vrot.lane.b32.xlu1 %v1510_v7, %s3085_s10 }
 0x780   : >> { %v1473_v10 = vpop.permute.xlu1 %1472 }
 0x781   : >> { %v1482_v24 = vadd.f32 %v1473_v10, %v1389_v11 }
 0x782   : >> { %v1518_v23 = vpop.permute.xlu0 %1517 }
 0x783   : >> { %v1523_v30 = vmul.f32 %v1518_v23, %v1482_v24 }
 0x784   : >> { %v1475_v27 = vpop.permute.xlu1 %1474 }
 0x785   : >> { %v1483_v0 = vadd.f32 %v1475_v27, %v1390_v26 }
 0x786   : >> { %v1471_v29 = vpop.permute.xlu0 %1470 }
 0x787   : >> { %v1524_v28 = vmul.f32 %v1518_v23, %v1483_v0  ;;  %v1526_v31 = vpack.c.bf16 %v1483_v0, %v1482_v24  ;;  %v1481_v39 = vadd.f32 %v1471_v29, %v1388_v16 }
 0x788   : >> { %v1469_v35 = vpop.permute.xlu1 %1468 }
 0x789   : >> { %v1480_v40 = vadd.f32 %v1469_v35, %v1387_v14  ;;  %v3667_v45 = vpack.c.bf16 %v1524_v28, %v1523_v30 }
 0x78b   : >> { %v1525_v15 = vpack.c.bf16 %v1481_v39, %v1480_v40  ;;  %1539 = vrot.lane.b32.xlu0 %v3667_v45, %s3085_s10 }
 0x78c   : >> { %v1516_v34 = vpop.permute.xlu1 %1515 }
 0x78d   : >> { %v1521_v47 = vmul.f32 %v1516_v34, %v1480_v40  ;;  %v1522_v49 = vmul.f32 %v1516_v34, %v1481_v39 }
 0x78f   : >> { %v3671_v38 = vpack.c.bf16 %v1522_v49, %v1521_v47  ;;  %1531 = vrot.lane.b32.xlu0 %v1525_v15, %s3086_s20 }
 0x791   : >> { %1537 = vrot.lane.b32.xlu1 %v3671_v38, %s3085_s10 }
 0x795   : >> { %1533 = vrot.lane.b32.xlu1 %v1526_v31, %s3086_s20 }
 0x7fd   : >> { %v1540_v18 = vpop.permute.xlu0 %1539 }
 0x7fe   : >> { %v1551_v19 = vsel %vm837_vm7, %v1540_v18, 0  ;;  %2478 = vmatprep.subr.msk.bf16.mxu0 %vm837_vm7, %v1540_v18 }
 0x7ff   : >> { %2431 = vmatpush3.bf16.xpose.msra.mxu0 %v1551_v19 }
 0x801   : >> { %v1532_v51 = vpop.permute.xlu0 %1531 }
 0x802   : >> { %2434 = vmatprep.mubr.msk.bf16.mxu0 %vm837_vm7, %v1532_v51 }
 0x803   : >> { %v1538_v53 = vpop.permute.xlu1 %1537 }
 0x804   : >> { %2479 = vmatprep.subr.msk.bf16.mxu0 %vm837_vm7, %v1538_v53  ;;  %v1548_v55 = vsel %vm837_vm7, %v1538_v53, 0 }
 0x807   : >> { %2433 = vmatpush3.bf16.xpose.msra.mxu0 %v1548_v55  ;;  %v1534_v56 = vpop.permute.xlu1 %1533 }
 0x80e   : >> { %2435 = vmatmul.mubr.msk.bf16.vlgmr.msra.gmra.mxu0 %vm837_vm7, %v1534_v56 }
 0x80f   : >> { %2458 = vmatprep.mubr.msk.bf16.mxu0 %vm837_vm7, %v3621_v20 }
 0x8ce   : >> { %v2436_v37 = vpop.f32.mrf.mxu0 }
 0x8cf   : >> { %v1604_v58 = vmul.f32 0.17677669, %v2436_v37 }
 0x8d0   : >> { %v1587_v59 = vpop.f32.mrf.mxu0 }
 0x8d1   : >> { %v1602_v17 = vmul.f32 0.17677669, %v1587_v59  ;;  %v1608_v61 = vsel %vm3530_vm3, -1e+30, %v1604_v58 }
 0x8d2   : >> { %v2437_v60 = vpop.f32.mrf.mxu0  ;;  %v1612_v20 = vsel %vm2260_vm12, -2e+30, %v1608_v61 }
 0x8d3   : >> { %v1606_v62 = vsel %vm3538_vm6, -1e+30, %v1602_v17  ;;  %v1605_v63 = vmul.f32 0.17677669, %v2437_v60  ;;  %v1620_v0 = vsel %vm837_vm7, %v1612_v20, -inf  ;;  %v2685_v60 = vld [vmem:[%s3903_s9 + $0x8] sm:$0xff]  }
 0x8d4   : >> { %v1610_v7 = vsel %vm2259_vm11, -2e+30, %v1606_v62  ;;  %v1590_v10 = vpop.f32.mrf.mxu0  ;;  %2454 = vmatprep.subr.bf16.mxu0 %v2685_v60 }
 0x8d5   : >> { %v1603_v11 = vmul.f32 0.17677669, %v1590_v10  ;;  %v1614_v23 = vsel %vm837_vm7, %v1610_v7, -inf  ;;  %v1609_v24 = vsel %vm3534_vm4, -1e+30, %v1605_v63  ;;  %2455 = vmatpush3.bf16.msra.mxu0 %v2685_v60 }
 0x8d6   : >> { %1615 = vmax.xlane.f32.xlu0 %v1614_v23  ;;  %v1613_v29 = vsel %vm2260_vm12, -2e+30, %v1609_v24 }
 0x8d7   : >> { %v1607_v26 = vsel %vm3522_vm15, -1e+30, %v1603_v11  ;;  %v1623_v30 = vsel %vm837_vm7, %v1613_v29, -inf }
 0x8d8   : >> { %v1611_v27 = vsel %vm2259_vm11, -2e+30, %v1607_v26 }
 0x8d9   : >> { %v1617_v16 = vsel %vm837_vm7, %v1611_v27, -inf }
 0x8da   : >> { %1621 = vmax.xlane.f32.xlu0 %v1620_v0  ;;  %1618 = vmax.xlane.f32.xlu1 %v1617_v16 }
 0x8de   : >> { %1624 = vmax.xlane.f32.xlu0 %v1623_v30  ;;  %v2686_v30 = vld [vmem:[%s3903_s9] sm:$0xff]  }
 0x8df   : >> { %2456 = vmatprep.subr.bf16.mxu0 %v2686_v30 }
 0x8e0   : >> { %2457 = vmatpush3.bf16.msra.mxu0 %v2686_v30 }
 0x8e3   : >> { %2459 = vmatmul.mubr.msk.bf16.vlgmr.msra.gmra.mxu0 %vm837_vm7, %v3627_v22 }
 0x95f   : >> { %v1616_v28 = vpop.xlane.xlu0 %1615 }
 0x960   : >> { %v1626_v31 = vsub.f32 %v1610_v7, %v1616_v28  ;;  %v2687_v28 = vld [vmem:[%s3903_s9 + $0x18] sm:$0xff]  }
 0x962   : >> { %v1630_v40 = vmul.f32 1.442695, %v1626_v31  ;;  %v2688_v31 = vld [vmem:[%s3903_s9 + $0x10] sm:$0xff]  }
 0x963   : >> { %v1622_v14 = vpop.xlane.xlu0 %1621  ;;  %v1619_v35 = vpop.xlane.xlu1 %1618 }
 0x964   : >> { %v1628_v39 = vsub.f32 %v1612_v20, %v1622_v14  ;;  %v1627_v34 = vsub.f32 %v1611_v27, %v1619_v35 }
 0x966   : >> { %v1634_v15 = vmul.f32 1.442695, %v1628_v39  ;;  %v1632_v18 = vmul.f32 1.442695, %v1627_v34 }
 0x967   : >> { %v1625_v47 = vpop.xlane.xlu0 %1624 }
 0x968   : >> { %2693 = vpow2.f32 %v1634_v15  ;;  %v1629_v49 = vsub.f32 %v1613_v29, %v1625_v47 }
 0x969   : >> { %2695 = vpow2.f32 %v1630_v40 }
 0x96a   : >> { %v1636_v19 = vmul.f32 1.442695, %v1629_v49 }
 0x96c   : >> { %2697 = vpow2.f32 %v1636_v19 }
 0x96d   : >> { %2699 = vpow2.f32 %v1632_v18 }
 0x975   : >> { %v2694_v51 = vpop.eup %2693 }
 0x976   : >> { %v1644_v53 = vsel %vm837_vm7, %v2694_v51, 0.0  ;;  %v2696_v55 = vpop.eup %2695 }
 0x977   : >> { %1645 = vadd.xlane.f32.xlu0 %v1644_v53  ;;  %v1638_v37 = vsel %vm837_vm7, %v2696_v55, 0.0 }
 0x979   : >> { %v2698_v56 = vpop.eup %2697 }
 0x97a   : >> { %v1647_v58 = vsel %vm837_vm7, %v2698_v56, 0.0  ;;  %v2700_v59 = vpop.eup %2699 }
 0x97b   : >> { %1639 = vadd.xlane.f32.xlu0 %v1638_v37  ;;  %1648 = vadd.xlane.f32.xlu1 %v1647_v58  ;;  %v1641_v17 = vsel %vm837_vm7, %v2700_v59, 0.0 }
 0x97f   : >> { %1642 = vadd.xlane.f32.xlu1 %v1641_v17 }
 0x990   : >> { %1660 = vrot.lane.b32.xlu1 %v3671_v38, %s3084_s21 }
 0x991   : >> { %1662 = vrot.lane.b32.xlu0 %v3667_v45, %s3084_s21 }
 0x9a3   : >> { %v2460_v47 = vpop.f32.mrf.mxu0 }
 0x9a5   : >> { %v1844_v49 = vpop.f32.mrf.mxu0 }
 0x9a7   : >> { %v2461_v19 = vpop.f32.mrf.mxu0 }
 0xa00   : >> { %v1646_v61 = vpop.xlane.xlu0 %1645 }
 0xa04   : >> { %v1640_v62 = vpop.xlane.xlu0 %1639  ;;  %v1649_v63 = vpop.xlane.xlu1 %1648 }
 0xa05   : >> { %2701 = vrcp.f32 %v1649_v63  ;;  %v2709_v63 = vld [vmem:[%s3836_s13 + $0x18] sm:$0xff] (%p1050_p10)  }
 0xa06   : >> { %2703 = vrcp.f32 %v1640_v62  ;;  %2462 = vmatprep.subr.bf16.mxu0 (%p1050_p10), %v2709_v63 }
 0xa07   : >> { %2705 = vrcp.f32 %v1646_v61  ;;  %2463 = vmatpush3.bf16.msra.mxu0 (%p1050_p10), %v2709_v63 }
 0xa08   : >> { %v1663_v7 = vpop.permute.xlu0 %1662  ;;  %v1643_v10 = vpop.xlane.xlu1 %1642 }
 0xa09   : >> { %2707 = vrcp.f32 %v1643_v10  ;;  %2438 = vmatprep.subr.bf16.mxu1 %v1663_v7  ;;  %v2710_v10 = vld [vmem:[%s3836_s13 + $0x8] sm:$0xff] (%p1050_p10)  }
 0xa0a   : >> { %2439 = vmatpush3.bf16.msra.mxu1 %v1663_v7 }
 0xa0c   : >> { %v1661_v38 = vpop.permute.xlu1 %1660 }
 0xa0d   : >> { %2440 = vmatprep.subr.bf16.mxu1 %v1661_v38 }
 0xa0e   : >> { %2441 = vmatpush3.bf16.msra.mxu1 %v1661_v38  ;;  %v2711_v38 = vld [vmem:[%s3836_s13 + $0x10] sm:$0xff] (%p1050_p10)  }
 0xa0f   : >> { %2446 = vmatprep.subr.bf16.mxu1 %v2687_v28  ;;  %2464 = vmatprep.subr.bf16.mxu0 (%p1050_p10), %v2711_v38 }
 0xa10   : > { %2465 = vmatpush3.bf16.msra.mxu0 (%p1050_p10), %v2711_v38 }
 0xa12   : >> { %v2702_v45 = vpop.eup %2701 }
 0xa13   : >> { %v2704_v11 = vpop.eup %2703  ;;  %v1657_v24 = vmul.f32 %v2702_v45, %v2698_v56 }
 0xa14   : >> { %v2706_v23 = vpop.eup %2705  ;;  %v1654_v26 = vmul.f32 %v2704_v11, %v2696_v55 }
 0xa15   : >> { %v1656_v0 = vmul.f32 %v2706_v23, %v2694_v51 }
 0xa16   : >> { %v2708_v20 = vpop.eup %2707 }
 0xa17   : >> { %v1655_v27 = vmul.f32 %v2708_v20, %v2700_v59  ;;  %v1659_v29 = vpack.c.bf16 %v1657_v24, %v1656_v0  ;;  %v1847_v59 = vpop.f32.mrf.mxu0 }
 0xa19   : >> { %v1658_v16 = vpack.c.bf16 %v1655_v27, %v1654_v26 }
 0xa1b   : >> { %2442 = vmatprep.mubr.msk.bf16.mxu1 %vm837_vm7, %v1658_v16 }
 0xa1c   : >> { %2443 = vmatmul.mubr.msk.bf16.vlgmr.msra.gmra.mxu1 %vm837_vm7, %v1659_v29 }
 0xa1d   : >> { %2447 = vmatpush3.bf16.msra.mxu1 %v2687_v28 }
 0xa1e   : >> { %2448 = vmatprep.subr.bf16.mxu1 %v2688_v31 }
 0xa21   : >> { %2449 = vmatpush3.bf16.msra.mxu1 %v2688_v31 }
 0xa22   : > { %2470 = vmatprep.subr.bf16.mxu1 (%p1050_p10), %v2710_v10 }
 0xadc   : >> { %v2444_v14 = vpop.f32.mrf.mxu1 }
 0xade   : >> { %v1706_v35 = vpop.f32.mrf.mxu1 }
 0xae0   : >> { %v2445_v39 = vpop.f32.mrf.mxu1 }
 0xae1   : >> { %v1726_v34 = vpack.c.bf16 %v2445_v39, %v2444_v14 }
 0xae2   : >> { %v1709_v40 = vpop.f32.mrf.mxu1 }
 0xae3   : >> { %v1725_v15 = vpack.c.bf16 %v1709_v40, %v1706_v35 }
 0xae5   : >> { %2450 = vmatprep.mubr.msk.bf16.mxu1 %vm837_vm7, %v1725_v15 }
 0xae6   : >> { %2451 = vmatmul.mubr.msk.bf16.vlgmr.msra.gmra.mxu1 %vm837_vm7, %v1726_v34 }
 0xae7   : > { %2474 = vmatprep.mubr.msk.bf16.mxu1 (%p1050_p10), %vm837_vm7, %v3495_v21  ;;  %2471 = vmatpush3.bf16.msra.mxu1 (%p1050_p10), %v2710_v10 }
 0xba6   : >> { %v2452_v18 = vpop.f32.mrf.mxu1 }
 0xba7   : >> { %v1853_v22 = vadd.f32 %v2460_v47, %v2452_v18 }
 0xba8   : >> { %v1783_v51 = vpop.f32.mrf.mxu1 }
 0xba9   : >> { %v1865_v53 = vadd.f32 %v3428_v1, %v1853_v22   ;;  %v1845_v55 = vadd.f32 %v1844_v49, %v1783_v51 }
 0xbaa   : >> { %v2453_v56 = vpop.f32.mrf.mxu1 }
 0xbab   : >> { %v1863_v37 = vadd.f32 %v3428_v1, %v1845_v55   ;;  %v1856_v58 = vadd.f32 %v2461_v19, %v2453_v56  ;;  %v3905_v15 = vmov %v1865_v53 }
 0xbac   : >> { %v1786_v17 = vpop.f32.mrf.mxu1 }
 0xbad   : >> { %v1866_v60 = vadd.f32 %v3428_v1, %v1856_v58   ;;  %v1848_v61 = vadd.f32 %v1847_v59, %v1786_v17  ;;  %v3907_v0 = vmov %v1863_v37  ;;  %1052 = sbr.rel (!%p1050_p10) target bundleno = 790 (0x316), region = 168 }
 0xbaf   : >> { %v1864_v62 = vadd.f32 %v3428_v1, %v1848_v61   ;;  %v3904_v14 = vmov %v1866_v60  ;;  %v2712_v1 = vld [vmem:[%s3836_s13] sm:$0xff] (%p1050_p10)   ;;  %v1872_v3 = vpack.c.bf16 (%p1050_p10), %v1866_v60, %v1865_v53 }
 0xbb0   : > { %2472 = vmatprep.subr.bf16.mxu1 (%p1050_p10), %v2712_v1 }
 0xbb1   : >> { %v3906_v16 = vmov %v1864_v62  ;;  %v1871_v7 = vpack.c.bf16 (%p1050_p10), %v1864_v62, %v1863_v37  ;;  %2473 = vmatpush3.bf16.msra.mxu1 (%p1050_p10), %v2712_v1 }
 0xbb3   : > { %2466 = vmatprep.mubr.msk.bf16.mxu0 %vm837_vm7, %v1871_v7 }
 0xbb4   : > { %2467 = vmatmul.mubr.msk.bf16.vlgmr.msra.gmra.mxu0 %vm837_vm7, %v1872_v3  ;;  %2475 = vmatmul.mubr.msk.bf16.vlgmr.msra.gmra.mxu1 %vm837_vm7, %v3497_v25 }
 0xc74   : > { %v2468_v4 = vpop.f32.mrf.mxu0  ;;  %v2476_v5 = vpop.f32.mrf.mxu1 }
 0xc75   : > { %v1999_v6 = vadd.f32 %v2476_v5, %v2468_v4 }
 0xc76   : > { %v1929_v8 = vpop.f32.mrf.mxu0  ;;  %v1990_v9 = vpop.f32.mrf.mxu1 }
 0xc77   : > { %v2011_v48 = vadd.f32 %v3433_v2, %v1999_v6  ;;  %v1991_v21 = vadd.f32 %v1990_v9, %v1929_v8 }
 0xc78   : > { %v2469_v32 = vpop.f32.mrf.mxu0  ;;  %v2477_v33 = vpop.f32.mrf.mxu1 }
 0xc79   : > { %2015 = vst.msk [vmem:[%s3559_s28 + $0x10] sm:$0xff] %vm837_vm7, %v2011_v48  ;;  %v2009_v36 = vadd.f32 %v3433_v2, %v1991_v21  ;;  %v2002_v41 = vadd.f32 %v2477_v33, %v2469_v32 }
 0xc7a   : > { %v1932_v25 = vpop.f32.mrf.mxu0  ;;  %v1993_v42 = vpop.f32.mrf.mxu1 }
 0xc7b   : > { %2013 = vst.msk [vmem:[%s3559_s28] sm:$0xff] %vm837_vm7, %v2009_v36  ;;  %v2012_v43 = vadd.f32 %v3433_v2, %v2002_v41  ;;  %v1994_v44 = vadd.f32 %v1993_v42, %v1932_v25 }
 0xc7d   : > { %2016 = vst.msk [vmem:[%s3559_s28 + $0x18] sm:$0xff] %vm837_vm7, %v2012_v43  ;;  %v2010_v46 = vadd.f32 %v3433_v2, %v1994_v44 }
 0xc7f   : > { %2014 = vst.msk [vmem:[%s3559_s28 + $0x8] sm:$0xff] %vm837_vm7, %v2010_v46 }
 0xc80   : > { %2952 = shalt.err (!%p2949_p11)
}
 0xc81   : > { %s2953_s28 = scalar_lea.hbm %s3774_s3, 512  ;;  %s2957_s10 = scalar_lea.hbm %s3840_s17, 1024 }
 0xc82   : > { %p2954_p7 = scmp.ne.s32.totalorder %s3774_s3, %s2953_s28  ;;  %p2958_p5 = scmp.lt.s32.totalorder %s3774_s3, %s3840_s17 }
 0xc83   : > { %p2959_p9 = scmp.lt.s32.totalorder %s2957_s10, %s2953_s28 }
 0xc84   : > { %p2955_p0 = pnand %p2954_p7, %p3908_p13 }
 0xc85   : > { %p2960_p10 = por %p2959_p9, %p2958_p5 }
 0xc86   : > { %p2956_p2 = pneg %p2955_p0 }
 0xc88   : > { %p2961_p12 = pnand %p2960_p10, %p2956_p2 }
 0xc8a   : > { %2964 = shalt.err (!%p2961_p12)
}
 0xc8b   : > { %s3088_s29 = smov 128   ;;  %s3089_s22 = smov 8  }
 0xc8c   : > { %2512 = dma.vmem_to_hbm [thread:$0]  (%p3908_p13), %s3776_s26, 512, %s3774_s3, %s2018_s2, %s3088_s29, %s3088_s29, %s3089_s22  }
 0xc8d PF: > { %s2047_s8 = sand.u32 1, %s3029_s0   ;;  %p3909_p1 = scmp.ne.s32.totalorder %s3876_s25, 0 }
 0xc8e   : > { %p3910_p3 = scmp.ge.s32.totalorder %s3041_s18, 2  ;;  %s2048_s12 = scalar_lea.sflag [#allocation7], %s2047_s8 }
 0xc90   : > { %p2541_p4 = pnand %p3910_p3, %p3909_p1 }
 0xc92   : > { %p2542_p8 = pneg %p2541_p4 }
 0xc94   : > { %3024 = dma.done.wait (%p2542_p8), %s2048_s12, 512  }
 0xc95   : > { %3026 = vsyncadd (%p2542_p8), %s2048_s12, 4294966784  ;;  %s3911_s27 = sld [smem:[#allocation27_spill]]  ;;  %p40_p6 = scmp.ge.s32.totalorder %s3314_s23, 4  }
 0xc96   : > { %s3912_s12 = sld [smem:[#allocation28_spill]]  ;;  %s3913_s0 = smov %s3033_s30 }
 0xc97   : > { %s3915_s18 = smov %s3314_s23  ;;  %42 = sbr.rel (!%p40_p6) target bundleno = 32 (0x20), region = 179 }
 0xc9b   : > { %s3914_s30 = smov %s3911_s27 }
 0xc9c   :  { %2053 = vsyncpa [#allocation6], 1 }
 0xc9d   :  { %2055 = vsyncpa [#allocation6 + $0x1], 1 }
 0xc9e   :  { %2056 = vsyncpa [#allocation9], 1 }
 0xc9f   :  { %2057 = vsyncpa [#allocation12], 1 }
 0xca0   :  { %2058 = vsyncpa [#allocation15], 1 }
 0xca1   :  { %2059 = vsyncpa [#allocation18], 1 }
 0xca2   :  { %2060 = vsyncpa [#allocation7], 1 }
 0xca3   :  { %2062 = vsyncpa [#allocation7 + $0x1], 1 }

</bundles_post_ra>
